<compile_context>
chip_gen: v6e
topology: v6e:2x2x1
jax: 0.10.0
libtpu: 0.0.40
codegen_flags: <defaults>
</compile_context>

<pallas_src>
import jax
import jax.numpy as jnp
import numpy as np
from jax.experimental import pallas as pl
from jax.experimental.pallas import tpu as pltpu


def _ceil_to(x, m):
    return -(-x // m) * m


def _layer_config(input_dim, hidden_dims, kernel_size, add_channel_pool):
    """Per conv layer: (kernel_size, in_ch, padded_in_ch, out_ch)."""
    dims = [input_dim] + list(hidden_dims)
    cfg = []
    for i in range(len(dims) - 1):
        cfg.append((kernel_size, dims[i], _ceil_to(dims[i], 8), dims[i + 1]))
    if add_channel_pool:
        cfg.append((1, dims[-1], _ceil_to(dims[-1], 8), dims[-1]))
    return cfg


def _build_tap_masks(batch, H, W, K, cp):
    """(K*K, cp, B*H*W) 0/1 validity masks for the K*K 'same'-padding taps,
    pre-broadcast over the (padded) channel sublanes."""
    p = (K - 1) // 2
    hw = H * W
    n = batch * hw
    s = np.arange(n) % hw
    hh, ww = s // W, s % W
    m = np.zeros((K * K, n), np.float32)
    for ky in range(K):
        for kx in range(K):
            dy, dx = ky - p, kx - p
            ok = (hh + dy >= 0) & (hh + dy < H) & (ww + dx >= 0) & (ww + dx < W)
            m[ky * K + kx] = ok.astype(np.float32)
    m_bc = np.ascontiguousarray(np.broadcast_to(m[:, None, :], (K * K, cp, n)))
    return jnp.asarray(m_bc)


def _make_fused_kernel(B, H, W, cfg, cp_bc):
    """Kernel: conv stack + ReLUs + linear head, all in VMEM."""
    HW = H * W
    N = B * HW
    n_layers = len(cfg)

    def kernel(*refs):
        mask_ref, x_ref = refs[0], refs[1]
        conv_refs = refs[2:2 + 2 * n_layers]
        wl_hbm, bl_ref, o_ref = refs[2 + 2 * n_layers:5 + 2 * n_layers]
        im2_scr, act_scr, feat_scr, wl_vmem, head_sem = refs[5 + 2 * n_layers:]

        # Kick off the head-weight HBM->VMEM DMA now; it overlaps the conv stack
        # and is waited on right before the head matmul.
        head_cp = pltpu.make_async_copy(wl_hbm, wl_vmem, head_sem)
        head_cp.start()

        # Input is already lane-dense (Cpad, B*H*W) and channel-padded (wrapper).
        act = x_ref[...]

        # ---- conv layers: one im2col matmul per layer, fused bias + ReLU.
        for li, (k, _cin, cp, _cout) in enumerate(cfg):
            w_ref, b_ref = conv_refs[2 * li], conv_refs[2 * li + 1]
            if act.shape[0] < cp:   # generic channel pad (not hit in this config)
                act = jnp.concatenate(
                    [act, jnp.zeros((cp - act.shape[0], N), jnp.float32)], axis=0)
            if k == 1:
                rhs = act
            else:
                p = (k - 1) // 2
                for ky in range(k):
                    for kx in range(k):
                        t = ky * k + kx
                        dy, dx = ky - p, kx - p
                        delta = dy * W + dx    # flat-lane offset of this tap
                        if delta == 0:
                            tap = act
                        else:
                            m = mask_ref[t]              # (cp_bc, N), pre-broadcast
                            if cp != cp_bc:              # generic path, not traced here
                                m = m[:cp, :]
                            tap = pltpu.roll(act, shift=(-delta) % N, axis=1) * m
                        im2_scr[t * cp:(t + 1) * cp, :] = tap
                rhs = im2_scr[0:k * k * cp, :]
            # bf16 MXU operands, f32 accumulate.
            z = jnp.dot(w_ref[...], rhs.astype(jnp.bfloat16),
                        preferred_element_type=jnp.float32)
            act = jnp.maximum(z + b_ref[...], 0.0)       # bias + ReLU

        # ---- linear head: (C, B*HW) -> (B, C*HW) (matches PyTorch
        # x.view(-1, C*H*W)) via aligned ref copies, then one f32 matmul.
        act_scr[...] = act
        clast = act.shape[0]
        for b in range(B):
            for c in range(clast):
                feat_scr[b:b + 1, c * HW:(c + 1) * HW] = \
                    act_scr[c:c + 1, b * HW:(b + 1) * HW]
        head_cp.wait()       # head weight resident (DMA overlapped with convs)
        out = jnp.dot(feat_scr[...], wl_vmem[...],
                      preferred_element_type=jnp.float32)
        o_ref[...] = out + bl_ref[...]

    return kernel


def build_grid_cnn(n_rows, n_cols, input_dim, hidden_dims, output_dim,
                   kernel_size, add_channel_pool, batch):
    H, W = n_rows, n_cols
    HW, N = H * W, batch * H * W
    cfg = _layer_config(input_dim, hidden_dims, kernel_size, add_channel_pool)
    cp0 = cfg[0][2]
    clast = cfg[-1][3]
    feat_dim = clast * HW
    max_kkcp = max(k * k * cp for (k, _, cp, _) in cfg)
    cp_bc = max([cp for (k, _, cp, _) in cfg if k > 1], default=cp0)
    masks_bc = _build_tap_masks(batch, H, W, kernel_size, cp_bc)

    kernel = _make_fused_kernel(batch, H, W, cfg, cp_bc)

    def _full(shape):
        shape = tuple(int(s) for s in shape)
        return pl.BlockSpec(shape, lambda i: (0,) * len(shape))

    in_specs = [_full(masks_bc.shape), _full((cp0, N))]
    for (k, _cin, cp, cout) in cfg:
        in_specs.append(_full((cout, k * k * cp)))   # flattened conv weight (bf16)
        in_specs.append(_full((cout, 1)))            # bias (f32, lane-broadcast)
    in_specs.append(pl.BlockSpec(memory_space=pl.ANY))  # head weight: stays in HBM,
                                                        # DMA'd manually (overlapped)
    in_specs.append(_full((1, output_dim)))             # head bias

    fused = pl.pallas_call(
        kernel,
        out_shape=jax.ShapeDtypeStruct((batch, output_dim), jnp.float32),
        grid=(1,),
        in_specs=in_specs,
        out_specs=_full((batch, output_dim)),
        scratch_shapes=[
            pltpu.VMEM((max_kkcp, N), jnp.float32),           # im2col buffer
            pltpu.VMEM((clast, N), jnp.float32),              # last conv activation
            pltpu.VMEM((batch, feat_dim), jnp.float32),       # flattened features
            pltpu.VMEM((feat_dim, output_dim), jnp.float32),  # head-weight landing buf
            pltpu.SemaphoreType.DMA,                          # head-weight DMA sem
        ],
        compiler_params=pltpu.CompilerParams(
            dimension_semantics=("arbitrary",)),
    )

    def prepare_params(torch_params):
        """Fold layout permutations / channel padding into the weights once,
        outside the jitted forward."""
        flat = []
        for (w_oihw, bvec), (k, cin, cp, cout) in zip(torch_params["convs"], cfg):
            wt = jnp.transpose(w_oihw, (0, 2, 3, 1))           # (Cout, K, K, Cin)
            if cp > cin:
                wt = jnp.pad(wt, ((0, 0), (0, 0), (0, 0), (0, cp - cin)))
            flat.append(wt.reshape(cout, k * k * cp).astype(jnp.bfloat16))
            flat.append(bvec.reshape(cout, 1).astype(jnp.float32))
        lw, lb = torch_params["lin_w"], torch_params["lin_b"]  # (O, F), (O,)
        wl = jnp.asarray(lw.T, jnp.float32)                    # (feat_dim, O) -- no pad
        bl = jnp.asarray(lb, jnp.float32).reshape(1, output_dim)
        return {"conv_flat": flat, "wl": wl, "bl": bl}

    @jax.jit
    def forward(x_nchw, kparams):
        # NCHW -> lane-dense (Cin, B*HW) + channel pad: cheap wrapper-side XLA ops
        # (8 KB), replacing the in-kernel single-sublane staging loop.
        x3 = x_nchw.reshape(batch, input_dim, HW).astype(jnp.float32)
        xl = jnp.transpose(x3, (1, 0, 2)).reshape(input_dim, N)
        if cp0 > input_dim:
            xl = jnp.pad(xl, ((0, cp0 - input_dim), (0, 0)))
        return fused(masks_bc, xl, *kparams["conv_flat"],
                     kparams["wl"], kparams["bl"])

    return forward, prepare_params, cfg


def init_torch_style_params(key, n_rows, n_cols, input_dim, hidden_dims,
                            output_dim, kernel_size, add_channel_pool):
    """Parameters in PyTorch layout: conv OIHW, linear (O, F)."""
    dims = [input_dim] + list(hidden_dims)
    convs = []
    for i in range(len(dims) - 1):
        key, kw, kb = jax.random.split(key, 3)
        w = 0.1 * jax.random.normal(
            kw, (dims[i + 1], dims[i], kernel_size, kernel_size), jnp.float32)
        b = 0.1 * jax.random.normal(kb, (dims[i + 1],), jnp.float32)
        convs.append((w, b))
    if add_channel_pool:
        key, kw, kb = jax.random.split(key, 3)
        w = 0.1 * jax.random.normal(kw, (dims[-1], dims[-1], 1, 1), jnp.float32)
        b = 0.1 * jax.random.normal(kb, (dims[-1],), jnp.float32)
        convs.append((w, b))
    flat = n_rows * n_cols * dims[-1]
    key, kw, kb = jax.random.split(key, 3)
    lin_w = 0.1 * jax.random.normal(kw, (output_dim, flat), jnp.float32)
    lin_b = 0.1 * jax.random.normal(kb, (output_dim,), jnp.float32)
    return {"convs": convs, "lin_w": lin_w, "lin_b": lin_b}


def reference_forward(x_nchw, torch_params, cfg):
    """Pure-JAX reference of the PyTorch module (for correctness checking)."""
    h = x_nchw.astype(jnp.float32)
    for (w, b), (k, _, _, _) in zip(torch_params["convs"], cfg):
        p = (k - 1) // 2
        h = jax.lax.conv_general_dilated(
            h, w, window_strides=(1, 1), padding=[(p, p), (p, p)],
            dimension_numbers=("NCHW", "OIHW", "NCHW"))
        h = jnp.maximum(h + b.reshape(1, -1, 1, 1), 0.0)
    flat = h.reshape(h.shape[0], -1)
    return flat @ torch_params["lin_w"].T + torch_params["lin_b"]


if __name__ == "__main__":
    n_rows = n_cols = 16
    input_dim = 4
    hidden_dims = [8, 8]
    output_dim = 10
    kernel_size = 3
    batch = 2
    # activation='relu', add_channel_pool=True
    # TODO(synk): only the 'relu' activation variant is implemented (matches the
    # configuration under test); leaky_relu/relu6/elu would swap the jnp.maximum.

    key = jax.random.PRNGKey(0)
    key, kx = jax.random.split(key)
    x = jax.random.normal(kx, (batch, input_dim, n_rows, n_cols), jnp.float32)

    torch_params = init_torch_style_params(
        key, n_rows, n_cols, input_dim, hidden_dims, output_dim,
        kernel_size, add_channel_pool=True)

    forward, prepare_params, cfg = build_grid_cnn(
        n_rows, n_cols, input_dim, hidden_dims, output_dim,
        kernel_size, add_channel_pool=True, batch=batch)

    kparams = prepare_params(torch_params)      # one-time layout folding
    out = jax.block_until_ready(forward(x, kparams))
    assert out.shape == (batch, output_dim), out.shape

    # Correctness check against a pure-JAX f32 reference (loose tol: conv
    # matmuls use bf16 MXU operands with f32 accumulation).
    ref = reference_forward(x, torch_params, cfg)
    np.testing.assert_allclose(np.asarray(out), np.asarray(ref),
                               rtol=5e-2, atol=5e-2)
    print("KERNEL_OK")
</pallas_src>

<mosaic_0001>
module attributes {stable_mosaic.version = 11 : i64} {
  func.func @kernel(%arg0: i32, %arg1: memref<9x8x512xf32, #tpu.memory_space<vmem>>, %arg2: memref<8x512xf32, #tpu.memory_space<vmem>>, %arg3: memref<8x72xbf16, #tpu.memory_space<vmem>>, %arg4: memref<8x1xf32, #tpu.memory_space<vmem>>, %arg5: memref<8x72xbf16, #tpu.memory_space<vmem>>, %arg6: memref<8x1xf32, #tpu.memory_space<vmem>>, %arg7: memref<8x8xbf16, #tpu.memory_space<vmem>>, %arg8: memref<8x1xf32, #tpu.memory_space<vmem>>, %arg9: memref<2048x10xf32, #tpu.memory_space<any>>, %arg10: memref<1x10xf32, #tpu.memory_space<vmem>>, %arg11: memref<2x10xf32, #tpu.memory_space<vmem>>, %arg12: memref<72x512xf32, #tpu.memory_space<vmem>>, %arg13: memref<8x512xf32, #tpu.memory_space<vmem>>, %arg14: memref<2x2048xf32, #tpu.memory_space<vmem>>, %arg15: memref<2048x10xf32, #tpu.memory_space<vmem>>, %arg16: memref<!tpu.dma_semaphore, #tpu.memory_space<semaphore_mem>>) attributes {dimension_semantics = [#tpu.dimension_semantics<arbitrary>], iteration_bounds = array<i64: 1>, scalar_prefetch = 0 : i64, scratch_operands = 5 : i64, tpu.core_type = #tpu.core_type<tc>, window_params = [{pipeline_mode = #tpu.pipeline_mode<synchronous>, transform_indices = @transform_0, window_bounds = array<i64: 9, 8, 512>}, {pipeline_mode = #tpu.pipeline_mode<synchronous>, transform_indices = @transform_1, window_bounds = array<i64: 8, 512>}, {pipeline_mode = #tpu.pipeline_mode<synchronous>, transform_indices = @transform_2, window_bounds = array<i64: 8, 72>}, {pipeline_mode = #tpu.pipeline_mode<synchronous>, transform_indices = @transform_3, window_bounds = array<i64: 8, 1>}, {pipeline_mode = #tpu.pipeline_mode<synchronous>, transform_indices = @transform_4, window_bounds = array<i64: 8, 72>}, {pipeline_mode = #tpu.pipeline_mode<synchronous>, transform_indices = @transform_5, window_bounds = array<i64: 8, 1>}, {pipeline_mode = #tpu.pipeline_mode<synchronous>, transform_indices = @transform_6, window_bounds = array<i64: 8, 8>}, {pipeline_mode = #tpu.pipeline_mode<synchronous>, transform_indices = @transform_7, window_bounds = array<i64: 8, 1>}, {}, {pipeline_mode = #tpu.pipeline_mode<synchronous>, transform_indices = @transform_9, window_bounds = array<i64: 1, 10>}, {pipeline_mode = #tpu.pipeline_mode<synchronous>, transform_indices = @transform_10, window_bounds = array<i64: 2, 10>}]} {
    tpu.enqueue_dma source(%arg9 : memref<2048x10xf32, #tpu.memory_space<any>>) target(%arg15 : memref<2048x10xf32, #tpu.memory_space<vmem>>) target_semaphore(%arg16 : memref<!tpu.dma_semaphore, #tpu.memory_space<semaphore_mem>>)
    %c0 = arith.constant 0 : index
    %c0_0 = arith.constant 0 : index
    %0 = vector.load %arg2[%c0, %c0_0] : memref<8x512xf32, #tpu.memory_space<vmem>>, vector<8x512xf32>
    %c0_1 = arith.constant 0 : index
    %c0_2 = arith.constant 0 : index
    %c0_3 = arith.constant 0 : index
    %1 = vector.load %arg1[%c0_1, %c0_2, %c0_3] : memref<9x8x512xf32, #tpu.memory_space<vmem>>, vector<1x8x512xf32>
    %2 = vector.shape_cast %1 : vector<1x8x512xf32> to vector<8x512xf32>
    %c17_i32 = arith.constant 17 : i32
    %3 = tpu.dynamic_rotate %0 by %c17_i32 dim 1 : vector<8x512xf32>, i32 -> vector<8x512xf32>
    %4 = arith.mulf %3, %2 : vector<8x512xf32>
    %c0_4 = arith.constant 0 : index
    %c0_5 = arith.constant 0 : index
    %5 = vector.load %arg12[%c0_4, %c0_5] : memref<72x512xf32, #tpu.memory_space<vmem>>, vector<8x512xf32>
    tpu.vector_store %arg12[%c0_4, %c0_5], %4 {strides = array<i32>} : memref<72x512xf32, #tpu.memory_space<vmem>>, vector<8x512xf32>,
    %c1 = arith.constant 1 : index
    %c0_6 = arith.constant 0 : index
    %c0_7 = arith.constant 0 : index
    %6 = vector.load %arg1[%c1, %c0_6, %c0_7] : memref<9x8x512xf32, #tpu.memory_space<vmem>>, vector<1x8x512xf32>
    %7 = vector.shape_cast %6 : vector<1x8x512xf32> to vector<8x512xf32>
    %c16_i32 = arith.constant 16 : i32
    %8 = tpu.dynamic_rotate %0 by %c16_i32 dim 1 : vector<8x512xf32>, i32 -> vector<8x512xf32>
    %9 = arith.mulf %8, %7 : vector<8x512xf32>
    %c8 = arith.constant 8 : index
    %c0_8 = arith.constant 0 : index
    %10 = vector.load %arg12[%c8, %c0_8] : memref<72x512xf32, #tpu.memory_space<vmem>>, vector<8x512xf32>
    tpu.vector_store %arg12[%c8, %c0_8], %9 {strides = array<i32>} : memref<72x512xf32, #tpu.memory_space<vmem>>, vector<8x512xf32>,
    %c2 = arith.constant 2 : index
    %c0_9 = arith.constant 0 : index
    %c0_10 = arith.constant 0 : index
    %11 = vector.load %arg1[%c2, %c0_9, %c0_10] : memref<9x8x512xf32, #tpu.memory_space<vmem>>, vector<1x8x512xf32>
    %12 = vector.shape_cast %11 : vector<1x8x512xf32> to vector<8x512xf32>
    %c15_i32 = arith.constant 15 : i32
    %13 = tpu.dynamic_rotate %0 by %c15_i32 dim 1 : vector<8x512xf32>, i32 -> vector<8x512xf32>
    %14 = arith.mulf %13, %12 : vector<8x512xf32>
    %c16 = arith.constant 16 : index
    %c0_11 = arith.constant 0 : index
    %15 = vector.load %arg12[%c16, %c0_11] : memref<72x512xf32, #tpu.memory_space<vmem>>, vector<8x512xf32>
    tpu.vector_store %arg12[%c16, %c0_11], %14 {strides = array<i32>} : memref<72x512xf32, #tpu.memory_space<vmem>>, vector<8x512xf32>,
    %c3 = arith.constant 3 : index
    %c0_12 = arith.constant 0 : index
    %c0_13 = arith.constant 0 : index
    %16 = vector.load %arg1[%c3, %c0_12, %c0_13] : memref<9x8x512xf32, #tpu.memory_space<vmem>>, vector<1x8x512xf32>
    %17 = vector.shape_cast %16 : vector<1x8x512xf32> to vector<8x512xf32>
    %c1_i32 = arith.constant 1 : i32
    %18 = tpu.dynamic_rotate %0 by %c1_i32 dim 1 : vector<8x512xf32>, i32 -> vector<8x512xf32>
    %19 = arith.mulf %18, %17 : vector<8x512xf32>
    %c24 = arith.constant 24 : index
    %c0_14 = arith.constant 0 : index
    %20 = vector.load %arg12[%c24, %c0_14] : memref<72x512xf32, #tpu.memory_space<vmem>>, vector<8x512xf32>
    tpu.vector_store %arg12[%c24, %c0_14], %19 {strides = array<i32>} : memref<72x512xf32, #tpu.memory_space<vmem>>, vector<8x512xf32>,
    %c32 = arith.constant 32 : index
    %c0_15 = arith.constant 0 : index
    %21 = vector.load %arg12[%c32, %c0_15] : memref<72x512xf32, #tpu.memory_space<vmem>>, vector<8x512xf32>
    tpu.vector_store %arg12[%c32, %c0_15], %0 {strides = array<i32>} : memref<72x512xf32, #tpu.memory_space<vmem>>, vector<8x512xf32>,
    %c5 = arith.constant 5 : index
    %c0_16 = arith.constant 0 : index
    %c0_17 = arith.constant 0 : index
    %22 = vector.load %arg1[%c5, %c0_16, %c0_17] : memref<9x8x512xf32, #tpu.memory_space<vmem>>, vector<1x8x512xf32>
    %23 = vector.shape_cast %22 : vector<1x8x512xf32> to vector<8x512xf32>
    %c511_i32 = arith.constant 511 : i32
    %24 = tpu.dynamic_rotate %0 by %c511_i32 dim 1 : vector<8x512xf32>, i32 -> vector<8x512xf32>
    %25 = arith.mulf %24, %23 : vector<8x512xf32>
    %c40 = arith.constant 40 : index
    %c0_18 = arith.constant 0 : index
    %26 = vector.load %arg12[%c40, %c0_18] : memref<72x512xf32, #tpu.memory_space<vmem>>, vector<8x512xf32>
    tpu.vector_store %arg12[%c40, %c0_18], %25 {strides = array<i32>} : memref<72x512xf32, #tpu.memory_space<vmem>>, vector<8x512xf32>,
    %c6 = arith.constant 6 : index
    %c0_19 = arith.constant 0 : index
    %c0_20 = arith.constant 0 : index
    %27 = vector.load %arg1[%c6, %c0_19, %c0_20] : memref<9x8x512xf32, #tpu.memory_space<vmem>>, vector<1x8x512xf32>
    %28 = vector.shape_cast %27 : vector<1x8x512xf32> to vector<8x512xf32>
    %c497_i32 = arith.constant 497 : i32
    %29 = tpu.dynamic_rotate %0 by %c497_i32 dim 1 : vector<8x512xf32>, i32 -> vector<8x512xf32>
    %30 = arith.mulf %29, %28 : vector<8x512xf32>
    %c48 = arith.constant 48 : index
    %c0_21 = arith.constant 0 : index
    %31 = vector.load %arg12[%c48, %c0_21] : memref<72x512xf32, #tpu.memory_space<vmem>>, vector<8x512xf32>
    tpu.vector_store %arg12[%c48, %c0_21], %30 {strides = array<i32>} : memref<72x512xf32, #tpu.memory_space<vmem>>, vector<8x512xf32>,
    %c7 = arith.constant 7 : index
    %c0_22 = arith.constant 0 : index
    %c0_23 = arith.constant 0 : index
    %32 = vector.load %arg1[%c7, %c0_22, %c0_23] : memref<9x8x512xf32, #tpu.memory_space<vmem>>, vector<1x8x512xf32>
    %33 = vector.shape_cast %32 : vector<1x8x512xf32> to vector<8x512xf32>
    %c496_i32 = arith.constant 496 : i32
    %34 = tpu.dynamic_rotate %0 by %c496_i32 dim 1 : vector<8x512xf32>, i32 -> vector<8x512xf32>
    %35 = arith.mulf %34, %33 : vector<8x512xf32>
    %c56 = arith.constant 56 : index
    %c0_24 = arith.constant 0 : index
    %36 = vector.load %arg12[%c56, %c0_24] : memref<72x512xf32, #tpu.memory_space<vmem>>, vector<8x512xf32>
    tpu.vector_store %arg12[%c56, %c0_24], %35 {strides = array<i32>} : memref<72x512xf32, #tpu.memory_space<vmem>>, vector<8x512xf32>,
    %c8_25 = arith.constant 8 : index
    %c0_26 = arith.constant 0 : index
    %c0_27 = arith.constant 0 : index
    %37 = vector.load %arg1[%c8_25, %c0_26, %c0_27] : memref<9x8x512xf32, #tpu.memory_space<vmem>>, vector<1x8x512xf32>
    %38 = vector.shape_cast %37 : vector<1x8x512xf32> to vector<8x512xf32>
    %c495_i32 = arith.constant 495 : i32
    %39 = tpu.dynamic_rotate %0 by %c495_i32 dim 1 : vector<8x512xf32>, i32 -> vector<8x512xf32>
    %40 = arith.mulf %39, %38 : vector<8x512xf32>
    %c64 = arith.constant 64 : index
    %c0_28 = arith.constant 0 : index
    %41 = vector.load %arg12[%c64, %c0_28] : memref<72x512xf32, #tpu.memory_space<vmem>>, vector<8x512xf32>
    tpu.vector_store %arg12[%c64, %c0_28], %40 {strides = array<i32>} : memref<72x512xf32, #tpu.memory_space<vmem>>, vector<8x512xf32>,
    %c0_29 = arith.constant 0 : index
    %c0_30 = arith.constant 0 : index
    %42 = vector.load %arg12[%c0_29, %c0_30] : memref<72x512xf32, #tpu.memory_space<vmem>>, vector<72x512xf32>
    %c0_31 = arith.constant 0 : index
    %c0_32 = arith.constant 0 : index
    %43 = vector.load %arg3[%c0_31, %c0_32] : memref<8x72xbf16, #tpu.memory_space<vmem>>, vector<8x72xbf16>
    %44 = arith.truncf %42 : vector<72x512xf32> to vector<72x512xbf16>
    %cst = arith.constant dense<0.000000e+00> : vector<8x512xf32>
    %45 = tpu.matmul %43, %44, %cst {dimension_numbers = #tpu.dot_dimension_numbers<[1], [0], [0], [1], [0, 0, 1, 1], [], []>} : vector<8x72xbf16>, vector<72x512xbf16>, vector<8x512xf32> -> vector<8x512xf32>
    %c0_33 = arith.constant 0 : index
    %c0_34 = arith.constant 0 : index
    %46 = vector.load %arg4[%c0_33, %c0_34] : memref<8x1xf32, #tpu.memory_space<vmem>>, vector<8x1xf32>
    %47 = vector.broadcast %46 : vector<8x1xf32> to vector<8x512xf32>
    %48 = arith.addf %45, %47 : vector<8x512xf32>
    %cst_35 = arith.constant 0.000000e+00 : f32
    %49 = vector.broadcast %cst_35 : f32 to vector<8x512xf32>
    %50 = arith.maximumf %48, %49 : vector<8x512xf32>
    %c0_36 = arith.constant 0 : index
    %c0_37 = arith.constant 0 : index
    %c0_38 = arith.constant 0 : index
    %51 = vector.load %arg1[%c0_36, %c0_37, %c0_38] : memref<9x8x512xf32, #tpu.memory_space<vmem>>, vector<1x8x512xf32>
    %52 = vector.shape_cast %51 : vector<1x8x512xf32> to vector<8x512xf32>
    %c17_i32_39 = arith.constant 17 : i32
    %53 = tpu.dynamic_rotate %50 by %c17_i32_39 dim 1 : vector<8x512xf32>, i32 -> vector<8x512xf32>
    %54 = arith.mulf %53, %52 : vector<8x512xf32>
    %c0_40 = arith.constant 0 : index
    %c0_41 = arith.constant 0 : index
    %55 = vector.load %arg12[%c0_40, %c0_41] : memref<72x512xf32, #tpu.memory_space<vmem>>, vector<8x512xf32>
    tpu.vector_store %arg12[%c0_40, %c0_41], %54 {strides = array<i32>} : memref<72x512xf32, #tpu.memory_space<vmem>>, vector<8x512xf32>,
    %c1_42 = arith.constant 1 : index
    %c0_43 = arith.constant 0 : index
    %c0_44 = arith.constant 0 : index
    %56 = vector.load %arg1[%c1_42, %c0_43, %c0_44] : memref<9x8x512xf32, #tpu.memory_space<vmem>>, vector<1x8x512xf32>
    %57 = vector.shape_cast %56 : vector<1x8x512xf32> to vector<8x512xf32>
    %c16_i32_45 = arith.constant 16 : i32
    %58 = tpu.dynamic_rotate %50 by %c16_i32_45 dim 1 : vector<8x512xf32>, i32 -> vector<8x512xf32>
    %59 = arith.mulf %58, %57 : vector<8x512xf32>
    %c8_46 = arith.constant 8 : index
    %c0_47 = arith.constant 0 : index
    %60 = vector.load %arg12[%c8_46, %c0_47] : memref<72x512xf32, #tpu.memory_space<vmem>>, vector<8x512xf32>
    tpu.vector_store %arg12[%c8_46, %c0_47], %59 {strides = array<i32>} : memref<72x512xf32, #tpu.memory_space<vmem>>, vector<8x512xf32>,
    %c2_48 = arith.constant 2 : index
    %c0_49 = arith.constant 0 : index
    %c0_50 = arith.constant 0 : index
    %61 = vector.load %arg1[%c2_48, %c0_49, %c0_50] : memref<9x8x512xf32, #tpu.memory_space<vmem>>, vector<1x8x512xf32>
    %62 = vector.shape_cast %61 : vector<1x8x512xf32> to vector<8x512xf32>
    %c15_i32_51 = arith.constant 15 : i32
    %63 = tpu.dynamic_rotate %50 by %c15_i32_51 dim 1 : vector<8x512xf32>, i32 -> vector<8x512xf32>
    %64 = arith.mulf %63, %62 : vector<8x512xf32>
    %c16_52 = arith.constant 16 : index
    %c0_53 = arith.constant 0 : index
    %65 = vector.load %arg12[%c16_52, %c0_53] : memref<72x512xf32, #tpu.memory_space<vmem>>, vector<8x512xf32>
    tpu.vector_store %arg12[%c16_52, %c0_53], %64 {strides = array<i32>} : memref<72x512xf32, #tpu.memory_space<vmem>>, vector<8x512xf32>,
    %c3_54 = arith.constant 3 : index
    %c0_55 = arith.constant 0 : index
    %c0_56 = arith.constant 0 : index
    %66 = vector.load %arg1[%c3_54, %c0_55, %c0_56] : memref<9x8x512xf32, #tpu.memory_space<vmem>>, vector<1x8x512xf32>
    %67 = vector.shape_cast %66 : vector<1x8x512xf32> to vector<8x512xf32>
    %c1_i32_57 = arith.constant 1 : i32
    %68 = tpu.dynamic_rotate %50 by %c1_i32_57 dim 1 : vector<8x512xf32>, i32 -> vector<8x512xf32>
    %69 = arith.mulf %68, %67 : vector<8x512xf32>
    %c24_58 = arith.constant 24 : index
    %c0_59 = arith.constant 0 : index
    %70 = vector.load %arg12[%c24_58, %c0_59] : memref<72x512xf32, #tpu.memory_space<vmem>>, vector<8x512xf32>
    tpu.vector_store %arg12[%c24_58, %c0_59], %69 {strides = array<i32>} : memref<72x512xf32, #tpu.memory_space<vmem>>, vector<8x512xf32>,
    %c32_60 = arith.constant 32 : index
    %c0_61 = arith.constant 0 : index
    %71 = vector.load %arg12[%c32_60, %c0_61] : memref<72x512xf32, #tpu.memory_space<vmem>>, vector<8x512xf32>
    tpu.vector_store %arg12[%c32_60, %c0_61], %50 {strides = array<i32>} : memref<72x512xf32, #tpu.memory_space<vmem>>, vector<8x512xf32>,
    %c5_62 = arith.constant 5 : index
    %c0_63 = arith.constant 0 : index
    %c0_64 = arith.constant 0 : index
    %72 = vector.load %arg1[%c5_62, %c0_63, %c0_64] : memref<9x8x512xf32, #tpu.memory_space<vmem>>, vector<1x8x512xf32>
    %73 = vector.shape_cast %72 : vector<1x8x512xf32> to vector<8x512xf32>
    %c511_i32_65 = arith.constant 511 : i32
    %74 = tpu.dynamic_rotate %50 by %c511_i32_65 dim 1 : vector<8x512xf32>, i32 -> vector<8x512xf32>
    %75 = arith.mulf %74, %73 : vector<8x512xf32>
    %c40_66 = arith.constant 40 : index
    %c0_67 = arith.constant 0 : index
    %76 = vector.load %arg12[%c40_66, %c0_67] : memref<72x512xf32, #tpu.memory_space<vmem>>, vector<8x512xf32>
    tpu.vector_store %arg12[%c40_66, %c0_67], %75 {strides = array<i32>} : memref<72x512xf32, #tpu.memory_space<vmem>>, vector<8x512xf32>,
    %c6_68 = arith.constant 6 : index
    %c0_69 = arith.constant 0 : index
    %c0_70 = arith.constant 0 : index
    %77 = vector.load %arg1[%c6_68, %c0_69, %c0_70] : memref<9x8x512xf32, #tpu.memory_space<vmem>>, vector<1x8x512xf32>
    %78 = vector.shape_cast %77 : vector<1x8x512xf32> to vector<8x512xf32>
    %c497_i32_71 = arith.constant 497 : i32
    %79 = tpu.dynamic_rotate %50 by %c497_i32_71 dim 1 : vector<8x512xf32>, i32 -> vector<8x512xf32>
    %80 = arith.mulf %79, %78 : vector<8x512xf32>
    %c48_72 = arith.constant 48 : index
    %c0_73 = arith.constant 0 : index
    %81 = vector.load %arg12[%c48_72, %c0_73] : memref<72x512xf32, #tpu.memory_space<vmem>>, vector<8x512xf32>
    tpu.vector_store %arg12[%c48_72, %c0_73], %80 {strides = array<i32>} : memref<72x512xf32, #tpu.memory_space<vmem>>, vector<8x512xf32>,
    %c7_74 = arith.constant 7 : index
    %c0_75 = arith.constant 0 : index
    %c0_76 = arith.constant 0 : index
    %82 = vector.load %arg1[%c7_74, %c0_75, %c0_76] : memref<9x8x512xf32, #tpu.memory_space<vmem>>, vector<1x8x512xf32>
    %83 = vector.shape_cast %82 : vector<1x8x512xf32> to vector<8x512xf32>
    %c496_i32_77 = arith.constant 496 : i32
    %84 = tpu.dynamic_rotate %50 by %c496_i32_77 dim 1 : vector<8x512xf32>, i32 -> vector<8x512xf32>
    %85 = arith.mulf %84, %83 : vector<8x512xf32>
    %c56_78 = arith.constant 56 : index
    %c0_79 = arith.constant 0 : index
    %86 = vector.load %arg12[%c56_78, %c0_79] : memref<72x512xf32, #tpu.memory_space<vmem>>, vector<8x512xf32>
    tpu.vector_store %arg12[%c56_78, %c0_79], %85 {strides = array<i32>} : memref<72x512xf32, #tpu.memory_space<vmem>>, vector<8x512xf32>,
    %c8_80 = arith.constant 8 : index
    %c0_81 = arith.constant 0 : index
    %c0_82 = arith.constant 0 : index
    %87 = vector.load %arg1[%c8_80, %c0_81, %c0_82] : memref<9x8x512xf32, #tpu.memory_space<vmem>>, vector<1x8x512xf32>
    %88 = vector.shape_cast %87 : vector<1x8x512xf32> to vector<8x512xf32>
    %c495_i32_83 = arith.constant 495 : i32
    %89 = tpu.dynamic_rotate %50 by %c495_i32_83 dim 1 : vector<8x512xf32>, i32 -> vector<8x512xf32>
    %90 = arith.mulf %89, %88 : vector<8x512xf32>
    %c64_84 = arith.constant 64 : index
    %c0_85 = arith.constant 0 : index
    %91 = vector.load %arg12[%c64_84, %c0_85] : memref<72x512xf32, #tpu.memory_space<vmem>>, vector<8x512xf32>
    tpu.vector_store %arg12[%c64_84, %c0_85], %90 {strides = array<i32>} : memref<72x512xf32, #tpu.memory_space<vmem>>, vector<8x512xf32>,
    %c0_86 = arith.constant 0 : index
    %c0_87 = arith.constant 0 : index
    %92 = vector.load %arg12[%c0_86, %c0_87] : memref<72x512xf32, #tpu.memory_space<vmem>>, vector<72x512xf32>
    %c0_88 = arith.constant 0 : index
    %c0_89 = arith.constant 0 : index
    %93 = vector.load %arg5[%c0_88, %c0_89] : memref<8x72xbf16, #tpu.memory_space<vmem>>, vector<8x72xbf16>
    %94 = arith.truncf %92 : vector<72x512xf32> to vector<72x512xbf16>
    %cst_90 = arith.constant dense<0.000000e+00> : vector<8x512xf32>
    %95 = tpu.matmul %93, %94, %cst_90 {dimension_numbers = #tpu.dot_dimension_numbers<[1], [0], [0], [1], [0, 0, 1, 1], [], []>} : vector<8x72xbf16>, vector<72x512xbf16>, vector<8x512xf32> -> vector<8x512xf32>
    %c0_91 = arith.constant 0 : index
    %c0_92 = arith.constant 0 : index
    %96 = vector.load %arg6[%c0_91, %c0_92] : memref<8x1xf32, #tpu.memory_space<vmem>>, vector<8x1xf32>
    %97 = vector.broadcast %96 : vector<8x1xf32> to vector<8x512xf32>
    %98 = arith.addf %95, %97 : vector<8x512xf32>
    %cst_93 = arith.constant 0.000000e+00 : f32
    %99 = vector.broadcast %cst_93 : f32 to vector<8x512xf32>
    %100 = arith.maximumf %98, %99 : vector<8x512xf32>
    %c0_94 = arith.constant 0 : index
    %c0_95 = arith.constant 0 : index
    %101 = vector.load %arg7[%c0_94, %c0_95] : memref<8x8xbf16, #tpu.memory_space<vmem>>, vector<8x8xbf16>
    %102 = arith.truncf %100 : vector<8x512xf32> to vector<8x512xbf16>
    %cst_96 = arith.constant dense<0.000000e+00> : vector<8x512xf32>
    %103 = tpu.matmul %101, %102, %cst_96 {dimension_numbers = #tpu.dot_dimension_numbers<[1], [0], [0], [1], [0, 0, 1, 1], [], []>} : vector<8x8xbf16>, vector<8x512xbf16>, vector<8x512xf32> -> vector<8x512xf32>
    %c0_97 = arith.constant 0 : index
    %c0_98 = arith.constant 0 : index
    %104 = vector.load %arg8[%c0_97, %c0_98] : memref<8x1xf32, #tpu.memory_space<vmem>>, vector<8x1xf32>
    %105 = vector.broadcast %104 : vector<8x1xf32> to vector<8x512xf32>
    %106 = arith.addf %103, %105 : vector<8x512xf32>
    %cst_99 = arith.constant 0.000000e+00 : f32
    %107 = vector.broadcast %cst_99 : f32 to vector<8x512xf32>
    %108 = arith.maximumf %106, %107 : vector<8x512xf32>
    %c0_100 = arith.constant 0 : index
    %c0_101 = arith.constant 0 : index
    %109 = vector.load %arg13[%c0_100, %c0_101] : memref<8x512xf32, #tpu.memory_space<vmem>>, vector<8x512xf32>
    tpu.vector_store %arg13[%c0_100, %c0_101], %108 {strides = array<i32>} : memref<8x512xf32, #tpu.memory_space<vmem>>, vector<8x512xf32>,
    %c0_102 = arith.constant 0 : index
    %c0_103 = arith.constant 0 : index
    %110 = vector.load %arg13[%c0_102, %c0_103] : memref<8x512xf32, #tpu.memory_space<vmem>>, vector<1x256xf32>
    %c0_104 = arith.constant 0 : index
    %c0_105 = arith.constant 0 : index
    %111 = vector.load %arg14[%c0_104, %c0_105] : memref<2x2048xf32, #tpu.memory_space<vmem>>, vector<1x256xf32>
    tpu.vector_store %arg14[%c0_104, %c0_105], %110 {strides = array<i32>} : memref<2x2048xf32, #tpu.memory_space<vmem>>, vector<1x256xf32>,
    %c1_106 = arith.constant 1 : index
    %c0_107 = arith.constant 0 : index
    %112 = vector.load %arg13[%c1_106, %c0_107] : memref<8x512xf32, #tpu.memory_space<vmem>>, vector<1x256xf32>
    %c0_108 = arith.constant 0 : index
    %c256 = arith.constant 256 : index
    %113 = vector.load %arg14[%c0_108, %c256] : memref<2x2048xf32, #tpu.memory_space<vmem>>, vector<1x256xf32>
    tpu.vector_store %arg14[%c0_108, %c256], %112 {strides = array<i32>} : memref<2x2048xf32, #tpu.memory_space<vmem>>, vector<1x256xf32>,
    %c2_109 = arith.constant 2 : index
    %c0_110 = arith.constant 0 : index
    %114 = vector.load %arg13[%c2_109, %c0_110] : memref<8x512xf32, #tpu.memory_space<vmem>>, vector<1x256xf32>
    %c0_111 = arith.constant 0 : index
    %c512 = arith.constant 512 : index
    %115 = vector.load %arg14[%c0_111, %c512] : memref<2x2048xf32, #tpu.memory_space<vmem>>, vector<1x256xf32>
    tpu.vector_store %arg14[%c0_111, %c512], %114 {strides = array<i32>} : memref<2x2048xf32, #tpu.memory_space<vmem>>, vector<1x256xf32>,
    %c3_112 = arith.constant 3 : index
    %c0_113 = arith.constant 0 : index
    %116 = vector.load %arg13[%c3_112, %c0_113] : memref<8x512xf32, #tpu.memory_space<vmem>>, vector<1x256xf32>
    %c0_114 = arith.constant 0 : index
    %c768 = arith.constant 768 : index
    %117 = vector.load %arg14[%c0_114, %c768] : memref<2x2048xf32, #tpu.memory_space<vmem>>, vector<1x256xf32>
    tpu.vector_store %arg14[%c0_114, %c768], %116 {strides = array<i32>} : memref<2x2048xf32, #tpu.memory_space<vmem>>, vector<1x256xf32>,
    %c4 = arith.constant 4 : index
    %c0_115 = arith.constant 0 : index
    %118 = vector.load %arg13[%c4, %c0_115] : memref<8x512xf32, #tpu.memory_space<vmem>>, vector<1x256xf32>
    %c0_116 = arith.constant 0 : index
    %c1024 = arith.constant 1024 : index
    %119 = vector.load %arg14[%c0_116, %c1024] : memref<2x2048xf32, #tpu.memory_space<vmem>>, vector<1x256xf32>
    tpu.vector_store %arg14[%c0_116, %c1024], %118 {strides = array<i32>} : memref<2x2048xf32, #tpu.memory_space<vmem>>, vector<1x256xf32>,
    %c5_117 = arith.constant 5 : index
    %c0_118 = arith.constant 0 : index
    %120 = vector.load %arg13[%c5_117, %c0_118] : memref<8x512xf32, #tpu.memory_space<vmem>>, vector<1x256xf32>
    %c0_119 = arith.constant 0 : index
    %c1280 = arith.constant 1280 : index
    %121 = vector.load %arg14[%c0_119, %c1280] : memref<2x2048xf32, #tpu.memory_space<vmem>>, vector<1x256xf32>
    tpu.vector_store %arg14[%c0_119, %c1280], %120 {strides = array<i32>} : memref<2x2048xf32, #tpu.memory_space<vmem>>, vector<1x256xf32>,
    %c6_120 = arith.constant 6 : index
    %c0_121 = arith.constant 0 : index
    %122 = vector.load %arg13[%c6_120, %c0_121] : memref<8x512xf32, #tpu.memory_space<vmem>>, vector<1x256xf32>
    %c0_122 = arith.constant 0 : index
    %c1536 = arith.constant 1536 : index
    %123 = vector.load %arg14[%c0_122, %c1536] : memref<2x2048xf32, #tpu.memory_space<vmem>>, vector<1x256xf32>
    tpu.vector_store %arg14[%c0_122, %c1536], %122 {strides = array<i32>} : memref<2x2048xf32, #tpu.memory_space<vmem>>, vector<1x256xf32>,
    %c7_123 = arith.constant 7 : index
    %c0_124 = arith.constant 0 : index
    %124 = vector.load %arg13[%c7_123, %c0_124] : memref<8x512xf32, #tpu.memory_space<vmem>>, vector<1x256xf32>
    %c0_125 = arith.constant 0 : index
    %c1792 = arith.constant 1792 : index
    %125 = vector.load %arg14[%c0_125, %c1792] : memref<2x2048xf32, #tpu.memory_space<vmem>>, vector<1x256xf32>
    tpu.vector_store %arg14[%c0_125, %c1792], %124 {strides = array<i32>} : memref<2x2048xf32, #tpu.memory_space<vmem>>, vector<1x256xf32>,
    %c0_126 = arith.constant 0 : index
    %c256_127 = arith.constant 256 : index
    %126 = vector.load %arg13[%c0_126, %c256_127] : memref<8x512xf32, #tpu.memory_space<vmem>>, vector<1x256xf32>
    %c1_128 = arith.constant 1 : index
    %c0_129 = arith.constant 0 : index
    %127 = vector.load %arg14[%c1_128, %c0_129] : memref<2x2048xf32, #tpu.memory_space<vmem>>, vector<1x256xf32>
    tpu.vector_store %arg14[%c1_128, %c0_129], %126 {strides = array<i32>} : memref<2x2048xf32, #tpu.memory_space<vmem>>, vector<1x256xf32>,
    %c1_130 = arith.constant 1 : index
    %c256_131 = arith.constant 256 : index
    %128 = vector.load %arg13[%c1_130, %c256_131] : memref<8x512xf32, #tpu.memory_space<vmem>>, vector<1x256xf32>
    %c1_132 = arith.constant 1 : index
    %c256_133 = arith.constant 256 : index
    %129 = vector.load %arg14[%c1_132, %c256_133] : memref<2x2048xf32, #tpu.memory_space<vmem>>, vector<1x256xf32>
    tpu.vector_store %arg14[%c1_132, %c256_133], %128 {strides = array<i32>} : memref<2x2048xf32, #tpu.memory_space<vmem>>, vector<1x256xf32>,
    %c2_134 = arith.constant 2 : index
    %c256_135 = arith.constant 256 : index
    %130 = vector.load %arg13[%c2_134, %c256_135] : memref<8x512xf32, #tpu.memory_space<vmem>>, vector<1x256xf32>
    %c1_136 = arith.constant 1 : index
    %c512_137 = arith.constant 512 : index
    %131 = vector.load %arg14[%c1_136, %c512_137] : memref<2x2048xf32, #tpu.memory_space<vmem>>, vector<1x256xf32>
    tpu.vector_store %arg14[%c1_136, %c512_137], %130 {strides = array<i32>} : memref<2x2048xf32, #tpu.memory_space<vmem>>, vector<1x256xf32>,
    %c3_138 = arith.constant 3 : index
    %c256_139 = arith.constant 256 : index
    %132 = vector.load %arg13[%c3_138, %c256_139] : memref<8x512xf32, #tpu.memory_space<vmem>>, vector<1x256xf32>
    %c1_140 = arith.constant 1 : index
    %c768_141 = arith.constant 768 : index
    %133 = vector.load %arg14[%c1_140, %c768_141] : memref<2x2048xf32, #tpu.memory_space<vmem>>, vector<1x256xf32>
    tpu.vector_store %arg14[%c1_140, %c768_141], %132 {strides = array<i32>} : memref<2x2048xf32, #tpu.memory_space<vmem>>, vector<1x256xf32>,
    %c4_142 = arith.constant 4 : index
    %c256_143 = arith.constant 256 : index
    %134 = vector.load %arg13[%c4_142, %c256_143] : memref<8x512xf32, #tpu.memory_space<vmem>>, vector<1x256xf32>
    %c1_144 = arith.constant 1 : index
    %c1024_145 = arith.constant 1024 : index
    %135 = vector.load %arg14[%c1_144, %c1024_145] : memref<2x2048xf32, #tpu.memory_space<vmem>>, vector<1x256xf32>
    tpu.vector_store %arg14[%c1_144, %c1024_145], %134 {strides = array<i32>} : memref<2x2048xf32, #tpu.memory_space<vmem>>, vector<1x256xf32>,
    %c5_146 = arith.constant 5 : index
    %c256_147 = arith.constant 256 : index
    %136 = vector.load %arg13[%c5_146, %c256_147] : memref<8x512xf32, #tpu.memory_space<vmem>>, vector<1x256xf32>
    %c1_148 = arith.constant 1 : index
    %c1280_149 = arith.constant 1280 : index
    %137 = vector.load %arg14[%c1_148, %c1280_149] : memref<2x2048xf32, #tpu.memory_space<vmem>>, vector<1x256xf32>
    tpu.vector_store %arg14[%c1_148, %c1280_149], %136 {strides = array<i32>} : memref<2x2048xf32, #tpu.memory_space<vmem>>, vector<1x256xf32>,
    %c6_150 = arith.constant 6 : index
    %c256_151 = arith.constant 256 : index
    %138 = vector.load %arg13[%c6_150, %c256_151] : memref<8x512xf32, #tpu.memory_space<vmem>>, vector<1x256xf32>
    %c1_152 = arith.constant 1 : index
    %c1536_153 = arith.constant 1536 : index
    %139 = vector.load %arg14[%c1_152, %c1536_153] : memref<2x2048xf32, #tpu.memory_space<vmem>>, vector<1x256xf32>
    tpu.vector_store %arg14[%c1_152, %c1536_153], %138 {strides = array<i32>} : memref<2x2048xf32, #tpu.memory_space<vmem>>, vector<1x256xf32>,
    %c7_154 = arith.constant 7 : index
    %c256_155 = arith.constant 256 : index
    %140 = vector.load %arg13[%c7_154, %c256_155] : memref<8x512xf32, #tpu.memory_space<vmem>>, vector<1x256xf32>
    %c1_156 = arith.constant 1 : index
    %c1792_157 = arith.constant 1792 : index
    %141 = vector.load %arg14[%c1_156, %c1792_157] : memref<2x2048xf32, #tpu.memory_space<vmem>>, vector<1x256xf32>
    tpu.vector_store %arg14[%c1_156, %c1792_157], %140 {strides = array<i32>} : memref<2x2048xf32, #tpu.memory_space<vmem>>, vector<1x256xf32>,
    tpu.wait_dma2 semaphore(%arg16 : memref<!tpu.dma_semaphore, #tpu.memory_space<semaphore_mem>>) src(%arg9 : memref<2048x10xf32, #tpu.memory_space<any>>) dst(%arg15 : memref<2048x10xf32, #tpu.memory_space<vmem>>)
    %c0_158 = arith.constant 0 : index
    %c0_159 = arith.constant 0 : index
    %142 = vector.load %arg14[%c0_158, %c0_159] : memref<2x2048xf32, #tpu.memory_space<vmem>>, vector<2x2048xf32>
    %c0_160 = arith.constant 0 : index
    %c0_161 = arith.constant 0 : index
    %143 = vector.load %arg15[%c0_160, %c0_161] : memref<2048x10xf32, #tpu.memory_space<vmem>>, vector<2048x10xf32>
    %cst_162 = arith.constant dense<0.000000e+00> : vector<2x10xf32>
    %144 = tpu.matmul %142, %143, %cst_162 {dimension_numbers = #tpu.dot_dimension_numbers<[1], [0], [0], [1], [0, 0, 1, 1], [], []>} : vector<2x2048xf32>, vector<2048x10xf32>, vector<2x10xf32> -> vector<2x10xf32>
    %c0_163 = arith.constant 0 : index
    %c0_164 = arith.constant 0 : index
    %145 = vector.load %arg10[%c0_163, %c0_164] : memref<1x10xf32, #tpu.memory_space<vmem>>, vector<1x10xf32>
    %146 = vector.broadcast %145 : vector<1x10xf32> to vector<2x10xf32>
    %147 = arith.addf %144, %146 : vector<2x10xf32>
    %c0_165 = arith.constant 0 : index
    %c0_166 = arith.constant 0 : index
    %148 = vector.load %arg11[%c0_165, %c0_166] : memref<2x10xf32, #tpu.memory_space<vmem>>, vector<2x10xf32>
    tpu.vector_store %arg11[%c0_165, %c0_166], %147 {strides = array<i32>} : memref<2x10xf32, #tpu.memory_space<vmem>>, vector<2x10xf32>,
    return
  }
  func.func @transform_0(%arg0: i32) -> (i32, i32, i32) {
    %c0_i32 = arith.constant 0 : i32
    %c0_i32_0 = arith.constant 0 : i32
    %c0_i32_1 = arith.constant 0 : i32
    %c0_i32_2 = arith.constant 0 : i32
    return %c0_i32, %c0_i32_0, %c0_i32_1 : i32, i32, i32
  }
  func.func @transform_1(%arg0: i32) -> (i32, i32) {
    %c0_i32 = arith.constant 0 : i32
    %c0_i32_0 = arith.constant 0 : i32
    %c0_i32_1 = arith.constant 0 : i32
    return %c0_i32, %c0_i32_0 : i32, i32
  }
  func.func @transform_2(%arg0: i32) -> (i32, i32) {
    %c0_i32 = arith.constant 0 : i32
    %c0_i32_0 = arith.constant 0 : i32
    %c0_i32_1 = arith.constant 0 : i32
    return %c0_i32, %c0_i32_0 : i32, i32
  }
  func.func @transform_3(%arg0: i32) -> (i32, i32) {
    %c0_i32 = arith.constant 0 : i32
    %c0_i32_0 = arith.constant 0 : i32
    %c0_i32_1 = arith.constant 0 : i32
    return %c0_i32, %c0_i32_0 : i32, i32
  }
  func.func @transform_4(%arg0: i32) -> (i32, i32) {
    %c0_i32 = arith.constant 0 : i32
    %c0_i32_0 = arith.constant 0 : i32
    %c0_i32_1 = arith.constant 0 : i32
    return %c0_i32, %c0_i32_0 : i32, i32
  }
  func.func @transform_5(%arg0: i32) -> (i32, i32) {
    %c0_i32 = arith.constant 0 : i32
    %c0_i32_0 = arith.constant 0 : i32
    %c0_i32_1 = arith.constant 0 : i32
    return %c0_i32, %c0_i32_0 : i32, i32
  }
  func.func @transform_6(%arg0: i32) -> (i32, i32) {
    %c0_i32 = arith.constant 0 : i32
    %c0_i32_0 = arith.constant 0 : i32
    %c0_i32_1 = arith.constant 0 : i32
    return %c0_i32, %c0_i32_0 : i32, i32
  }
  func.func @transform_7(%arg0: i32) -> (i32, i32) {
    %c0_i32 = arith.constant 0 : i32
    %c0_i32_0 = arith.constant 0 : i32
    %c0_i32_1 = arith.constant 0 : i32
    return %c0_i32, %c0_i32_0 : i32, i32
  }
  func.func @transform_9(%arg0: i32) -> (i32, i32) {
    %c0_i32 = arith.constant 0 : i32
    %c0_i32_0 = arith.constant 0 : i32
    %c0_i32_1 = arith.constant 0 : i32
    return %c0_i32, %c0_i32_0 : i32, i32
  }
  func.func @transform_10(%arg0: i32) -> (i32, i32) {
    %c0_i32 = arith.constant 0 : i32
    %c0_i32_0 = arith.constant 0 : i32
    %c0_i32_1 = arith.constant 0 : i32
    return %c0_i32, %c0_i32_0 : i32, i32
  }
}

</mosaic_0001>

<bundles_post_ra>
// kernel: forward.1
= control target key start
LH: loop header
LB: loop body
LE: loop exit
PB: predicated region body
PF: predicated region fallthrough
CT: control target
= control target key end

     0   :  { %15 = vsyncpa [#allocation8], 0  ;;  %s2853_s29 = smov 111   ;;  %s5078_s0 = inlined_call_operand.vmem [shape: f32[9,8,512], index: 0, kind: input, shape index: {}]   ;;  %s5079_s1 = inlined_call_operand.vmem [shape: f32[8,512], index: 1, kind: input, shape index: {}]   ;;  %s5080_s2 = inlined_call_operand.vmem [shape: bf16[8,72], index: 2, kind: input, shape index: {}]   ;;  %s5081_s3 = inlined_call_operand.vmem [shape: f32[8,1], index: 3, kind: input, shape index: {}]   ;;  %s5082_s4 = inlined_call_operand.vmem [shape: bf16[8,72], index: 4, kind: input, shape index: {}]   ;;  %s5083_s5 = inlined_call_operand.vmem [shape: f32[8,1], index: 5, kind: input, shape index: {}]   ;;  %s5084_s6 = inlined_call_operand.vmem [shape: bf16[8,8], index: 6, kind: input, shape index: {}]   ;;  %s5085_s7 = inlined_call_operand.vmem [shape: f32[8,1], index: 7, kind: input, shape index: {}]   ;;  %s5086_s8 = inlined_call_operand.vmem [shape: f32[2048,10], index: 8, kind: input, shape index: {}]   ;;  %s5087_s9 = inlined_call_operand.vmem [shape: f32[1,10], index: 9, kind: input, shape index: {}]   ;;  %s5088_s10 = inlined_call_operand.hbm [shape: f32[2,10], index: 10, kind: output, shape index: {}]  }
   0x1   :  { %v2922_v0 = vld [vmem:[%s5086_s8] sm:$0xff]  ;;  %v2927_v1 = vld [vmem:[%s5086_s8 + $0x8] sm:$0xff]  ;;  %v2932_v2 = vld [vmem:[%s5086_s8 + $0x10] sm:$0xff] }
   0x2   :  { %5093 = vst [vmem:[#allocation12_spill] sm:$0xff] %v2922_v0  ;;  %5094 = vst [vmem:[#allocation13_spill] sm:$0xff] %v2927_v1  ;;  %v2937_v3 = vld [vmem:[%s5086_s8 + $0x18] sm:$0xff]  ;;  %v2942_v4 = vld [vmem:[%s5086_s8 + $0x20] sm:$0xff] }
   0x3   :  { %5095 = vst [vmem:[#allocation14_spill] sm:$0xff] %v2932_v2  ;;  %5096 = vst [vmem:[#allocation15_spill] sm:$0xff] %v2937_v3  ;;  %v2947_v5 = vld [vmem:[%s5086_s8 + $0x28] sm:$0xff]  ;;  %v2952_v6 = vld [vmem:[%s5086_s8 + $0x30] sm:$0xff] }
   0x4   :  { %5097 = vst [vmem:[#allocation16_spill] sm:$0xff] %v2942_v4  ;;  %5098 = vst [vmem:[#allocation17_spill] sm:$0xff] %v2947_v5  ;;  %v2957_v7 = vld [vmem:[%s5086_s8 + $0x38] sm:$0xff]  ;;  %v2962_v8 = vld [vmem:[%s5086_s8 + $0x40] sm:$0xff] }
   0x5   :  { %5099 = vst [vmem:[#allocation18_spill] sm:$0xff] %v2952_v6  ;;  %5100 = vst [vmem:[#allocation19_spill] sm:$0xff] %v2957_v7  ;;  %v2967_v9 = vld [vmem:[%s5086_s8 + $0x48] sm:$0xff]  ;;  %v2972_v10 = vld [vmem:[%s5086_s8 + $0x50] sm:$0xff] }
   0x6   :  { %5101 = vst [vmem:[#allocation20_spill] sm:$0xff] %v2962_v8  ;;  %5102 = vst [vmem:[#allocation21_spill] sm:$0xff] %v2967_v9  ;;  %v2977_v11 = vld [vmem:[%s5086_s8 + $0x58] sm:$0xff]  ;;  %v2982_v12 = vld [vmem:[%s5086_s8 + $0x60] sm:$0xff] }
   0x7   :  { %5103 = vst [vmem:[#allocation22_spill] sm:$0xff] %v2972_v10  ;;  %5104 = vst [vmem:[#allocation23_spill] sm:$0xff] %v2977_v11  ;;  %v2987_v13 = vld [vmem:[%s5086_s8 + $0x68] sm:$0xff]  ;;  %v2992_v14 = vld [vmem:[%s5086_s8 + $0x70] sm:$0xff] }
   0x8   :  { %5105 = vst [vmem:[#allocation24_spill] sm:$0xff] %v2982_v12  ;;  %5106 = vst [vmem:[#allocation25_spill] sm:$0xff] %v2987_v13  ;;  %v2997_v15 = vld [vmem:[%s5086_s8 + $0x78] sm:$0xff]  ;;  %v3002_v16 = vld [vmem:[%s5086_s8 + $0x80] sm:$0xff] }
   0x9   :  { %5107 = vst [vmem:[#allocation26_spill] sm:$0xff] %v3002_v16  ;;  %v3007_v17 = vld [vmem:[%s5086_s8 + $0x88] sm:$0xff]  ;;  %v3012_v18 = vld [vmem:[%s5086_s8 + $0x90] sm:$0xff]  ;;  %v3017_v19 = vld [vmem:[%s5086_s8 + $0x98] sm:$0xff] }
   0xa   :  { %5108 = vst [vmem:[#allocation27_spill] sm:$0xff] %v3007_v17  ;;  %5109 = vst [vmem:[#allocation28_spill] sm:$0xff] %v3012_v18  ;;  %v3022_v20 = vld [vmem:[%s5086_s8 + $0xa0] sm:$0xff]  ;;  %v3027_v21 = vld [vmem:[%s5086_s8 + $0xa8] sm:$0xff] }
   0xb   :  { %5110 = vst [vmem:[#allocation29_spill] sm:$0xff] %v3017_v19  ;;  %5111 = vst [vmem:[#allocation30_spill] sm:$0xff] %v3022_v20  ;;  %v3032_v22 = vld [vmem:[%s5086_s8 + $0xb0] sm:$0xff]  ;;  %v3037_v23 = vld [vmem:[%s5086_s8 + $0xb8] sm:$0xff] }
   0xc   :  { %5112 = vst [vmem:[#allocation31_spill] sm:$0xff] %v3027_v21  ;;  %5113 = vst [vmem:[#allocation32_spill] sm:$0xff] %v3032_v22  ;;  %v3042_v24 = vld [vmem:[%s5086_s8 + $0xc0] sm:$0xff]  ;;  %v3047_v25 = vld [vmem:[%s5086_s8 + $0xc8] sm:$0xff] }
   0xd   :  { %5114 = vst [vmem:[#allocation33_spill] sm:$0xff] %v3037_v23  ;;  %5115 = vst [vmem:[#allocation34_spill] sm:$0xff] %v3042_v24  ;;  %v3052_v26 = vld [vmem:[%s5086_s8 + $0xd0] sm:$0xff]  ;;  %v3057_v27 = vld [vmem:[%s5086_s8 + $0xd8] sm:$0xff] }
   0xe   :  { %5116 = vst [vmem:[#allocation35_spill] sm:$0xff] %v3047_v25  ;;  %5117 = vst [vmem:[#allocation36_spill] sm:$0xff] %v3052_v26  ;;  %v3062_v28 = vld [vmem:[%s5086_s8 + $0xe0] sm:$0xff]  ;;  %v3067_v29 = vld [vmem:[%s5086_s8 + $0xe8] sm:$0xff] }
   0xf   :  { %5118 = vst [vmem:[#allocation37_spill] sm:$0xff] %v3057_v27  ;;  %5119 = vst [vmem:[#allocation38_spill] sm:$0xff] %v3062_v28  ;;  %v3072_v30 = vld [vmem:[%s5086_s8 + $0xf0] sm:$0xff]  ;;  %v3077_v31 = vld [vmem:[%s5086_s8 + $0xf8] sm:$0xff] }
  0x10   :  { %v3082_v32 = vld [vmem:[%s5086_s8 + $0x100] sm:$0xff]  ;;  %v3087_v33 = vld [vmem:[%s5086_s8 + $0x108] sm:$0xff]  ;;  %v3092_v34 = vld [vmem:[%s5086_s8 + $0x110] sm:$0xff] }
  0x11   :  { %5120 = vst [vmem:[#allocation39_spill] sm:$0xff] %v3082_v32  ;;  %5121 = vst [vmem:[#allocation40_spill] sm:$0xff] %v3087_v33  ;;  %v3097_v35 = vld [vmem:[%s5086_s8 + $0x118] sm:$0xff]  ;;  %v3102_v36 = vld [vmem:[%s5086_s8 + $0x120] sm:$0xff] }
  0x12   :  { %5122 = vst [vmem:[#allocation41_spill] sm:$0xff] %v3092_v34  ;;  %5123 = vst [vmem:[#allocation42_spill] sm:$0xff] %v3097_v35  ;;  %v3107_v37 = vld [vmem:[%s5086_s8 + $0x128] sm:$0xff]  ;;  %v3112_v38 = vld [vmem:[%s5086_s8 + $0x130] sm:$0xff] }
  0x13   :  { %5124 = vst [vmem:[#allocation43_spill] sm:$0xff] %v3102_v36  ;;  %5125 = vst [vmem:[#allocation44_spill] sm:$0xff] %v3107_v37  ;;  %v3117_v39 = vld [vmem:[%s5086_s8 + $0x138] sm:$0xff]  ;;  %v3122_v40 = vld [vmem:[%s5086_s8 + $0x140] sm:$0xff] }
  0x14   :  { %5126 = vst [vmem:[#allocation45_spill] sm:$0xff] %v3112_v38  ;;  %5127 = vst [vmem:[#allocation46_spill] sm:$0xff] %v3117_v39  ;;  %v3127_v41 = vld [vmem:[%s5086_s8 + $0x148] sm:$0xff]  ;;  %v3132_v42 = vld [vmem:[%s5086_s8 + $0x150] sm:$0xff] }
  0x15   :  { %5128 = vst [vmem:[#allocation47_spill] sm:$0xff] %v3122_v40  ;;  %5129 = vst [vmem:[#allocation48_spill] sm:$0xff] %v3127_v41  ;;  %v3137_v43 = vld [vmem:[%s5086_s8 + $0x158] sm:$0xff]  ;;  %v3142_v44 = vld [vmem:[%s5086_s8 + $0x160] sm:$0xff] }
  0x16   :  { %5130 = vst [vmem:[#allocation49_spill] sm:$0xff] %v3132_v42  ;;  %5131 = vst [vmem:[#allocation50_spill] sm:$0xff] %v3137_v43  ;;  %v3147_v45 = vld [vmem:[%s5086_s8 + $0x168] sm:$0xff]  ;;  %v3152_v46 = vld [vmem:[%s5086_s8 + $0x170] sm:$0xff] }
  0x17   :  { %5132 = vst [vmem:[#allocation51_spill] sm:$0xff] %v3142_v44  ;;  %5133 = vst [vmem:[#allocation52_spill] sm:$0xff] %v3147_v45  ;;  %v3157_v47 = vld [vmem:[%s5086_s8 + $0x178] sm:$0xff]  ;;  %v3162_v48 = vld [vmem:[%s5086_s8 + $0x180] sm:$0xff] }
  0x18   :  { %5134 = vst [vmem:[#allocation53_spill] sm:$0xff] %v3162_v48  ;;  %v3167_v49 = vld [vmem:[%s5086_s8 + $0x188] sm:$0xff]  ;;  %v3172_v50 = vld [vmem:[%s5086_s8 + $0x190] sm:$0xff]  ;;  %v3177_v51 = vld [vmem:[%s5086_s8 + $0x198] sm:$0xff] }
  0x19   :  { %5135 = vst [vmem:[#allocation54_spill] sm:$0xff] %v3167_v49  ;;  %5136 = vst [vmem:[#allocation55_spill] sm:$0xff] %v3172_v50  ;;  %v3182_v52 = vld [vmem:[%s5086_s8 + $0x1a0] sm:$0xff]  ;;  %v3187_v53 = vld [vmem:[%s5086_s8 + $0x1a8] sm:$0xff] }
  0x1a   :  { %5137 = vst [vmem:[#allocation56_spill] sm:$0xff] %v3177_v51  ;;  %5138 = vst [vmem:[#allocation57_spill] sm:$0xff] %v3182_v52  ;;  %v3192_v54 = vld [vmem:[%s5086_s8 + $0x1b0] sm:$0xff]  ;;  %v3197_v55 = vld [vmem:[%s5086_s8 + $0x1b8] sm:$0xff] }
  0x1b   :  { %5139 = vst [vmem:[#allocation58_spill] sm:$0xff] %v3187_v53  ;;  %5140 = vst [vmem:[#allocation59_spill] sm:$0xff] %v3192_v54  ;;  %v3202_v56 = vld [vmem:[%s5086_s8 + $0x1c0] sm:$0xff]  ;;  %v3207_v57 = vld [vmem:[%s5086_s8 + $0x1c8] sm:$0xff] }
  0x1c   :  { %5141 = vst [vmem:[#allocation60_spill] sm:$0xff] %v3197_v55  ;;  %5142 = vst [vmem:[#allocation61_spill] sm:$0xff] %v3202_v56  ;;  %v3212_v58 = vld [vmem:[%s5086_s8 + $0x1d0] sm:$0xff]  ;;  %v3217_v59 = vld [vmem:[%s5086_s8 + $0x1d8] sm:$0xff] }
  0x1d   :  { %5143 = vst [vmem:[#allocation62_spill] sm:$0xff] %v3207_v57  ;;  %5144 = vst [vmem:[#allocation63_spill] sm:$0xff] %v3212_v58  ;;  %v3222_v60 = vld [vmem:[%s5086_s8 + $0x1e0] sm:$0xff]  ;;  %v3227_v61 = vld [vmem:[%s5086_s8 + $0x1e8] sm:$0xff] }
  0x1e   :  { %5145 = vst [vmem:[#allocation64_spill] sm:$0xff] %v3217_v59  ;;  %5146 = vst [vmem:[#allocation65_spill] sm:$0xff] %v3222_v60  ;;  %v3232_v62 = vld [vmem:[%s5086_s8 + $0x1f0] sm:$0xff]  ;;  %v3237_v63 = vld [vmem:[%s5086_s8 + $0x1f8] sm:$0xff] }
  0x1f   :  { %v3242_v32 = vld [vmem:[%s5086_s8 + $0x200] sm:$0xff]  ;;  %v3247_v0 = vld [vmem:[%s5086_s8 + $0x208] sm:$0xff]  ;;  %v3252_v48 = vld [vmem:[%s5086_s8 + $0x210] sm:$0xff] }
  0x20   :  { %5147 = vst [vmem:[#allocation66_spill] sm:$0xff] %v3242_v32  ;;  %5148 = vst [vmem:[#allocation67_spill] sm:$0xff] %v3247_v0  ;;  %v3257_v16 = vld [vmem:[%s5086_s8 + $0x218] sm:$0xff]  ;;  %v3262_v33 = vld [vmem:[%s5086_s8 + $0x220] sm:$0xff] }
  0x21   :  { %5149 = vst [vmem:[#allocation68_spill] sm:$0xff] %v3252_v48  ;;  %5150 = vst [vmem:[#allocation69_spill] sm:$0xff] %v3257_v16  ;;  %v3267_v32 = vld [vmem:[%s5086_s8 + $0x228] sm:$0xff]  ;;  %v3272_v0 = vld [vmem:[%s5086_s8 + $0x230] sm:$0xff] }
  0x22   :  { %5151 = vst [vmem:[#allocation70_spill] sm:$0xff] %v3262_v33  ;;  %5152 = vst [vmem:[#allocation71_spill] sm:$0xff] %v3267_v32  ;;  %v3277_v48 = vld [vmem:[%s5086_s8 + $0x238] sm:$0xff]  ;;  %v3282_v16 = vld [vmem:[%s5086_s8 + $0x240] sm:$0xff] }
  0x23   :  { %5153 = vst [vmem:[#allocation72_spill] sm:$0xff] %v3272_v0  ;;  %5154 = vst [vmem:[#allocation73_spill] sm:$0xff] %v3277_v48  ;;  %v3287_v33 = vld [vmem:[%s5086_s8 + $0x248] sm:$0xff]  ;;  %v3292_v32 = vld [vmem:[%s5086_s8 + $0x250] sm:$0xff] }
  0x24   :  { %5155 = vst [vmem:[#allocation74_spill] sm:$0xff] %v3282_v16  ;;  %5156 = vst [vmem:[#allocation75_spill] sm:$0xff] %v3287_v33  ;;  %v3297_v0 = vld [vmem:[%s5086_s8 + $0x258] sm:$0xff]  ;;  %v3302_v48 = vld [vmem:[%s5086_s8 + $0x260] sm:$0xff] }
  0x25   :  { %5157 = vst [vmem:[#allocation76_spill] sm:$0xff] %v3292_v32  ;;  %5158 = vst [vmem:[#allocation77_spill] sm:$0xff] %v3297_v0  ;;  %v3307_v16 = vld [vmem:[%s5086_s8 + $0x268] sm:$0xff]  ;;  %v3312_v33 = vld [vmem:[%s5086_s8 + $0x270] sm:$0xff] }
  0x26   :  { %5159 = vst [vmem:[#allocation78_spill] sm:$0xff] %v3302_v48  ;;  %5160 = vst [vmem:[#allocation79_spill] sm:$0xff] %v3307_v16  ;;  %v3317_v32 = vld [vmem:[%s5086_s8 + $0x278] sm:$0xff]  ;;  %v3322_v0 = vld [vmem:[%s5086_s8 + $0x280] sm:$0xff] }
  0x27   :  { %5161 = vst [vmem:[#allocation80_spill] sm:$0xff] %v3312_v33  ;;  %5162 = vst [vmem:[#allocation81_spill] sm:$0xff] %v3317_v32  ;;  %v3327_v48 = vld [vmem:[%s5086_s8 + $0x288] sm:$0xff]  ;;  %v3332_v16 = vld [vmem:[%s5086_s8 + $0x290] sm:$0xff] }
  0x28   :  { %5163 = vst [vmem:[#allocation82_spill] sm:$0xff] %v3322_v0  ;;  %5164 = vst [vmem:[#allocation83_spill] sm:$0xff] %v3327_v48  ;;  %v3337_v33 = vld [vmem:[%s5086_s8 + $0x298] sm:$0xff]  ;;  %v3342_v32 = vld [vmem:[%s5086_s8 + $0x2a0] sm:$0xff] }
  0x29   :  { %5165 = vst [vmem:[#allocation84_spill] sm:$0xff] %v3332_v16  ;;  %5166 = vst [vmem:[#allocation85_spill] sm:$0xff] %v3337_v33  ;;  %v3347_v0 = vld [vmem:[%s5086_s8 + $0x2a8] sm:$0xff]  ;;  %v3352_v48 = vld [vmem:[%s5086_s8 + $0x2b0] sm:$0xff] }
  0x2a   :  { %5167 = vst [vmem:[#allocation86_spill] sm:$0xff] %v3342_v32  ;;  %5168 = vst [vmem:[#allocation87_spill] sm:$0xff] %v3347_v0  ;;  %v3357_v16 = vld [vmem:[%s5086_s8 + $0x2b8] sm:$0xff]  ;;  %v3362_v33 = vld [vmem:[%s5086_s8 + $0x2c0] sm:$0xff] }
  0x2b   :  { %5169 = vst [vmem:[#allocation88_spill] sm:$0xff] %v3352_v48  ;;  %5170 = vst [vmem:[#allocation89_spill] sm:$0xff] %v3357_v16  ;;  %v3367_v32 = vld [vmem:[%s5086_s8 + $0x2c8] sm:$0xff]  ;;  %v3372_v0 = vld [vmem:[%s5086_s8 + $0x2d0] sm:$0xff] }
  0x2c   :  { %5171 = vst [vmem:[#allocation90_spill] sm:$0xff] %v3362_v33  ;;  %5172 = vst [vmem:[#allocation91_spill] sm:$0xff] %v3367_v32  ;;  %v3377_v48 = vld [vmem:[%s5086_s8 + $0x2d8] sm:$0xff]  ;;  %v3382_v16 = vld [vmem:[%s5086_s8 + $0x2e0] sm:$0xff] }
  0x2d   :  { %5173 = vst [vmem:[#allocation92_spill] sm:$0xff] %v3372_v0  ;;  %5174 = vst [vmem:[#allocation93_spill] sm:$0xff] %v3377_v48  ;;  %v3387_v33 = vld [vmem:[%s5086_s8 + $0x2e8] sm:$0xff]  ;;  %v3392_v32 = vld [vmem:[%s5086_s8 + $0x2f0] sm:$0xff] }
  0x2e   :  { %5175 = vst [vmem:[#allocation94_spill] sm:$0xff] %v3382_v16  ;;  %5176 = vst [vmem:[#allocation95_spill] sm:$0xff] %v3387_v33  ;;  %v3397_v0 = vld [vmem:[%s5086_s8 + $0x2f8] sm:$0xff]  ;;  %v3402_v48 = vld [vmem:[%s5086_s8 + $0x300] sm:$0xff] }
  0x2f   :  { %5177 = vst [vmem:[#allocation96_spill] sm:$0xff] %v3392_v32  ;;  %5178 = vst [vmem:[#allocation97_spill] sm:$0xff] %v3397_v0  ;;  %v3407_v16 = vld [vmem:[%s5086_s8 + $0x308] sm:$0xff]  ;;  %v3412_v33 = vld [vmem:[%s5086_s8 + $0x310] sm:$0xff] }
  0x30   :  { %5179 = vst [vmem:[#allocation98_spill] sm:$0xff] %v3402_v48  ;;  %5180 = vst [vmem:[#allocation99_spill] sm:$0xff] %v3407_v16  ;;  %v3417_v32 = vld [vmem:[%s5086_s8 + $0x318] sm:$0xff]  ;;  %v3422_v0 = vld [vmem:[%s5086_s8 + $0x320] sm:$0xff] }
  0x31   :  { %5181 = vst [vmem:[#allocation100_spill] sm:$0xff] %v3412_v33  ;;  %5182 = vst [vmem:[#allocation101_spill] sm:$0xff] %v3417_v32  ;;  %v3427_v48 = vld [vmem:[%s5086_s8 + $0x328] sm:$0xff]  ;;  %v3432_v16 = vld [vmem:[%s5086_s8 + $0x330] sm:$0xff] }
  0x32   :  { %5183 = vst [vmem:[#allocation102_spill] sm:$0xff] %v3422_v0  ;;  %5184 = vst [vmem:[#allocation103_spill] sm:$0xff] %v3427_v48  ;;  %v3437_v33 = vld [vmem:[%s5086_s8 + $0x338] sm:$0xff]  ;;  %v3442_v32 = vld [vmem:[%s5086_s8 + $0x340] sm:$0xff] }
  0x33   :  { %5185 = vst [vmem:[#allocation104_spill] sm:$0xff] %v3432_v16  ;;  %5186 = vst [vmem:[#allocation105_spill] sm:$0xff] %v3437_v33  ;;  %v3447_v0 = vld [vmem:[%s5086_s8 + $0x348] sm:$0xff]  ;;  %v3452_v48 = vld [vmem:[%s5086_s8 + $0x350] sm:$0xff] }
  0x34   :  { %5187 = vst [vmem:[#allocation106_spill] sm:$0xff] %v3442_v32  ;;  %5188 = vst [vmem:[#allocation107_spill] sm:$0xff] %v3447_v0  ;;  %v3457_v16 = vld [vmem:[%s5086_s8 + $0x358] sm:$0xff]  ;;  %v3462_v33 = vld [vmem:[%s5086_s8 + $0x360] sm:$0xff] }
  0x35   :  { %5189 = vst [vmem:[#allocation108_spill] sm:$0xff] %v3452_v48  ;;  %5190 = vst [vmem:[#allocation109_spill] sm:$0xff] %v3457_v16  ;;  %v3467_v32 = vld [vmem:[%s5086_s8 + $0x368] sm:$0xff]  ;;  %v3472_v0 = vld [vmem:[%s5086_s8 + $0x370] sm:$0xff] }
  0x36   :  { %5191 = vst [vmem:[#allocation110_spill] sm:$0xff] %v3462_v33  ;;  %5192 = vst [vmem:[#allocation111_spill] sm:$0xff] %v3467_v32  ;;  %v3477_v48 = vld [vmem:[%s5086_s8 + $0x378] sm:$0xff]  ;;  %v3482_v16 = vld [vmem:[%s5086_s8 + $0x380] sm:$0xff] }
  0x37   :  { %5193 = vst [vmem:[#allocation112_spill] sm:$0xff] %v3472_v0  ;;  %5194 = vst [vmem:[#allocation113_spill] sm:$0xff] %v3477_v48  ;;  %v3487_v33 = vld [vmem:[%s5086_s8 + $0x388] sm:$0xff]  ;;  %v3492_v32 = vld [vmem:[%s5086_s8 + $0x390] sm:$0xff] }
  0x38   :  { %5195 = vst [vmem:[#allocation114_spill] sm:$0xff] %v3482_v16  ;;  %5196 = vst [vmem:[#allocation115_spill] sm:$0xff] %v3487_v33  ;;  %v3497_v0 = vld [vmem:[%s5086_s8 + $0x398] sm:$0xff]  ;;  %v3502_v48 = vld [vmem:[%s5086_s8 + $0x3a0] sm:$0xff] }
  0x39   :  { %5197 = vst [vmem:[#allocation116_spill] sm:$0xff] %v3492_v32  ;;  %5198 = vst [vmem:[#allocation117_spill] sm:$0xff] %v3497_v0  ;;  %v3507_v16 = vld [vmem:[%s5086_s8 + $0x3a8] sm:$0xff]  ;;  %v3512_v33 = vld [vmem:[%s5086_s8 + $0x3b0] sm:$0xff] }
  0x3a   :  { %5199 = vst [vmem:[#allocation118_spill] sm:$0xff] %v3502_v48  ;;  %5200 = vst [vmem:[#allocation119_spill] sm:$0xff] %v3507_v16  ;;  %v3517_v32 = vld [vmem:[%s5086_s8 + $0x3b8] sm:$0xff]  ;;  %v3522_v0 = vld [vmem:[%s5086_s8 + $0x3c0] sm:$0xff] }
  0x3b   :  { %5201 = vst [vmem:[#allocation120_spill] sm:$0xff] %v3512_v33  ;;  %5202 = vst [vmem:[#allocation121_spill] sm:$0xff] %v3517_v32  ;;  %v3527_v48 = vld [vmem:[%s5086_s8 + $0x3c8] sm:$0xff]  ;;  %v3532_v16 = vld [vmem:[%s5086_s8 + $0x3d0] sm:$0xff] }
  0x3c   :  { %5203 = vst [vmem:[#allocation122_spill] sm:$0xff] %v3522_v0  ;;  %5204 = vst [vmem:[#allocation123_spill] sm:$0xff] %v3527_v48  ;;  %v3537_v33 = vld [vmem:[%s5086_s8 + $0x3d8] sm:$0xff]  ;;  %v3542_v32 = vld [vmem:[%s5086_s8 + $0x3e0] sm:$0xff] }
  0x3d   :  { %5205 = vst [vmem:[#allocation124_spill] sm:$0xff] %v3532_v16  ;;  %5206 = vst [vmem:[#allocation125_spill] sm:$0xff] %v3537_v33  ;;  %v3547_v0 = vld [vmem:[%s5086_s8 + $0x3e8] sm:$0xff]  ;;  %v3552_v48 = vld [vmem:[%s5086_s8 + $0x3f0] sm:$0xff] }
  0x3e   :  { %5207 = vst [vmem:[#allocation126_spill] sm:$0xff] %v3542_v32  ;;  %5208 = vst [vmem:[#allocation127_spill] sm:$0xff] %v3547_v0  ;;  %v3557_v16 = vld [vmem:[%s5086_s8 + $0x3f8] sm:$0xff]  ;;  %v3562_v33 = vld [vmem:[%s5086_s8 + $0x400] sm:$0xff] }
  0x3f   :  { %5209 = vst [vmem:[#allocation128_spill] sm:$0xff] %v3552_v48  ;;  %5210 = vst [vmem:[#allocation129_spill] sm:$0xff] %v3557_v16  ;;  %v3567_v32 = vld [vmem:[%s5086_s8 + $0x408] sm:$0xff]  ;;  %v3572_v0 = vld [vmem:[%s5086_s8 + $0x410] sm:$0xff] }
  0x40   :  { %5211 = vst [vmem:[#allocation130_spill] sm:$0xff] %v3562_v33  ;;  %5212 = vst [vmem:[#allocation131_spill] sm:$0xff] %v3567_v32  ;;  %v3577_v48 = vld [vmem:[%s5086_s8 + $0x418] sm:$0xff]  ;;  %v3582_v16 = vld [vmem:[%s5086_s8 + $0x420] sm:$0xff] }
  0x41   :  { %5213 = vst [vmem:[#allocation132_spill] sm:$0xff] %v3572_v0  ;;  %5214 = vst [vmem:[#allocation133_spill] sm:$0xff] %v3577_v48  ;;  %v3587_v33 = vld [vmem:[%s5086_s8 + $0x428] sm:$0xff]  ;;  %v3592_v32 = vld [vmem:[%s5086_s8 + $0x430] sm:$0xff] }
  0x42   :  { %5215 = vst [vmem:[#allocation134_spill] sm:$0xff] %v3582_v16  ;;  %5216 = vst [vmem:[#allocation135_spill] sm:$0xff] %v3587_v33  ;;  %v3597_v0 = vld [vmem:[%s5086_s8 + $0x438] sm:$0xff]  ;;  %v3602_v48 = vld [vmem:[%s5086_s8 + $0x440] sm:$0xff] }
  0x43   :  { %5217 = vst [vmem:[#allocation136_spill] sm:$0xff] %v3592_v32  ;;  %5218 = vst [vmem:[#allocation137_spill] sm:$0xff] %v3597_v0  ;;  %v3607_v16 = vld [vmem:[%s5086_s8 + $0x448] sm:$0xff]  ;;  %v3612_v33 = vld [vmem:[%s5086_s8 + $0x450] sm:$0xff] }
  0x44   :  { %5219 = vst [vmem:[#allocation138_spill] sm:$0xff] %v3602_v48  ;;  %5220 = vst [vmem:[#allocation139_spill] sm:$0xff] %v3607_v16  ;;  %v3617_v32 = vld [vmem:[%s5086_s8 + $0x458] sm:$0xff]  ;;  %v3622_v0 = vld [vmem:[%s5086_s8 + $0x460] sm:$0xff] }
  0x45   :  { %5221 = vst [vmem:[#allocation140_spill] sm:$0xff] %v3612_v33  ;;  %5222 = vst [vmem:[#allocation141_spill] sm:$0xff] %v3617_v32  ;;  %v3627_v48 = vld [vmem:[%s5086_s8 + $0x468] sm:$0xff]  ;;  %v3632_v16 = vld [vmem:[%s5086_s8 + $0x470] sm:$0xff] }
  0x46   :  { %5223 = vst [vmem:[#allocation142_spill] sm:$0xff] %v3622_v0  ;;  %5224 = vst [vmem:[#allocation143_spill] sm:$0xff] %v3627_v48  ;;  %v3637_v33 = vld [vmem:[%s5086_s8 + $0x478] sm:$0xff]  ;;  %v3642_v32 = vld [vmem:[%s5086_s8 + $0x480] sm:$0xff] }
  0x47   :  { %5225 = vst [vmem:[#allocation144_spill] sm:$0xff] %v3632_v16  ;;  %5226 = vst [vmem:[#allocation145_spill] sm:$0xff] %v3637_v33  ;;  %v3647_v0 = vld [vmem:[%s5086_s8 + $0x488] sm:$0xff]  ;;  %v3652_v48 = vld [vmem:[%s5086_s8 + $0x490] sm:$0xff] }
  0x48   :  { %5227 = vst [vmem:[#allocation146_spill] sm:$0xff] %v3642_v32  ;;  %5228 = vst [vmem:[#allocation147_spill] sm:$0xff] %v3647_v0  ;;  %v3657_v16 = vld [vmem:[%s5086_s8 + $0x498] sm:$0xff]  ;;  %v3662_v33 = vld [vmem:[%s5086_s8 + $0x4a0] sm:$0xff] }
  0x49   :  { %5229 = vst [vmem:[#allocation148_spill] sm:$0xff] %v3652_v48  ;;  %5230 = vst [vmem:[#allocation149_spill] sm:$0xff] %v3657_v16  ;;  %v3667_v32 = vld [vmem:[%s5086_s8 + $0x4a8] sm:$0xff]  ;;  %v3672_v0 = vld [vmem:[%s5086_s8 + $0x4b0] sm:$0xff] }
  0x4a   :  { %5231 = vst [vmem:[#allocation150_spill] sm:$0xff] %v3662_v33  ;;  %5232 = vst [vmem:[#allocation151_spill] sm:$0xff] %v3667_v32  ;;  %v3677_v48 = vld [vmem:[%s5086_s8 + $0x4b8] sm:$0xff]  ;;  %v3682_v16 = vld [vmem:[%s5086_s8 + $0x4c0] sm:$0xff] }
  0x4b   :  { %5233 = vst [vmem:[#allocation152_spill] sm:$0xff] %v3672_v0  ;;  %5234 = vst [vmem:[#allocation153_spill] sm:$0xff] %v3677_v48  ;;  %v3687_v33 = vld [vmem:[%s5086_s8 + $0x4c8] sm:$0xff]  ;;  %v3692_v32 = vld [vmem:[%s5086_s8 + $0x4d0] sm:$0xff] }
  0x4c   :  { %5235 = vst [vmem:[#allocation154_spill] sm:$0xff] %v3682_v16  ;;  %5236 = vst [vmem:[#allocation155_spill] sm:$0xff] %v3687_v33  ;;  %v3697_v0 = vld [vmem:[%s5086_s8 + $0x4d8] sm:$0xff]  ;;  %v3702_v48 = vld [vmem:[%s5086_s8 + $0x4e0] sm:$0xff] }
  0x4d   :  { %5237 = vst [vmem:[#allocation156_spill] sm:$0xff] %v3692_v32  ;;  %5238 = vst [vmem:[#allocation157_spill] sm:$0xff] %v3697_v0  ;;  %v3707_v16 = vld [vmem:[%s5086_s8 + $0x4e8] sm:$0xff]  ;;  %v3712_v33 = vld [vmem:[%s5086_s8 + $0x4f0] sm:$0xff] }
  0x4e   :  { %5239 = vst [vmem:[#allocation158_spill] sm:$0xff] %v3702_v48  ;;  %5240 = vst [vmem:[#allocation159_spill] sm:$0xff] %v3707_v16  ;;  %v3717_v32 = vld [vmem:[%s5086_s8 + $0x4f8] sm:$0xff]  ;;  %v3722_v0 = vld [vmem:[%s5086_s8 + $0x500] sm:$0xff] }
  0x4f   :  { %5241 = vst [vmem:[#allocation160_spill] sm:$0xff] %v3712_v33  ;;  %5242 = vst [vmem:[#allocation161_spill] sm:$0xff] %v3717_v32  ;;  %v3727_v48 = vld [vmem:[%s5086_s8 + $0x508] sm:$0xff]  ;;  %v3732_v16 = vld [vmem:[%s5086_s8 + $0x510] sm:$0xff] }
  0x50   :  { %5243 = vst [vmem:[#allocation162_spill] sm:$0xff] %v3722_v0  ;;  %5244 = vst [vmem:[#allocation163_spill] sm:$0xff] %v3727_v48  ;;  %v3737_v33 = vld [vmem:[%s5086_s8 + $0x518] sm:$0xff]  ;;  %v3742_v32 = vld [vmem:[%s5086_s8 + $0x520] sm:$0xff] }
  0x51   :  { %5245 = vst [vmem:[#allocation164_spill] sm:$0xff] %v3732_v16  ;;  %5246 = vst [vmem:[#allocation165_spill] sm:$0xff] %v3737_v33  ;;  %v3747_v0 = vld [vmem:[%s5086_s8 + $0x528] sm:$0xff]  ;;  %v3752_v48 = vld [vmem:[%s5086_s8 + $0x530] sm:$0xff] }
  0x52   :  { %5247 = vst [vmem:[#allocation166_spill] sm:$0xff] %v3742_v32  ;;  %5248 = vst [vmem:[#allocation167_spill] sm:$0xff] %v3747_v0  ;;  %v3757_v16 = vld [vmem:[%s5086_s8 + $0x538] sm:$0xff]  ;;  %v3762_v33 = vld [vmem:[%s5086_s8 + $0x540] sm:$0xff] }
  0x53   :  { %5249 = vst [vmem:[#allocation168_spill] sm:$0xff] %v3752_v48  ;;  %5250 = vst [vmem:[#allocation169_spill] sm:$0xff] %v3757_v16  ;;  %v3767_v32 = vld [vmem:[%s5086_s8 + $0x548] sm:$0xff]  ;;  %v3772_v0 = vld [vmem:[%s5086_s8 + $0x550] sm:$0xff] }
  0x54   :  { %5251 = vst [vmem:[#allocation170_spill] sm:$0xff] %v3762_v33  ;;  %5252 = vst [vmem:[#allocation171_spill] sm:$0xff] %v3767_v32  ;;  %v3777_v48 = vld [vmem:[%s5086_s8 + $0x558] sm:$0xff]  ;;  %v3782_v16 = vld [vmem:[%s5086_s8 + $0x560] sm:$0xff] }
  0x55   :  { %5253 = vst [vmem:[#allocation172_spill] sm:$0xff] %v3772_v0  ;;  %5254 = vst [vmem:[#allocation173_spill] sm:$0xff] %v3777_v48  ;;  %v3787_v33 = vld [vmem:[%s5086_s8 + $0x568] sm:$0xff]  ;;  %v3792_v32 = vld [vmem:[%s5086_s8 + $0x570] sm:$0xff] }
  0x56   :  { %5255 = vst [vmem:[#allocation174_spill] sm:$0xff] %v3782_v16  ;;  %5256 = vst [vmem:[#allocation175_spill] sm:$0xff] %v3787_v33  ;;  %v3797_v0 = vld [vmem:[%s5086_s8 + $0x578] sm:$0xff]  ;;  %v3802_v48 = vld [vmem:[%s5086_s8 + $0x580] sm:$0xff] }
  0x57   :  { %5257 = vst [vmem:[#allocation176_spill] sm:$0xff] %v3792_v32  ;;  %5258 = vst [vmem:[#allocation177_spill] sm:$0xff] %v3797_v0  ;;  %v3807_v16 = vld [vmem:[%s5086_s8 + $0x588] sm:$0xff]  ;;  %v3812_v33 = vld [vmem:[%s5086_s8 + $0x590] sm:$0xff] }
  0x58   :  { %5259 = vst [vmem:[#allocation178_spill] sm:$0xff] %v3802_v48  ;;  %5260 = vst [vmem:[#allocation179_spill] sm:$0xff] %v3807_v16  ;;  %v3817_v32 = vld [vmem:[%s5086_s8 + $0x598] sm:$0xff]  ;;  %v3822_v0 = vld [vmem:[%s5086_s8 + $0x5a0] sm:$0xff] }
  0x59   :  { %5261 = vst [vmem:[#allocation180_spill] sm:$0xff] %v3812_v33  ;;  %5262 = vst [vmem:[#allocation181_spill] sm:$0xff] %v3817_v32  ;;  %v3827_v48 = vld [vmem:[%s5086_s8 + $0x5a8] sm:$0xff]  ;;  %v3832_v16 = vld [vmem:[%s5086_s8 + $0x5b0] sm:$0xff] }
  0x5a   :  { %5263 = vst [vmem:[#allocation182_spill] sm:$0xff] %v3822_v0  ;;  %5264 = vst [vmem:[#allocation183_spill] sm:$0xff] %v3827_v48  ;;  %v3837_v33 = vld [vmem:[%s5086_s8 + $0x5b8] sm:$0xff]  ;;  %v3842_v32 = vld [vmem:[%s5086_s8 + $0x5c0] sm:$0xff] }
  0x5b   :  { %5265 = vst [vmem:[#allocation184_spill] sm:$0xff] %v3832_v16  ;;  %5266 = vst [vmem:[#allocation185_spill] sm:$0xff] %v3837_v33  ;;  %v3847_v0 = vld [vmem:[%s5086_s8 + $0x5c8] sm:$0xff]  ;;  %v3852_v48 = vld [vmem:[%s5086_s8 + $0x5d0] sm:$0xff] }
  0x5c   :  { %5267 = vst [vmem:[#allocation186_spill] sm:$0xff] %v3842_v32  ;;  %5268 = vst [vmem:[#allocation187_spill] sm:$0xff] %v3847_v0  ;;  %v3857_v16 = vld [vmem:[%s5086_s8 + $0x5d8] sm:$0xff]  ;;  %v3862_v33 = vld [vmem:[%s5086_s8 + $0x5e0] sm:$0xff] }
  0x5d   :  { %5269 = vst [vmem:[#allocation188_spill] sm:$0xff] %v3852_v48  ;;  %5270 = vst [vmem:[#allocation189_spill] sm:$0xff] %v3857_v16  ;;  %v3867_v32 = vld [vmem:[%s5086_s8 + $0x5e8] sm:$0xff]  ;;  %v3872_v0 = vld [vmem:[%s5086_s8 + $0x5f0] sm:$0xff] }
  0x5e   :  { %5271 = vst [vmem:[#allocation190_spill] sm:$0xff] %v3862_v33  ;;  %5272 = vst [vmem:[#allocation191_spill] sm:$0xff] %v3867_v32  ;;  %v3877_v48 = vld [vmem:[%s5086_s8 + $0x5f8] sm:$0xff]  ;;  %v3882_v16 = vld [vmem:[%s5086_s8 + $0x600] sm:$0xff] }
  0x5f   :  { %5273 = vst [vmem:[#allocation192_spill] sm:$0xff] %v3872_v0  ;;  %5274 = vst [vmem:[#allocation193_spill] sm:$0xff] %v3877_v48  ;;  %v3887_v33 = vld [vmem:[%s5086_s8 + $0x608] sm:$0xff]  ;;  %v3892_v32 = vld [vmem:[%s5086_s8 + $0x610] sm:$0xff] }
  0x60   :  { %5275 = vst [vmem:[#allocation194_spill] sm:$0xff] %v3882_v16  ;;  %5276 = vst [vmem:[#allocation195_spill] sm:$0xff] %v3887_v33  ;;  %v3897_v0 = vld [vmem:[%s5086_s8 + $0x618] sm:$0xff]  ;;  %v3902_v48 = vld [vmem:[%s5086_s8 + $0x620] sm:$0xff] }
  0x61   :  { %5277 = vst [vmem:[#allocation196_spill] sm:$0xff] %v3892_v32  ;;  %5278 = vst [vmem:[#allocation197_spill] sm:$0xff] %v3897_v0  ;;  %v3907_v16 = vld [vmem:[%s5086_s8 + $0x628] sm:$0xff]  ;;  %v3912_v33 = vld [vmem:[%s5086_s8 + $0x630] sm:$0xff] }
  0x62   :  { %5279 = vst [vmem:[#allocation198_spill] sm:$0xff] %v3902_v48  ;;  %5280 = vst [vmem:[#allocation199_spill] sm:$0xff] %v3907_v16  ;;  %v3917_v32 = vld [vmem:[%s5086_s8 + $0x638] sm:$0xff]  ;;  %v3922_v0 = vld [vmem:[%s5086_s8 + $0x640] sm:$0xff] }
  0x63   :  { %5281 = vst [vmem:[#allocation200_spill] sm:$0xff] %v3912_v33  ;;  %5282 = vst [vmem:[#allocation201_spill] sm:$0xff] %v3917_v32  ;;  %v3927_v48 = vld [vmem:[%s5086_s8 + $0x648] sm:$0xff]  ;;  %v3932_v16 = vld [vmem:[%s5086_s8 + $0x650] sm:$0xff] }
  0x64   :  { %5283 = vst [vmem:[#allocation202_spill] sm:$0xff] %v3922_v0  ;;  %5284 = vst [vmem:[#allocation203_spill] sm:$0xff] %v3927_v48  ;;  %v3937_v33 = vld [vmem:[%s5086_s8 + $0x658] sm:$0xff]  ;;  %v3942_v32 = vld [vmem:[%s5086_s8 + $0x660] sm:$0xff] }
  0x65   :  { %5285 = vst [vmem:[#allocation204_spill] sm:$0xff] %v3932_v16  ;;  %5286 = vst [vmem:[#allocation205_spill] sm:$0xff] %v3937_v33  ;;  %v3947_v0 = vld [vmem:[%s5086_s8 + $0x668] sm:$0xff]  ;;  %v3952_v48 = vld [vmem:[%s5086_s8 + $0x670] sm:$0xff] }
  0x66   :  { %5287 = vst [vmem:[#allocation206_spill] sm:$0xff] %v3942_v32  ;;  %5288 = vst [vmem:[#allocation207_spill] sm:$0xff] %v3947_v0  ;;  %v3957_v16 = vld [vmem:[%s5086_s8 + $0x678] sm:$0xff]  ;;  %v3962_v33 = vld [vmem:[%s5086_s8 + $0x680] sm:$0xff] }
  0x67   :  { %5289 = vst [vmem:[#allocation208_spill] sm:$0xff] %v3952_v48  ;;  %5290 = vst [vmem:[#allocation209_spill] sm:$0xff] %v3957_v16  ;;  %v3967_v32 = vld [vmem:[%s5086_s8 + $0x688] sm:$0xff]  ;;  %v3972_v0 = vld [vmem:[%s5086_s8 + $0x690] sm:$0xff] }
  0x68   :  { %5291 = vst [vmem:[#allocation210_spill] sm:$0xff] %v3962_v33  ;;  %5292 = vst [vmem:[#allocation211_spill] sm:$0xff] %v3967_v32  ;;  %v3977_v48 = vld [vmem:[%s5086_s8 + $0x698] sm:$0xff]  ;;  %v3982_v16 = vld [vmem:[%s5086_s8 + $0x6a0] sm:$0xff] }
  0x69   :  { %5293 = vst [vmem:[#allocation212_spill] sm:$0xff] %v3972_v0  ;;  %5294 = vst [vmem:[#allocation213_spill] sm:$0xff] %v3977_v48  ;;  %v3987_v33 = vld [vmem:[%s5086_s8 + $0x6a8] sm:$0xff]  ;;  %v3992_v32 = vld [vmem:[%s5086_s8 + $0x6b0] sm:$0xff] }
  0x6a   :  { %5295 = vst [vmem:[#allocation214_spill] sm:$0xff] %v3982_v16  ;;  %5296 = vst [vmem:[#allocation215_spill] sm:$0xff] %v3987_v33  ;;  %v3997_v0 = vld [vmem:[%s5086_s8 + $0x6b8] sm:$0xff]  ;;  %v4002_v48 = vld [vmem:[%s5086_s8 + $0x6c0] sm:$0xff] }
  0x6b   :  { %5297 = vst [vmem:[#allocation216_spill] sm:$0xff] %v3992_v32  ;;  %5298 = vst [vmem:[#allocation217_spill] sm:$0xff] %v3997_v0  ;;  %v4007_v16 = vld [vmem:[%s5086_s8 + $0x6c8] sm:$0xff]  ;;  %v4012_v33 = vld [vmem:[%s5086_s8 + $0x6d0] sm:$0xff] }
  0x6c   :  { %5299 = vst [vmem:[#allocation218_spill] sm:$0xff] %v4002_v48  ;;  %5300 = vst [vmem:[#allocation219_spill] sm:$0xff] %v4007_v16  ;;  %v4017_v32 = vld [vmem:[%s5086_s8 + $0x6d8] sm:$0xff]  ;;  %v4022_v0 = vld [vmem:[%s5086_s8 + $0x6e0] sm:$0xff] }
  0x6d   :  { %5301 = vst [vmem:[#allocation220_spill] sm:$0xff] %v4012_v33  ;;  %5302 = vst [vmem:[#allocation221_spill] sm:$0xff] %v4017_v32  ;;  %v4027_v48 = vld [vmem:[%s5086_s8 + $0x6e8] sm:$0xff]  ;;  %v4032_v16 = vld [vmem:[%s5086_s8 + $0x6f0] sm:$0xff] }
  0x6e   :  { %5303 = vst [vmem:[#allocation222_spill] sm:$0xff] %v4022_v0  ;;  %5304 = vst [vmem:[#allocation223_spill] sm:$0xff] %v4027_v48  ;;  %v4037_v33 = vld [vmem:[%s5086_s8 + $0x6f8] sm:$0xff]  ;;  %v4042_v32 = vld [vmem:[%s5086_s8 + $0x700] sm:$0xff] }
  0x6f   :  { %5305 = vst [vmem:[#allocation224_spill] sm:$0xff] %v4032_v16  ;;  %5306 = vst [vmem:[#allocation225_spill] sm:$0xff] %v4037_v33  ;;  %v4047_v0 = vld [vmem:[%s5086_s8 + $0x708] sm:$0xff]  ;;  %v4052_v48 = vld [vmem:[%s5086_s8 + $0x710] sm:$0xff] }
  0x70   :  { %5307 = vst [vmem:[#allocation226_spill] sm:$0xff] %v4042_v32  ;;  %5308 = vst [vmem:[#allocation227_spill] sm:$0xff] %v4047_v0  ;;  %v4057_v16 = vld [vmem:[%s5086_s8 + $0x718] sm:$0xff]  ;;  %v4062_v33 = vld [vmem:[%s5086_s8 + $0x720] sm:$0xff] }
  0x71   :  { %5309 = vst [vmem:[#allocation228_spill] sm:$0xff] %v4052_v48  ;;  %5310 = vst [vmem:[#allocation229_spill] sm:$0xff] %v4057_v16  ;;  %v4067_v32 = vld [vmem:[%s5086_s8 + $0x728] sm:$0xff]  ;;  %v4072_v0 = vld [vmem:[%s5086_s8 + $0x730] sm:$0xff] }
  0x72   :  { %5311 = vst [vmem:[#allocation230_spill] sm:$0xff] %v4062_v33  ;;  %5312 = vst [vmem:[#allocation231_spill] sm:$0xff] %v4067_v32  ;;  %v4077_v48 = vld [vmem:[%s5086_s8 + $0x738] sm:$0xff]  ;;  %v4082_v16 = vld [vmem:[%s5086_s8 + $0x740] sm:$0xff] }
  0x73   :  { %5313 = vst [vmem:[#allocation232_spill] sm:$0xff] %v4072_v0  ;;  %5314 = vst [vmem:[#allocation233_spill] sm:$0xff] %v4077_v48  ;;  %v4087_v33 = vld [vmem:[%s5086_s8 + $0x748] sm:$0xff]  ;;  %v4092_v32 = vld [vmem:[%s5086_s8 + $0x750] sm:$0xff] }
  0x74   :  { %5315 = vst [vmem:[#allocation234_spill] sm:$0xff] %v4082_v16  ;;  %5316 = vst [vmem:[#allocation235_spill] sm:$0xff] %v4087_v33  ;;  %v4097_v0 = vld [vmem:[%s5086_s8 + $0x758] sm:$0xff]  ;;  %v4102_v48 = vld [vmem:[%s5086_s8 + $0x760] sm:$0xff] }
  0x75   :  { %5317 = vst [vmem:[#allocation236_spill] sm:$0xff] %v4092_v32  ;;  %5318 = vst [vmem:[#allocation237_spill] sm:$0xff] %v4097_v0  ;;  %v4107_v16 = vld [vmem:[%s5086_s8 + $0x768] sm:$0xff]  ;;  %v4112_v33 = vld [vmem:[%s5086_s8 + $0x770] sm:$0xff] }
  0x76   :  { %5319 = vst [vmem:[#allocation238_spill] sm:$0xff] %v4102_v48  ;;  %5320 = vst [vmem:[#allocation239_spill] sm:$0xff] %v4107_v16  ;;  %v4117_v32 = vld [vmem:[%s5086_s8 + $0x778] sm:$0xff]  ;;  %v4122_v0 = vld [vmem:[%s5086_s8 + $0x780] sm:$0xff] }
  0x77   :  { %5321 = vst [vmem:[#allocation240_spill] sm:$0xff] %v4112_v33  ;;  %5322 = vst [vmem:[#allocation241_spill] sm:$0xff] %v4117_v32  ;;  %v4127_v48 = vld [vmem:[%s5086_s8 + $0x788] sm:$0xff]  ;;  %v4132_v16 = vld [vmem:[%s5086_s8 + $0x790] sm:$0xff] }
  0x78   :  { %5323 = vst [vmem:[#allocation242_spill] sm:$0xff] %v4122_v0  ;;  %5324 = vst [vmem:[#allocation243_spill] sm:$0xff] %v4127_v48  ;;  %v4137_v33 = vld [vmem:[%s5086_s8 + $0x798] sm:$0xff]  ;;  %v4142_v32 = vld [vmem:[%s5086_s8 + $0x7a0] sm:$0xff] }
  0x79   :  { %5325 = vst [vmem:[#allocation244_spill] sm:$0xff] %v4132_v16  ;;  %5326 = vst [vmem:[#allocation245_spill] sm:$0xff] %v4137_v33  ;;  %v4147_v0 = vld [vmem:[%s5086_s8 + $0x7a8] sm:$0xff]  ;;  %v4152_v48 = vld [vmem:[%s5086_s8 + $0x7b0] sm:$0xff] }
  0x7a   :  { %5327 = vst [vmem:[#allocation246_spill] sm:$0xff] %v4142_v32  ;;  %5328 = vst [vmem:[#allocation247_spill] sm:$0xff] %v4147_v0  ;;  %v4157_v16 = vld [vmem:[%s5086_s8 + $0x7b8] sm:$0xff]  ;;  %v4162_v33 = vld [vmem:[%s5086_s8 + $0x7c0] sm:$0xff] }
  0x7b   :  { %5329 = vst [vmem:[#allocation248_spill] sm:$0xff] %v4152_v48  ;;  %5330 = vst [vmem:[#allocation249_spill] sm:$0xff] %v4157_v16  ;;  %v4167_v32 = vld [vmem:[%s5086_s8 + $0x7c8] sm:$0xff]  ;;  %v4172_v0 = vld [vmem:[%s5086_s8 + $0x7d0] sm:$0xff] }
  0x7c   :  { %5331 = vst [vmem:[#allocation250_spill] sm:$0xff] %v4162_v33  ;;  %5332 = vst [vmem:[#allocation251_spill] sm:$0xff] %v4167_v32  ;;  %v4177_v48 = vld [vmem:[%s5086_s8 + $0x7d8] sm:$0xff]  ;;  %v4182_v16 = vld [vmem:[%s5086_s8 + $0x7e0] sm:$0xff] }
  0x7d   :  { %5333 = vst [vmem:[#allocation252_spill] sm:$0xff] %v4172_v0  ;;  %5334 = vst [vmem:[#allocation253_spill] sm:$0xff] %v4177_v48  ;;  %v4187_v33 = vld [vmem:[%s5086_s8 + $0x7e8] sm:$0xff]  ;;  %v4192_v32 = vld [vmem:[%s5086_s8 + $0x7f0] sm:$0xff] }
  0x7e   :  { %5335 = vst [vmem:[#allocation254_spill] sm:$0xff] %v4182_v16  ;;  %5336 = vst [vmem:[#allocation255_spill] sm:$0xff] %v4187_v33  ;;  %v4197_v0 = vld [vmem:[%s5086_s8 + $0x7f8] sm:$0xff]  ;;  %v4202_v48 = vld [vmem:[%s5079_s1 + $0x10] sm:$0xff] }
  0x7f   :  { %5337 = vst [vmem:[#allocation256_spill] sm:$0xff] %v4192_v32  ;;  %5338 = vst [vmem:[#allocation257_spill] sm:$0xff] %v4197_v0  ;;  %v4207_v16 = vld [vmem:[%s5079_s1] sm:$0xff]  ;;  %788 = vrot.lane.b32.xlu1 %v4202_v48, %s2853_s29  ;;  %v4216_v33 = vld [vmem:[%s5079_s1 + $0x18] sm:$0xff] }
  0x80   :  { %784 = vrot.lane.b32.xlu0 %v4207_v16, %s2853_s29  ;;  %v4221_v32 = vld [vmem:[%s5079_s1 + $0x8] sm:$0xff] }
  0x81   :  { %587 = vsyncadd [#allocation6], 32768  ;;  %s2854_s13 = smov 113   ;;  %s2855_s1 = smov 112   ;;  %v5089_v0 = vmov 0   ;;  %v862_v1 = vld [vmem:[%s5081_s3] sm:$0xff]  ;;  %v5091_v49 = vlaneseq }
  0x82   :  { %s2856_s14 = smov 127   ;;  %s2857_s15 = smov 15   ;;  %917 = vmatprep.mubr.bf16.mxu0 %v5089_v0  ;;  %958 = vmatprep.mubr.bf16.mxu1 %v5089_v0  ;;  %v4296_v2 = vld [vmem:[%s5078_s0 + $0x110] sm:$0xff]  ;;  %v4302_v50 = vld [vmem:[%s5078_s0 + $0x100] sm:$0xff]  ;;  %vm872_vm1 = vcmask 1043456   ;;  %vm868_vm9 = vcmask 588800  }
  0x83   :  { %790 = vrot.lane.b32.xlu1 %v4216_v33, %s2853_s29  ;;  %s2858_s16 = smov 1   ;;  %s2859_s17 = smov 17   ;;  %2823 = vset.pattern.permute.xlu0 %v5089_v0  ;;  %v4378_v54 = vld [vmem:[%s5078_s0 + $0xc0] sm:$0xff]  ;;  %vm1342_vm10 = vcmask 64512  }
  0x84   :  { %786 = vrot.lane.b32.xlu0 %v4221_v32, %s2853_s29  ;;  %2824 = vset.pattern.permute.xlu1 %v5089_v0  ;;  %s2861_s18 = smov 16   ;;  %v4291_v0 = vand.u32 127, %v5091_v49  ;;  %v4312_v49 = vld [vmem:[%s5078_s0 + $0x118] sm:$0xff] }
  0x86   :  { %vm792_vm0 = vcmp.lt.s32.totalorder %v4291_v0, 111  ;;  %vm766_vm2 = vcmp.lt.s32.totalorder %v4291_v0, 112  ;;  %vm740_vm3 = vcmp.lt.s32.totalorder %v4291_v0, 113  ;;  %vm714_vm4 = vcmp.lt.s32.totalorder %v4291_v0, 127 }
  0x87   :  { %734 = vrot.lane.b32.xlu1 %v4221_v32, %s2854_s13  ;;  %vm658_vm5 = vcmp.lt.s32.totalorder %v4291_v0, 15  ;;  %vm684_vm6 = vcmp.lt.s32.totalorder %v4291_v0, 1  ;;  %vm606_vm7 = vcmp.lt.s32.totalorder %v4291_v0, 17  ;;  %vm632_vm8 = vcmp.lt.s32.totalorder %v4291_v0, 16  ;;  %v1203_v0 = vld [vmem:[%s5082_s4] sm:$0xf] }
  0x88   :  { %732 = vrot.lane.b32.xlu0 %v4207_v16, %s2854_s13 }
  0x8b   :  { %738 = vrot.lane.b32.xlu1 %v4216_v33, %s2854_s13 }
  0x8c   :  { %736 = vrot.lane.b32.xlu0 %v4202_v48, %s2854_s13 }
  0x8f   :  { %760 = vrot.lane.b32.xlu1 %v4221_v32, %s2855_s1 }
  0x90   :  { %758 = vrot.lane.b32.xlu0 %v4207_v16, %s2855_s1 }
  0x93   :  { %764 = vrot.lane.b32.xlu1 %v4216_v33, %s2855_s1 }
  0x94   :  { %762 = vrot.lane.b32.xlu0 %v4202_v48, %s2855_s1 }
  0x97   :  { %708 = vrot.lane.b32.xlu1 %v4221_v32, %s2856_s14 }
  0x98   :  { %706 = vrot.lane.b32.xlu0 %v4207_v16, %s2856_s14 }
  0x9b   :  { %712 = vrot.lane.b32.xlu1 %v4216_v33, %s2856_s14 }
  0x9c   :  { %710 = vrot.lane.b32.xlu0 %v4202_v48, %s2856_s14 }
  0x9f   :  { %652 = vrot.lane.b32.xlu1 %v4221_v32, %s2857_s15 }
  0xa0   :  { %650 = vrot.lane.b32.xlu0 %v4207_v16, %s2857_s15 }
  0xa3   :  { %656 = vrot.lane.b32.xlu1 %v4216_v33, %s2857_s15 }
  0xa4   :  { %654 = vrot.lane.b32.xlu0 %v4202_v48, %s2857_s15 }
  0xa7   :  { %678 = vrot.lane.b32.xlu1 %v4221_v32, %s2858_s16 }
  0xa8   :  { %676 = vrot.lane.b32.xlu0 %v4207_v16, %s2858_s16 }
  0xab   :  { %682 = vrot.lane.b32.xlu1 %v4216_v33, %s2858_s16 }
  0xac   :  { %680 = vrot.lane.b32.xlu0 %v4202_v48, %s2858_s16 }
  0xaf   :  { %598 = vrot.lane.b32.xlu1 %v4221_v32, %s2859_s17 }
  0xb0   :  { %596 = vrot.lane.b32.xlu0 %v4207_v16, %s2859_s17 }
  0xb3   :  { %602 = vrot.lane.b32.xlu1 %v4216_v33, %s2859_s17 }
  0xb4   :  { %600 = vrot.lane.b32.xlu0 %v4202_v48, %s2859_s17 }
  0xb7   :  { %626 = vrot.lane.b32.xlu1 %v4221_v32, %s2861_s18 }
  0xb8   :  { %624 = vrot.lane.b32.xlu0 %v4207_v16, %s2861_s18 }
  0xbb   :  { %630 = vrot.lane.b32.xlu1 %v4216_v33, %s2861_s18 }
  0xbc   :  { %628 = vrot.lane.b32.xlu0 %v4202_v48, %s2861_s18 }
  0xc0   :  { %865 = vperm.xlu0 %2823, %v862_v1   ;;  %v4307_v1 = vld [vmem:[%s5078_s0 + $0x108] sm:$0xff] }
  0xf1   :  { %v789_v17 = vpop.permute.xlu1 %788 }
  0xf2   :  { %v785_v34 = vpop.permute.xlu0 %784 }
  0xf5   :  { %v791_v18 = vpop.permute.xlu1 %790 }
  0xf6   :  { %v787_v35 = vpop.permute.xlu0 %786  ;;  %v793_v3 = vsel %vm792_vm0, %v789_v17, %v791_v18  ;;  %v796_v51 = vsel %vm792_vm0, %v791_v18, %v785_v34 }
  0xf7   :  { %v794_v19 = vsel %vm792_vm0, %v787_v35, %v789_v17  ;;  %v795_v36 = vsel %vm792_vm0, %v785_v34, %v787_v35  ;;  %v799_v4 = vmul.f32 %v4296_v2, %v793_v3  ;;  %v800_v37 = vmul.f32 %v4312_v49, %v796_v51 }
  0xf8   :  { %v797_v52 = vmul.f32 %v4302_v50, %v795_v36  ;;  %v798_v20 = vmul.f32 %v4307_v1, %v794_v19 }
  0xf9   :  { %v735_v5 = vpop.permute.xlu1 %734  ;;  %v861_v38 = vpack.c.bf16 %v800_v37, %v800_v37  ;;  %v860_v6 = vpack.c.bf16 %v799_v4, %v799_v4  ;;  %v4335_v4 = vld [vmem:[%s5078_s0 + $0xd8] sm:$0xff]  ;;  %v4349_v37 = vld [vmem:[%s5078_s0 + $0xd0] sm:$0xff] }
  0xfa   :  { %v733_v53 = vpop.permute.xlu0 %732  ;;  %v859_v21 = vpack.c.bf16 %v798_v20, %v798_v20  ;;  %v858_v18 = vpack.c.bf16 %v797_v52, %v797_v52 }
  0xfb   :  { %2492 = vmatprep.subr.msk.bf16.mxu1 %vm872_vm1, %v861_v38  ;;  %v880_v3 = vsel %vm872_vm1, %v860_v6, 0  ;;  %v4342_v6 = vld [vmem:[%s5078_s0 + $0xc8] sm:$0xff]  ;;  %v4354_v38 = vld [vmem:[%s5078_s0 + $0xe0] sm:$0xff] }
  0xfc   :  { %2490 = vmatprep.subr.msk.bf16.mxu0 %vm872_vm1, %v859_v21  ;;  %v874_v17 = vsel %vm872_vm1, %v858_v18, 0  ;;  %933 = vmatpush1.bf16.msra.mxu1 %v880_v3  ;;  %v4363_v18 = vld [vmem:[%s5078_s0 + $0xf8] sm:$0xff]  ;;  %v4373_v3 = vld [vmem:[%s5078_s0 + $0xf0] sm:$0xff] }
  0xfd   :  { %892 = vmatpush1.bf16.msra.mxu0 %v874_v17  ;;  %v739_v19 = vpop.permute.xlu1 %738  ;;  %v4368_v17 = vld [vmem:[%s5078_s0 + $0xe8] sm:$0xff] }
  0xfe   :  { %v737_v34 = vpop.permute.xlu0 %736  ;;  %v744_v21 = vsel %vm740_vm3, %v739_v19, %v733_v53 }
  0xff   :  { %v742_v36 = vsel %vm740_vm3, %v735_v5, %v737_v34  ;;  %v741_v52 = vsel %vm740_vm3, %v737_v34, %v739_v19  ;;  %v743_v19 = vsel %vm740_vm3, %v733_v53, %v735_v5  ;;  %v748_v34 = vmul.f32 %v4335_v4, %v744_v21 }
 0x100   :  { %v746_v22 = vmul.f32 %v4342_v6, %v742_v36  ;;  %v747_v56 = vmul.f32 %v4349_v37, %v741_v52  ;;  %v745_v36 = vmul.f32 %v4378_v54, %v743_v19 }
 0x101   :  { %v761_v20 = vpop.permute.xlu1 %760 }
 0x102   :  { %v759_v35 = vpop.permute.xlu0 %758 }
 0x103   :  { %v769_v51 = vsel %vm766_vm2, %v759_v35, %v761_v20 }
 0x104   :  { %v771_v55 = vmul.f32 %v4354_v38, %v769_v51 }
 0x105   :  { %v765_v39 = vpop.permute.xlu1 %764 }
 0x106   :  { %v763_v7 = vpop.permute.xlu0 %762  ;;  %v770_v23 = vsel %vm766_vm2, %v765_v39, %v759_v35  ;;  %v854_v9 = vpack.c.bf16 %v771_v55, %v745_v36 }
 0x107   :  { %v767_v40 = vsel %vm766_vm2, %v763_v7, %v765_v39  ;;  %v768_v8 = vsel %vm766_vm2, %v761_v20, %v763_v7  ;;  %v774_v5 = vmul.f32 %v4363_v18, %v770_v23  ;;  %v4400_v7 = vld [vmem:[%s5078_s0 + $0xa0] sm:$0xff]  ;;  %v4407_v23 = vld [vmem:[%s5078_s0 + $0xb8] sm:$0xff] }
 0x108   :  { %v772_v53 = vmul.f32 %v4368_v17, %v768_v8  ;;  %v773_v21 = vmul.f32 %v4373_v3, %v767_v40  ;;  %v4417_v40 = vld [vmem:[%s5078_s0 + $0xb0] sm:$0xff] }
 0x109   :  { %v709_v51 = vpop.permute.xlu1 %708  ;;  %v857_v41 = vpack.c.bf16 %v774_v5, %v748_v34 }
 0x10a   :  { %v707_v35 = vpop.permute.xlu0 %706  ;;  %v855_v24 = vpack.c.bf16 %v772_v53, %v746_v22  ;;  %v856_v39 = vpack.c.bf16 %v773_v21, %v747_v56  ;;  %v4412_v22 = vld [vmem:[%s5078_s0 + $0xa8] sm:$0xff] }
 0x10b   :  { %v717_v8 = vsel %vm714_vm4, %v707_v35, %v709_v51  ;;  %934 = vmatprep.subr.bf16.mxu1 %v857_v41 }
 0x10c   :  { %893 = vmatprep.subr.bf16.mxu0 %v855_v24  ;;  %935 = vmatpush1.bf16.msra.mxu1 %v856_v39 }
 0x10d   :  { %894 = vmatpush1.bf16.msra.mxu0 %v854_v9  ;;  %v713_v55 = vpop.permute.xlu1 %712  ;;  %v719_v9 = vmul.f32 %v4400_v7, %v717_v8 }
 0x10e   :  { %v711_v24 = vpop.permute.xlu0 %710  ;;  %v718_v41 = vsel %vm714_vm4, %v713_v55, %v707_v35 }
 0x10f   :  { %v715_v56 = vsel %vm714_vm4, %v711_v24, %v713_v55  ;;  %v716_v20 = vsel %vm714_vm4, %v709_v51, %v711_v24  ;;  %v722_v52 = vmul.f32 %v4407_v23, %v718_v41  ;;  %v850_v39 = vpack.c.bf16 %v719_v9, %v4207_v16  ;;  %v4445_v16 = vld [vmem:[%s5078_s0 + $0x68] sm:$0xff]  ;;  %v4450_v24 = vld [vmem:[%s5078_s0 + $0x40] sm:$0xff] }
 0x110   :  { %v720_v19 = vmul.f32 %v4412_v22, %v716_v20  ;;  %v721_v34 = vmul.f32 %v4417_v40, %v715_v56  ;;  %v4460_v20 = vld [vmem:[%s5078_s0 + $0x50] sm:$0xff] }
 0x111   :  { %v653_v5 = vpop.permute.xlu1 %652  ;;  %v853_v36 = vpack.c.bf16 %v722_v52, %v4216_v33  ;;  %v4465_v52 = vld [vmem:[%s5078_s0 + $0x58] sm:$0xff] }
 0x112   :  { %v651_v53 = vpop.permute.xlu0 %650  ;;  %v851_v21 = vpack.c.bf16 %v720_v19, %v4221_v32  ;;  %v852_v35 = vpack.c.bf16 %v721_v34, %v4202_v48  ;;  %v4438_v32 = vld [vmem:[%s5078_s0 + $0x48] sm:$0xff] }
 0x113   :  { %936 = vmatprep.subr.bf16.mxu1 %v853_v36  ;;  %v661_v33 = vsel %vm658_vm5, %v651_v53, %v653_v5  ;;  %v4480_v36 = vld [vmem:[%s5078_s0 + $0x70] sm:$0xff] }
 0x114   :  { %895 = vmatprep.subr.bf16.mxu0 %v851_v21  ;;  %937 = vmatpush1.bf16.msra.mxu1 %v852_v35  ;;  %v664_v56 = vmul.f32 %v4438_v32, %v661_v33  ;;  %v4475_v21 = vld [vmem:[%s5078_s0 + $0x60] sm:$0xff]  ;;  %v4485_v35 = vld [vmem:[%s5078_s0 + $0x78] sm:$0xff] }
 0x115   :  { %896 = vmatpush1.bf16.msra.mxu0 %v850_v39  ;;  %v657_v51 = vpop.permute.xlu1 %656 }
 0x116   :  { %v655_v8 = vpop.permute.xlu0 %654  ;;  %v662_v9 = vsel %vm658_vm5, %v657_v51, %v651_v53 }
 0x117   :  { %v660_v19 = vsel %vm658_vm5, %v653_v5, %v655_v8  ;;  %v659_v53 = vsel %vm658_vm5, %v655_v8, %v657_v51  ;;  %v663_v5 = vmul.f32 %v4450_v24, %v662_v9 }
 0x118   :  { %v665_v8 = vmul.f32 %v4460_v20, %v660_v19  ;;  %v666_v42 = vmul.f32 %v4465_v52, %v659_v53 }
 0x119   :  { %v679_v48 = vpop.permute.xlu1 %678 }
 0x11a   :  { %v677_v55 = vpop.permute.xlu0 %676 }
 0x11b   :  { %v687_v41 = vsel %vm684_vm6, %v677_v55, %v679_v48 }
 0x11c   :  { %v690_v34 = vmul.f32 %v4445_v16, %v687_v41 }
 0x11d   :  { %v683_v39 = vpop.permute.xlu1 %682 }
 0x11e   :  { %v681_v33 = vpop.permute.xlu0 %680  ;;  %v847_v51 = vpack.c.bf16 %v690_v34, %v664_v56  ;;  %v688_v41 = vsel %vm684_vm6, %v683_v39, %v677_v55 }
 0x11f   :  { %v685_v57 = vsel %vm684_vm6, %v681_v33, %v683_v39  ;;  %v686_v25 = vsel %vm684_vm6, %v679_v48, %v681_v33  ;;  %v689_v10 = vmul.f32 %v4475_v21, %v688_v41 }
 0x120   :  { %v691_v9 = vmul.f32 %v4480_v36, %v686_v25  ;;  %v692_v58 = vmul.f32 %v4485_v35, %v685_v57  ;;  %897 = vmatprep.subr.bf16.mxu0 %v847_v51  ;;  %v4504_v25 = vld [vmem:[%s5078_s0 + $0x8] sm:$0xff]  ;;  %v4526_v51 = vld [vmem:[%s5078_s0 + $0x10] sm:$0xff] }
 0x121   :  { %v599_v56 = vpop.permute.xlu1 %598  ;;  %v846_v34 = vpack.c.bf16 %v689_v10, %v663_v5  ;;  %v4511_v10 = vld [vmem:[%s5078_s0 + $0x28] sm:$0xff] }
 0x122   :  { %v597_v19 = vpop.permute.xlu0 %596  ;;  %v849_v26 = vpack.c.bf16 %v692_v58, %v666_v42  ;;  %v848_v55 = vpack.c.bf16 %v691_v9, %v665_v8  ;;  %v4516_v58 = vld [vmem:[%s5078_s0] sm:$0xff]  ;;  %v4531_v8 = vld [vmem:[%s5078_s0 + $0x18] sm:$0xff] }
 0x123   :  { %898 = vmatpush1.bf16.msra.mxu0 %v846_v34  ;;  %v609_v57 = vsel %vm606_vm7, %v597_v19, %v599_v56  ;;  %v4541_v34 = vld [vmem:[%s5078_s0 + $0x20] sm:$0xff] }
 0x124   :  { %938 = vmatprep.subr.bf16.mxu1 %v849_v26  ;;  %v612_v33 = vmul.f32 %v609_v57, %v4504_v25  ;;  %v4551_v57 = vld [vmem:[%s5078_s0 + $0x38] sm:$0xff] }
 0x125   :  { %939 = vmatpush1.bf16.msra.mxu1 %v848_v55  ;;  %v603_v48 = vpop.permute.xlu1 %602  ;;  %v4546_v55 = vld [vmem:[%s5078_s0 + $0x30] sm:$0xff] }
 0x126   :  { %v601_v39 = vpop.permute.xlu0 %600  ;;  %v610_v53 = vsel %vm606_vm7, %v603_v48, %v597_v19 }
 0x127   :  { %v608_v41 = vsel %vm606_vm7, %v599_v56, %v601_v39  ;;  %v607_v19 = vsel %vm606_vm7, %v601_v39, %v603_v48  ;;  %v611_v56 = vmul.f32 %v610_v53, %v4516_v58 }
 0x128   :  { %v613_v39 = vmul.f32 %v608_v41, %v4526_v51  ;;  %v614_v44 = vmul.f32 %v607_v19, %v4531_v8 }
 0x129   :  { %v627_v26 = vpop.permute.xlu1 %626 }
 0x12a   :  { %v625_v42 = vpop.permute.xlu0 %624 }
 0x12b   :  { %v635_v5 = vsel %vm632_vm8, %v625_v42, %v627_v26 }
 0x12c   :  { %v638_v9 = vmul.f32 %v4511_v10, %v635_v5 }
 0x12d   :  { %v631_v5 = vpop.permute.xlu1 %630 }
 0x12e   :  { %v629_v43 = vpop.permute.xlu0 %628  ;;  %v843_v48 = vpack.c.bf16 %v638_v9, %v612_v33  ;;  %v636_v11 = vsel %vm632_vm8, %v631_v5, %v625_v42  ;;  %v841_v42 = vld [vmem:[%s5080_s2] sm:$0xf] }
 0x12f   :  { %v633_v59 = vsel %vm632_vm8, %v629_v43, %v631_v5  ;;  %v634_v27 = vsel %vm632_vm8, %v627_v26, %v629_v43  ;;  %v637_v12 = vmul.f32 %v4541_v34, %v636_v11  ;;  %v5339_v11 = vmov 0  }
 0x130   :  { %v639_v53 = vmul.f32 %v4546_v55, %v634_v27  ;;  %v640_v60 = vmul.f32 %v4551_v57, %v633_v59  ;;  %899 = vmatprep.subr.bf16.mxu0 %v843_v48 }
 0x131   :  { %v842_v33 = vpack.c.bf16 %v637_v12, %v611_v56 }
 0x132   :  { %v845_v41 = vpack.c.bf16 %v640_v60, %v614_v44  ;;  %v844_v9 = vpack.c.bf16 %v639_v53, %v613_v39 }
 0x133   :  { %900 = vmatpush1.bf16.msra.mxu0 %v842_v33 }
 0x134   :  { %940 = vmatprep.subr.bf16.mxu1 %v845_v41 }
 0x135   :  { %941 = vmatpush1.bf16.msra.mxu1 %v844_v9 }
 0x136   :  { %2491 = vmatmul.mubr.msk.bf16.vlgmr.msra.gmra.mxu0 %vm868_vm9, %v841_v42 }
 0x137   :  { %1277 = vmatprep.mubr.bf16.mxu0 %v5339_v11 }
 0x138   :  { %2493 = vmatmul.mubr.msk.bf16.vlgmr.msra.gmra.mxu1 %vm868_vm9, %v841_v42 }
 0x139   :  { %1318 = vmatprep.mubr.bf16.mxu1 %v5339_v11 }
 0x13b   :  { %v866_v27 = vpop.permute.xlu0 %865 }
 0x1f6   :  { %v919_v12 = vpop.f32.mrf.mxu0 }
 0x1f7   :  { %v920_v43 = vadd.f32 %v919_v12, %v866_v27 }
 0x1f8   :  { %v960_v44 = vpop.f32.mrf.mxu1  ;;  %v921_v60 = vpop.f32.mrf.mxu0 }
 0x1f9   :  { %v961_v59 = vadd.f32 %v960_v44, %v866_v27  ;;  %v4572_v26 = vmax.f32 %v920_v43, 0.0  ;;  %v922_v19 = vadd.f32 %v921_v60, %v866_v27 }
 0x1fa   :  { %v962_v56 = vpop.f32.mrf.mxu1  ;;  %v923_v48 = vpop.f32.mrf.mxu0 }
 0x1fb   :  { %v4574_v5 = vmax.f32 %v961_v59, 0.0  ;;  %1147 = vrot.lane.b32.xlu1 %v4572_v26, %s2853_s29  ;;  %v4580_v33 = vmax.f32 %v922_v19, 0.0  ;;  %v963_v41 = vadd.f32 %v962_v56, %v866_v27  ;;  %v1224_v27 = vld [vmem:[%s5083_s5] sm:$0xff] }
 0x1fc   :  { %v964_v39 = vpop.f32.mrf.mxu1  ;;  %v924_v53 = vpop.f32.mrf.mxu0 }
 0x1fd   :  { %1151 = vrot.lane.b32.xlu0 %v4574_v5, %s2853_s29  ;;  %v4586_v42 = vmax.f32 %v963_v41, 0.0 }
 0x1fe   :  { %v965_v9 = vpop.f32.mrf.mxu1 }
 0x1ff   :  { %1149 = vrot.lane.b32.xlu1 %v4580_v33, %s2853_s29 }
 0x201   :  { %1099 = vrot.lane.b32.xlu0 %v4572_v26, %s2854_s13 }
 0x203   :  { %1153 = vrot.lane.b32.xlu1 %v4586_v42, %s2853_s29 }
 0x205   :  { %1103 = vrot.lane.b32.xlu0 %v4574_v5, %s2854_s13 }
 0x207   :  { %1101 = vrot.lane.b32.xlu1 %v4580_v33, %s2854_s13 }
 0x209   :  { %1123 = vrot.lane.b32.xlu0 %v4572_v26, %s2855_s1 }
 0x20b   :  { %1105 = vrot.lane.b32.xlu1 %v4586_v42, %s2854_s13 }
 0x20d   :  { %1127 = vrot.lane.b32.xlu0 %v4574_v5, %s2855_s1 }
 0x20f   :  { %1125 = vrot.lane.b32.xlu1 %v4580_v33, %s2855_s1 }
 0x211   :  { %1075 = vrot.lane.b32.xlu0 %v4572_v26, %s2856_s14 }
 0x213   :  { %1129 = vrot.lane.b32.xlu1 %v4586_v42, %s2855_s1 }
 0x215   :  { %1079 = vrot.lane.b32.xlu0 %v4574_v5, %s2856_s14 }
 0x217   :  { %1077 = vrot.lane.b32.xlu1 %v4580_v33, %s2856_s14 }
 0x219   :  { %1023 = vrot.lane.b32.xlu0 %v4572_v26, %s2857_s15 }
 0x21b   :  { %1081 = vrot.lane.b32.xlu1 %v4586_v42, %s2856_s14 }
 0x21d   :  { %1027 = vrot.lane.b32.xlu0 %v4574_v5, %s2857_s15 }
 0x21f   :  { %1025 = vrot.lane.b32.xlu1 %v4580_v33, %s2857_s15 }
 0x221   :  { %1047 = vrot.lane.b32.xlu0 %v4572_v26, %s2858_s16 }
 0x223   :  { %1029 = vrot.lane.b32.xlu1 %v4586_v42, %s2857_s15 }
 0x225   :  { %1051 = vrot.lane.b32.xlu0 %v4574_v5, %s2858_s16 }
 0x227   :  { %1049 = vrot.lane.b32.xlu1 %v4580_v33, %s2858_s16 }
 0x229   :  { %975 = vrot.lane.b32.xlu0 %v4572_v26, %s2859_s17 }
 0x22b   :  { %1053 = vrot.lane.b32.xlu1 %v4586_v42, %s2858_s16 }
 0x22d   :  { %979 = vrot.lane.b32.xlu0 %v4574_v5, %s2859_s17 }
 0x22f   :  { %977 = vrot.lane.b32.xlu1 %v4580_v33, %s2859_s17 }
 0x231   :  { %999 = vrot.lane.b32.xlu0 %v4572_v26, %s2861_s18 }
 0x233   :  { %981 = vrot.lane.b32.xlu1 %v4586_v42, %s2859_s17 }
 0x235   :  { %1003 = vrot.lane.b32.xlu0 %v4574_v5, %s2861_s18 }
 0x237   :  { %1001 = vrot.lane.b32.xlu1 %v4580_v33, %s2861_s18 }
 0x239   :  { %1227 = vperm.xlu0 %2823, %v1224_v27  }
 0x23b   :  { %1005 = vrot.lane.b32.xlu1 %v4586_v42, %s2861_s18 }
 0x26d   :  { %v1148_v12 = vpop.permute.xlu1 %1147 }
 0x26f   :  { %v1152_v43 = vpop.permute.xlu0 %1151 }
 0x271   :  { %v1150_v44 = vpop.permute.xlu1 %1149 }
 0x272   :  { %v1156_v59 = vsel %vm792_vm0, %v1150_v44, %v1152_v43  ;;  %v1157_v60 = vsel %vm792_vm0, %v1148_v12, %v1150_v44 }
 0x273   :  { %v1100_v19 = vpop.permute.xlu0 %1099  ;;  %v1159_v56 = vmul.f32 %v4302_v50, %v1157_v60  ;;  %v1160_v48 = vmul.f32 %v4307_v1, %v1156_v59 }
 0x275   :  { %v1220_v39 = vpack.c.bf16 %v1159_v56, %v1159_v56  ;;  %v1221_v53 = vpack.c.bf16 %v1160_v48, %v1160_v48  ;;  %v1154_v41 = vpop.permute.xlu1 %1153 }
 0x276   :  { %v1155_v9 = vsel %vm792_vm0, %v1152_v43, %v1154_v41  ;;  %v1158_v27 = vsel %vm792_vm0, %v1154_v41, %v1148_v12 }
 0x277   :  { %v1104_v28 = vpop.permute.xlu0 %1103  ;;  %v1161_v45 = vmul.f32 %v4296_v2, %v1155_v9  ;;  %v1162_v13 = vmul.f32 %v4312_v49, %v1158_v27  ;;  %2522 = vmatprep.subr.msk.bf16.mxu0 %vm872_vm1, %v1221_v53  ;;  %v1234_v50 = vsel %vm872_vm1, %v1220_v39, 0 }
 0x278   :  { %1252 = vmatpush1.bf16.msra.mxu0 %v1234_v50 }
 0x279   :  { %v1222_v1 = vpack.c.bf16 %v1161_v45, %v1161_v45  ;;  %v1223_v44 = vpack.c.bf16 %v1162_v13, %v1162_v13  ;;  %v1102_v59 = vpop.permute.xlu1 %1101 }
 0x27a   :  { %v1108_v2 = vsel %vm740_vm3, %v1102_v59, %v1104_v28  ;;  %v1109_v49 = vsel %vm740_vm3, %v1100_v19, %v1102_v59 }
 0x27b   :  { %v1124_v60 = vpop.permute.xlu0 %1123  ;;  %2524 = vmatprep.subr.msk.bf16.mxu1 %vm872_vm1, %v1223_v44  ;;  %v1240_v43 = vsel %vm872_vm1, %v1222_v1, 0  ;;  %v1111_v53 = vmul.f32 %v4378_v54, %v1109_v49  ;;  %v1112_v41 = vmul.f32 %v4342_v6, %v1108_v2 }
 0x27c   :  { %1293 = vmatpush1.bf16.msra.mxu1 %v1240_v43 }
 0x27d   :  { %v1106_v12 = vpop.permute.xlu1 %1105 }
 0x27e   :  { %v1107_v50 = vsel %vm740_vm3, %v1104_v28, %v1106_v12  ;;  %v1110_v1 = vsel %vm740_vm3, %v1106_v12, %v1100_v19 }
 0x27f   :  { %v1128_v56 = vpop.permute.xlu0 %1127 }
 0x281   :  { %v1126_v48 = vpop.permute.xlu1 %1125 }
 0x282   :  { %v1132_v45 = vsel %vm766_vm2, %v1126_v48, %v1128_v56  ;;  %v1133_v13 = vsel %vm766_vm2, %v1124_v60, %v1126_v48 }
 0x283   :  { %v1076_v39 = vpop.permute.xlu0 %1075  ;;  %v1135_v9 = vmul.f32 %v4354_v38, %v1133_v13  ;;  %v1136_v27 = vmul.f32 %v4368_v17, %v1132_v45  ;;  %v1113_v38 = vmul.f32 %v4349_v37, %v1107_v50  ;;  %v1114_v17 = vmul.f32 %v4335_v4, %v1110_v1 }
 0x285   :  { %v1216_v44 = vpack.c.bf16 %v1135_v9, %v1111_v53  ;;  %v1130_v59 = vpop.permute.xlu1 %1129  ;;  %v1217_v43 = vpack.c.bf16 %v1136_v27, %v1112_v41 }
 0x286   :  { %v1131_v48 = vsel %vm766_vm2, %v1128_v56, %v1130_v59  ;;  %v1134_v54 = vsel %vm766_vm2, %v1130_v59, %v1124_v60 }
 0x287   :  { %v1080_v6 = vpop.permute.xlu0 %1079  ;;  %v1137_v2 = vmul.f32 %v4373_v3, %v1131_v48  ;;  %v1138_v28 = vmul.f32 %v4363_v18, %v1134_v54  ;;  %1253 = vmatprep.subr.bf16.mxu0 %v1217_v43 }
 0x288   :  { %1254 = vmatpush1.bf16.msra.mxu0 %v1216_v44 }
 0x289   :  { %v1218_v19 = vpack.c.bf16 %v1137_v2, %v1113_v38  ;;  %v1078_v12 = vpop.permute.xlu1 %1077  ;;  %v1219_v49 = vpack.c.bf16 %v1138_v28, %v1114_v17 }
 0x28a   :  { %v1084_v56 = vsel %vm714_vm4, %v1078_v12, %v1080_v6  ;;  %v1085_v60 = vsel %vm714_vm4, %v1076_v39, %v1078_v12 }
 0x28b   :  { %v1024_v45 = vpop.permute.xlu0 %1023  ;;  %v1087_v37 = vmul.f32 %v4400_v7, %v1085_v60  ;;  %v1088_v4 = vmul.f32 %v4412_v22, %v1084_v56  ;;  %1294 = vmatprep.subr.bf16.mxu1 %v1219_v49 }
 0x28c   :  { %1295 = vmatpush1.bf16.msra.mxu1 %v1218_v19 }
 0x28d   :  { %v1212_v18 = vpack.c.bf16 %v1087_v37, %v4572_v26  ;;  %v1082_v3 = vpop.permute.xlu1 %1081  ;;  %v1213_v13 = vpack.c.bf16 %v1088_v4, %v4580_v33 }
 0x28e   :  { %v1083_v53 = vsel %vm714_vm4, %v1080_v6, %v1082_v3  ;;  %v1086_v41 = vsel %vm714_vm4, %v1082_v3, %v1076_v39 }
 0x28f   :  { %v1028_v9 = vpop.permute.xlu0 %1027  ;;  %v1089_v27 = vmul.f32 %v4417_v40, %v1083_v53  ;;  %v1090_v7 = vmul.f32 %v4407_v23, %v1086_v41  ;;  %1255 = vmatprep.subr.bf16.mxu0 %v1213_v13 }
 0x290   :  { %1256 = vmatpush1.bf16.msra.mxu0 %v1212_v18 }
 0x291   :  { %v1214_v22 = vpack.c.bf16 %v1089_v27, %v4574_v5  ;;  %v1026_v50 = vpop.permute.xlu1 %1025  ;;  %v1215_v26 = vpack.c.bf16 %v1090_v7, %v4586_v42 }
 0x292   :  { %v1033_v39 = vsel %vm658_vm5, %v1024_v45, %v1026_v50  ;;  %v1032_v6 = vsel %vm658_vm5, %v1026_v50, %v1028_v9 }
 0x293   :  { %v1048_v1 = vpop.permute.xlu0 %1047  ;;  %1296 = vmatprep.subr.bf16.mxu1 %v1215_v26  ;;  %v1036_v43 = vmul.f32 %v4438_v32, %v1033_v39  ;;  %v1037_v60 = vmul.f32 %v4460_v20, %v1032_v6 }
 0x294   :  { %1297 = vmatpush1.bf16.msra.mxu1 %v1214_v22 }
 0x295   :  { %v1030_v33 = vpop.permute.xlu1 %1029 }
 0x296   :  { %v1031_v48 = vsel %vm658_vm5, %v1028_v9, %v1030_v33  ;;  %v1034_v54 = vsel %vm658_vm5, %v1030_v33, %v1024_v45 }
 0x297   :  { %v1052_v44 = vpop.permute.xlu0 %1051  ;;  %v1035_v19 = vmul.f32 %v4450_v24, %v1034_v54  ;;  %v1038_v12 = vmul.f32 %v4465_v52, %v1031_v48 }
 0x299   :  { %v1050_v59 = vpop.permute.xlu1 %1049 }
 0x29a   :  { %v1057_v40 = vsel %vm684_vm6, %v1048_v1, %v1050_v59  ;;  %v1056_v5 = vsel %vm684_vm6, %v1050_v59, %v1052_v44 }
 0x29b   :  { %v976_v23 = vpop.permute.xlu0 %975  ;;  %v1060_v42 = vmul.f32 %v4445_v16, %v1057_v40  ;;  %v1061_v2 = vmul.f32 %v4480_v36, %v1056_v5 }
 0x29d   :  { %v1054_v38 = vpop.permute.xlu1 %1053  ;;  %v1209_v17 = vpack.c.bf16 %v1060_v42, %v1036_v43  ;;  %v1210_v4 = vpack.c.bf16 %v1061_v2, %v1037_v60 }
 0x29e   :  { %v1055_v32 = vsel %vm684_vm6, %v1052_v44, %v1054_v38  ;;  %v1058_v28 = vsel %vm684_vm6, %v1054_v38, %v1048_v1 }
 0x29f   :  { %v980_v16 = vpop.permute.xlu0 %979  ;;  %v1059_v49 = vmul.f32 %v4475_v21, %v1058_v28  ;;  %v1062_v56 = vmul.f32 %v4485_v35, %v1055_v32  ;;  %1257 = vmatprep.subr.bf16.mxu0 %v1209_v17 }
 0x2a1   :  { %v1208_v45 = vpack.c.bf16 %v1059_v49, %v1035_v19  ;;  %v978_v36 = vpop.permute.xlu1 %977  ;;  %v1211_v37 = vpack.c.bf16 %v1062_v56, %v1038_v12 }
 0x2a2   :  { %v985_v24 = vsel %vm606_vm7, %v976_v23, %v978_v36  ;;  %v984_v27 = vsel %vm606_vm7, %v978_v36, %v980_v16 }
 0x2a3   :  { %1258 = vmatpush1.bf16.msra.mxu0 %v1208_v45  ;;  %1298 = vmatprep.subr.bf16.mxu1 %v1211_v37  ;;  %v1000_v18 = vpop.permute.xlu0 %999  ;;  %v988_v35 = vmul.f32 %v985_v24, %v4504_v25  ;;  %v989_v39 = vmul.f32 %v984_v27, %v4526_v51  ;;  %v1331_v45 = vld [vmem:[%s5084_s6] sm:$0xf] }
 0x2a4   :  { %1299 = vmatpush1.bf16.msra.mxu1 %v1210_v4 }
 0x2a5   :  { %v982_v3 = vpop.permute.xlu1 %981 }
 0x2a6   :  { %v983_v41 = vsel %vm606_vm7, %v980_v16, %v982_v3  ;;  %v986_v9 = vsel %vm606_vm7, %v982_v3, %v976_v23 }
 0x2a7   :  { %v1004_v13 = vpop.permute.xlu0 %1003  ;;  %v990_v1 = vmul.f32 %v983_v41, %v4531_v8 }
 0x2a9   :  { %v1002_v52 = vpop.permute.xlu1 %1001 }
 0x2aa   :  { %v1009_v21 = vsel %vm632_vm8, %v1000_v18, %v1002_v52  ;;  %v1008_v20 = vsel %vm632_vm8, %v1002_v52, %v1004_v13 }
 0x2ab   :  { %v1012_v53 = vmul.f32 %v4511_v10, %v1009_v21  ;;  %v1013_v50 = vmul.f32 %v4546_v55, %v1008_v20  ;;  %v987_v10 = vmul.f32 %v986_v9, %v4516_v58  ;;  %v1336_v58 = vld [vmem:[%s5085_s7] sm:$0xff] }
 0x2ac   :  { %1339 = vperm.xlu1 %2824, %v1336_v58  }
 0x2ad   :  { %v1006_v7 = vpop.permute.xlu1 %1005  ;;  %v1205_v22 = vpack.c.bf16 %v1012_v53, %v988_v35  ;;  %v1206_v55 = vpack.c.bf16 %v1013_v50, %v989_v39  ;;  %v5340_v50 = vlaneseq }
 0x2ae   :  { %v1007_v25 = vsel %vm632_vm8, %v1004_v13, %v1006_v7  ;;  %v1010_v26 = vsel %vm632_vm8, %v1006_v7, %v1000_v18 }
 0x2af   :  { %v1011_v33 = vmul.f32 %v4541_v34, %v1010_v26  ;;  %v1014_v44 = vmul.f32 %v4551_v57, %v1007_v25  ;;  %1259 = vmatprep.subr.bf16.mxu0 %v1205_v22  ;;  %vm4769_vm11 = vcmp.lt.s32.totalorder %v5340_v50, 256 }
 0x2b1   :  { %v1204_v59 = vpack.c.bf16 %v1011_v33, %v987_v10  ;;  %v1207_v40 = vpack.c.bf16 %v1014_v44, %v990_v1 }
 0x2b3   :  { %1260 = vmatpush1.bf16.msra.mxu0 %v1204_v59  ;;  %1300 = vmatprep.subr.bf16.mxu1 %v1207_v40 }
 0x2b4   :  { %1301 = vmatpush1.bf16.msra.mxu1 %v1206_v55  ;;  %v1228_v51 = vpop.permute.xlu0 %1227 }
 0x2b6   :  { %2523 = vmatmul.mubr.msk.bf16.vlgmr.msra.gmra.mxu0 %vm868_vm9, %v1203_v0 }
 0x2b7   :  { %2525 = vmatmul.mubr.msk.bf16.vlgmr.msra.gmra.mxu1 %vm868_vm9, %v1203_v0  ;;  %1390 = vmatprep.mubr.bf16.mxu0 %v5339_v11 }
 0x2b8   :  { %1431 = vmatprep.mubr.bf16.mxu1 %v5339_v11 }
 0x327   :  { %v1340_v36 = vpop.permute.xlu1 %1339 }
 0x376   :  { %v1279_v8 = vpop.f32.mrf.mxu0 }
 0x377   :  { %v1280_v34 = vadd.f32 %v1279_v8, %v1228_v51  ;;  %v1320_v57 = vpop.f32.mrf.mxu1 }
 0x378   :  { %v1321_v23 = vadd.f32 %v1320_v57, %v1228_v51  ;;  %v1281_v43 = vpop.f32.mrf.mxu0 }
 0x379   :  { %v1327_v5 = vmax.f32 %v1280_v34, 0.0  ;;  %v1282_v42 = vadd.f32 %v1281_v43, %v1228_v51  ;;  %v1322_v48 = vpop.f32.mrf.mxu1 }
 0x37a   :  { %v1329_v54 = vmax.f32 %v1321_v23, 0.0  ;;  %v1323_v6 = vadd.f32 %v1322_v48, %v1228_v51  ;;  %v1283_v38 = vpop.f32.mrf.mxu0 }
 0x37b   :  { %v1332_v17 = vpack.c.bf16 %v1327_v5, %v1327_v5  ;;  %v1328_v2 = vmax.f32 %v1282_v42, 0.0  ;;  %v1324_v11 = vpop.f32.mrf.mxu1 }
 0x37c   :  { %v1334_v32 = vpack.c.bf16 %v1329_v54, %v1329_v54  ;;  %v1330_v28 = vmax.f32 %v1323_v6, 0.0  ;;  %v1284_v16 = vpop.f32.mrf.mxu0 }
 0x37d   :  { %v1333_v19 = vpack.c.bf16 %v1328_v2, %v1328_v2  ;;  %v1325_v12 = vpop.f32.mrf.mxu1  ;;  %v1347_v56 = vsel %vm872_vm1, %v1332_v17, 0 }
 0x37e   :  { %v1335_v49 = vpack.c.bf16 %v1330_v28, %v1330_v28  ;;  %v1353_v60 = vsel %vm872_vm1, %v1334_v32, 0 }
 0x37f   :  { %2526 = vmatprep.subr.msk.bf16.mxu0 %vm872_vm1, %v1333_v19 }
 0x380   :  { %1373 = vmatpush1.bf16.msra.mxu0 %v1347_v56  ;;  %2528 = vmatprep.subr.msk.bf16.mxu1 %vm872_vm1, %v1335_v49 }
 0x381   :  { %1414 = vmatpush1.bf16.msra.mxu1 %v1353_v60  ;;  %2532 = vmatprep.subr.mxu0 %v3077_v31 }
 0x382   :  { %2567 = vmatprep.subr.mxu1 %v3237_v63 }
 0x383   :  { %2527 = vmatmul.mubr.msk.bf16.vlgmr.msra.gmra.mxu0 %vm1342_vm10, %v1331_v45 }
 0x384   :  { %2529 = vmatmul.mubr.msk.bf16.vlgmr.msra.gmra.mxu1 %vm1342_vm10, %v1331_v45 }
 0x443   :  { %v1392_v37 = vpop.f32.mrf.mxu0 }
 0x444   :  { %v1433_v4 = vpop.f32.mrf.mxu1  ;;  %v1393_v18 = vadd.f32 %v1392_v37, %v1340_v36 }
 0x445   :  { %v1394_v3 = vpop.f32.mrf.mxu0  ;;  %v1434_v24 = vadd.f32 %v1433_v4, %v1340_v36 }
 0x446   :  { %v1435_v52 = vpop.f32.mrf.mxu1  ;;  %v1395_v13 = vadd.f32 %v1394_v3, %v1340_v36  ;;  %v1440_v21 = vmax.f32 %v1393_v18, 0.0 }
 0x447   :  { %v1396_v35 = vpop.f32.mrf.mxu0  ;;  %v1436_v20 = vadd.f32 %v1435_v52, %v1340_v36  ;;  %v1442_v53 = vmax.f32 %v1434_v24, 0.0 }
 0x448   :  { %v1437_v41 = vpop.f32.mrf.mxu1  ;;  %v1441_v9 = vmax.f32 %v1395_v13, 0.0  ;;  %1444 = vst [vmem:[#allocation3] sm:$0xff] %v1440_v21 }
 0x449   :  { %v1397_v27 = vpop.f32.mrf.mxu0  ;;  %v1443_v7 = vmax.f32 %v1436_v20, 0.0  ;;  %1446 = vst [vmem:[#allocation3 + $0x10] sm:$0xff] %v1442_v53 }
 0x44a   :  { %1445 = vst [vmem:[#allocation3 + $0x8] sm:$0xff] %v1441_v9  ;;  %v1438_v22 = vpop.f32.mrf.mxu1 }
 0x44b   :  { %1447 = vst [vmem:[#allocation3 + $0x18] sm:$0xff] %v1443_v7 }
 0x451   :  { %v1448_v26 = vld [vmem:[#allocation3] ss:$8 sm:$0x3]  ;;  %v1455_v10 = vld [vmem:[#allocation3 + $0x1] ss:$8 sm:$0x3] }
 0x452   :  { %1453 = vst.msk [vmem:[#allocation4] ss:$2 sm:$0x3] %vm4769_vm11, %v1448_v26  ;;  %1457 = vst.msk [vmem:[#allocation4 + $0x4] ss:$2 sm:$0x3] %vm4769_vm11, %v1455_v10 }
 0x453   :  { %v1459_v1 = vld [vmem:[#allocation3 + $0x2] ss:$8 sm:$0x3]  ;;  %v1463_v33 = vld [vmem:[#allocation3 + $0x3] ss:$8 sm:$0x3] }
 0x454   :  { %1461 = vst.msk [vmem:[#allocation4 + $0x8] ss:$2 sm:$0x3] %vm4769_vm11, %v1459_v1  ;;  %1465 = vst.msk [vmem:[#allocation4 + $0xc] ss:$2 sm:$0x3] %vm4769_vm11, %v1463_v33 }
 0x455   :  { %v1467_v44 = vld [vmem:[#allocation3 + $0x4] ss:$8 sm:$0x3]  ;;  %v1471_v39 = vld [vmem:[#allocation3 + $0x5] ss:$8 sm:$0x3] }
 0x456   :  { %1469 = vst.msk [vmem:[#allocation4 + $0x10] ss:$2 sm:$0x3] %vm4769_vm11, %v1467_v44  ;;  %1473 = vst.msk [vmem:[#allocation4 + $0x14] ss:$2 sm:$0x3] %vm4769_vm11, %v1471_v39 }
 0x457   :  { %v1475_v59 = vld [vmem:[#allocation3 + $0x6] ss:$8 sm:$0x3]  ;;  %v1479_v40 = vld [vmem:[#allocation3 + $0x7] ss:$8 sm:$0x3] }
 0x458   :  { %1477 = vst.msk [vmem:[#allocation4 + $0x18] ss:$2 sm:$0x3] %vm4769_vm11, %v1475_v59  ;;  %1481 = vst.msk [vmem:[#allocation4 + $0x1c] ss:$2 sm:$0x3] %vm4769_vm11, %v1479_v40 }
 0x459   :  { %v1483_v55 = vld [vmem:[#allocation3 + $0x10] ss:$8 sm:$0x3]  ;;  %v1487_v0 = vld [vmem:[#allocation3 + $0x11] ss:$8 sm:$0x3] }
 0x45a   :  { %1485 = vst.msk [vmem:[#allocation4 + $0x1] ss:$2 sm:$0x3] %vm4769_vm11, %v1483_v55  ;;  %1489 = vst.msk [vmem:[#allocation4 + $0x5] ss:$2 sm:$0x3] %vm4769_vm11, %v1487_v0 }
 0x45b   :  { %v1491_v58 = vld [vmem:[#allocation3 + $0x12] ss:$8 sm:$0x3]  ;;  %v1495_v51 = vld [vmem:[#allocation3 + $0x13] ss:$8 sm:$0x3] }
 0x45c   :  { %1493 = vst.msk [vmem:[#allocation4 + $0x9] ss:$2 sm:$0x3] %vm4769_vm11, %v1491_v58  ;;  %1497 = vst.msk [vmem:[#allocation4 + $0xd] ss:$2 sm:$0x3] %vm4769_vm11, %v1495_v51 }
 0x45d   :  { %v1499_v8 = vld [vmem:[#allocation3 + $0x14] ss:$8 sm:$0x3]  ;;  %v1503_v34 = vld [vmem:[#allocation3 + $0x15] ss:$8 sm:$0x3] }
 0x45e   :  { %1501 = vst.msk [vmem:[#allocation4 + $0x11] ss:$2 sm:$0x3] %vm4769_vm11, %v1499_v8  ;;  %1505 = vst.msk [vmem:[#allocation4 + $0x15] ss:$2 sm:$0x3] %vm4769_vm11, %v1503_v34 }
 0x45f   :  { %v1507_v57 = vld [vmem:[#allocation3 + $0x16] ss:$8 sm:$0x3]  ;;  %v1511_v23 = vld [vmem:[#allocation3 + $0x17] ss:$8 sm:$0x3] }
 0x460   :  { %1509 = vst.msk [vmem:[#allocation4 + $0x19] ss:$2 sm:$0x3] %vm4769_vm11, %v1507_v57  ;;  %1513 = vst.msk [vmem:[#allocation4 + $0x1d] ss:$2 sm:$0x3] %vm4769_vm11, %v1511_v23 }
 0x461   :  { %2849 = dma.done.wait [#allocation6], 32768 }
 0x462   :  { %2850 = vsyncadd [#allocation6], 4294934528  ;;  %2533 = vmatpush3.msra.mxu0 %v2997_v15  ;;  %2568 = vmatpush3.msra.mxu1 %v3157_v47  ;;  %v5343_v31 = vld [vmem:[#allocation25_spill] sm:$0xff]  ;;  %v5344_v63 = vld [vmem:[#allocation52_spill] sm:$0xff]  ;;  %v2862_v54 = vmov 1983009808  }
 0x463   :  { %2534 = vmatprep.subr.mxu0 %v3072_v30  ;;  %2569 = vmatprep.subr.mxu1 %v3232_v62  ;;  %v5345_v43 = vld [vmem:[#allocation38_spill] sm:$0xff]  ;;  %v5346_v15 = vld [vmem:[#allocation65_spill] sm:$0xff]  ;;  %v5347_v47 = vld [vmem:[#allocation24_spill] sm:$0xff]  ;;  %v1790_v6 = vunpack.c.l.s4 %v2862_v54  ;;  %v1793_v49 = vshrl.u32 %v5340_v50, 7  ;;  %vm2432_vm12 = vcmask 74752  }
 0x464   :  { %2535 = vmatpush3.msra.mxu0 %v2992_v14  ;;  %2570 = vmatpush3.msra.mxu1 %v3152_v46  ;;  %v5348_v30 = vld [vmem:[#allocation51_spill] sm:$0xff]  ;;  %v5349_v62 = vld [vmem:[#allocation37_spill] sm:$0xff]  ;;  %v5350_v14 = vld [vmem:[#allocation64_spill] sm:$0xff] }
 0x465   :  { %2536 = vmatprep.subr.mxu0 %v3067_v29  ;;  %2571 = vmatprep.subr.mxu1 %v3227_v61  ;;  %v5351_v46 = vld [vmem:[#allocation23_spill] sm:$0xff]  ;;  %v5352_v29 = vld [vmem:[#allocation50_spill] sm:$0xff]  ;;  %v5353_v61 = vld [vmem:[#allocation36_spill] sm:$0xff]  ;;  %v1791_v12 = vunpack.c.0.s8 %v1790_v6 }
 0x466   :  { %2537 = vmatpush3.msra.mxu0 %v5343_v31  ;;  %2572 = vmatpush3.msra.mxu1 %v5344_v63  ;;  %v5354_v5 = vld [vmem:[#allocation63_spill] sm:$0xff]  ;;  %v5355_v42 = vld [vmem:[#allocation22_spill] sm:$0xff]  ;;  %v5356_v48 = vld [vmem:[#allocation49_spill] sm:$0xff] }
 0x467   :  { %2538 = vmatprep.subr.mxu0 %v5345_v43  ;;  %2573 = vmatprep.subr.mxu1 %v5346_v15  ;;  %v5357_v38 = vld [vmem:[#allocation35_spill] sm:$0xff]  ;;  %v5358_v17 = vld [vmem:[#allocation62_spill] sm:$0xff]  ;;  %v5359_v2 = vld [vmem:[#allocation21_spill] sm:$0xff]  ;;  %v4846_v52 = vsub.s32 %v1791_v12, %v1793_v49 }
 0x468   :  { %2539 = vmatpush3.msra.mxu0 %v5347_v47  ;;  %2574 = vmatpush3.msra.mxu1 %v5348_v30  ;;  %v5360_v11 = vld [vmem:[#allocation48_spill] sm:$0xff]  ;;  %v5361_v32 = vld [vmem:[#allocation34_spill] sm:$0xff]  ;;  %v5362_v28 = vld [vmem:[#allocation61_spill] sm:$0xff] }
 0x469   :  { %2540 = vmatprep.subr.mxu0 %v5349_v62  ;;  %2575 = vmatprep.subr.mxu1 %v5350_v14  ;;  %v5363_v16 = vld [vmem:[#allocation20_spill] sm:$0xff]  ;;  %v5364_v19 = vld [vmem:[#allocation47_spill] sm:$0xff]  ;;  %v5365_v56 = vld [vmem:[#allocation33_spill] sm:$0xff] }
 0x46a   :  { %2541 = vmatpush3.msra.mxu0 %v5351_v46  ;;  %2576 = vmatpush3.msra.mxu1 %v5352_v29  ;;  %v5366_v60 = vld [vmem:[#allocation60_spill] sm:$0xff]  ;;  %v5367_v45 = vld [vmem:[#allocation19_spill] sm:$0xff]  ;;  %v5368_v36 = vld [vmem:[#allocation46_spill] sm:$0xff] }
 0x46b   :  { %2542 = vmatprep.subr.mxu0 %v5353_v61  ;;  %2577 = vmatprep.subr.mxu1 %v5354_v5  ;;  %v5369_v37 = vld [vmem:[#allocation32_spill] sm:$0xff]  ;;  %v5370_v4 = vld [vmem:[#allocation59_spill] sm:$0xff]  ;;  %v5371_v3 = vld [vmem:[#allocation18_spill] sm:$0xff] }
 0x46c   :  { %2543 = vmatpush3.msra.mxu0 %v5355_v42  ;;  %2578 = vmatpush3.msra.mxu1 %v5356_v48  ;;  %v1517_v18 = vld [vmem:[#allocation4] sm:$0xff]  ;;  %v5372_v24 = vld [vmem:[#allocation45_spill] sm:$0xff]  ;;  %v5374_v21 = vld [vmem:[#allocation58_spill] sm:$0xff] }
 0x46d   :  { %2544 = vmatprep.subr.mxu0 %v5357_v38  ;;  %2579 = vmatprep.subr.mxu1 %v5358_v17  ;;  %v5373_v13 = vld [vmem:[#allocation31_spill] sm:$0xff]  ;;  %v5375_v35 = vld [vmem:[#allocation17_spill] sm:$0xff]  ;;  %v5376_v20 = vld [vmem:[#allocation44_spill] sm:$0xff]  ;;  %v1788_v53 = vcombine.high %v1517_v18, %v1517_v18  ;;  %v1795_v22 = vrot.slane %v1517_v18, %v4846_v52 }
 0x46e   :  { %2545 = vmatpush3.msra.mxu0 %v5359_v2  ;;  %2580 = vmatpush3.msra.mxu1 %v5360_v11  ;;  %v5377_v41 = vld [vmem:[#allocation30_spill] sm:$0xff]  ;;  %v5378_v9 = vld [vmem:[#allocation57_spill] sm:$0xff]  ;;  %v5379_v27 = vld [vmem:[#allocation16_spill] sm:$0xff] }
 0x46f   :  { %2546 = vmatprep.subr.mxu0 %v5361_v32  ;;  %2581 = vmatprep.subr.mxu1 %v5362_v28  ;;  %v5380_v7 = vld [vmem:[#allocation43_spill] sm:$0xff]  ;;  %v5381_v50 = vld [vmem:[#allocation29_spill] sm:$0xff]  ;;  %v5382_v25 = vld [vmem:[#allocation56_spill] sm:$0xff]  ;;  %v1802_v1 = vrot.slane %v1788_v53, %v4846_v52  ;;  %v1803_v40 = vcombine.high %v1795_v22, %v1795_v22 }
 0x470   :  { %2547 = vmatpush3.msra.mxu0 %v5363_v16  ;;  %2582 = vmatpush3.msra.mxu1 %v5364_v19  ;;  %v5383_v26 = vld [vmem:[#allocation15_spill] sm:$0xff]  ;;  %v5384_v10 = vld [vmem:[#allocation42_spill] sm:$0xff]  ;;  %v5385_v33 = vld [vmem:[#allocation28_spill] sm:$0xff] }
 0x471   :  { %2548 = vmatprep.subr.mxu0 %v5365_v56  ;;  %2583 = vmatprep.subr.mxu1 %v5366_v60  ;;  %v5386_v44 = vld [vmem:[#allocation55_spill] sm:$0xff]  ;;  %v5387_v39 = vld [vmem:[#allocation14_spill] sm:$0xff]  ;;  %v5388_v59 = vld [vmem:[#allocation41_spill] sm:$0xff]  ;;  %v1804_v8 = vcombine.high %v1802_v1, %v1802_v1 }
 0x472   :  { %2549 = vmatpush3.msra.mxu0 %v5367_v45  ;;  %2584 = vmatpush3.msra.mxu1 %v5368_v36  ;;  %v5389_v55 = vld [vmem:[#allocation27_spill] sm:$0xff]  ;;  %v5390_v0 = vld [vmem:[#allocation54_spill] sm:$0xff]  ;;  %v5391_v58 = vld [vmem:[#allocation13_spill] sm:$0xff] }
 0x473   :  { %2550 = vmatprep.subr.mxu0 %v5369_v37  ;;  %2585 = vmatprep.subr.mxu1 %v5370_v4  ;;  %v5392_v51 = vld [vmem:[#allocation40_spill] sm:$0xff]  ;;  %v5393_v34 = vld [vmem:[#allocation26_spill] sm:$0xff]  ;;  %v5394_v57 = vld [vmem:[#allocation53_spill] sm:$0xff] }
 0x474   :  { %2551 = vmatpush3.msra.mxu0 %v5371_v3  ;;  %2586 = vmatpush3.msra.mxu1 %v5372_v24  ;;  %v5395_v23 = vld [vmem:[#allocation12_spill] sm:$0xff]  ;;  %v5396_v31 = vld [vmem:[#allocation39_spill] sm:$0xff]  ;;  %v5397_v63 = vld [vmem:[#allocation97_spill] sm:$0xff] }
 0x475   :  { %2552 = vmatprep.subr.mxu0 %v5373_v13  ;;  %2587 = vmatprep.subr.mxu1 %v5374_v21  ;;  %v5398_v43 = vld [vmem:[#allocation129_spill] sm:$0xff]  ;;  %v5401_v30 = vld [vmem:[#allocation96_spill] sm:$0xff]  ;;  %v5405_v29 = vld [vmem:[#allocation95_spill] sm:$0xff] }
 0x476   :  { %2553 = vmatpush3.msra.mxu0 %v5375_v35  ;;  %2588 = vmatpush3.msra.mxu1 %v5376_v20  ;;  %v5399_v15 = vld [vmem:[#allocation81_spill] sm:$0xff]  ;;  %v5402_v62 = vld [vmem:[#allocation128_spill] sm:$0xff]  ;;  %v5406_v61 = vld [vmem:[#allocation127_spill] sm:$0xff] }
 0x477   :  { %2554 = vmatprep.subr.mxu0 %v5377_v41  ;;  %2589 = vmatprep.subr.mxu1 %v5378_v9  ;;  %v5400_v47 = vld [vmem:[#allocation113_spill] sm:$0xff]  ;;  %v5403_v14 = vld [vmem:[#allocation80_spill] sm:$0xff]  ;;  %v5407_v5 = vld [vmem:[#allocation79_spill] sm:$0xff] }
 0x478   :  { %2555 = vmatpush3.msra.mxu0 %v5379_v27  ;;  %2590 = vmatpush3.msra.mxu1 %v5380_v7  ;;  %v5404_v46 = vld [vmem:[#allocation112_spill] sm:$0xff]  ;;  %v5408_v42 = vld [vmem:[#allocation111_spill] sm:$0xff]  ;;  %v5409_v48 = vld [vmem:[#allocation94_spill] sm:$0xff] }
 0x479   :  { %2556 = vmatprep.subr.mxu0 %v5381_v50  ;;  %2591 = vmatprep.subr.mxu1 %v5382_v25  ;;  %v5410_v54 = vld [vmem:[#allocation126_spill] sm:$0xff]  ;;  %v5413_v17 = vld [vmem:[#allocation93_spill] sm:$0xff]  ;;  %v5417_v28 = vld [vmem:[#allocation92_spill] sm:$0xff] }
 0x47a   :  { %2557 = vmatpush3.msra.mxu0 %v5383_v26  ;;  %2592 = vmatpush3.msra.mxu1 %v5384_v10  ;;  %v5411_v6 = vld [vmem:[#allocation78_spill] sm:$0xff]  ;;  %v5414_v2 = vld [vmem:[#allocation125_spill] sm:$0xff]  ;;  %v5418_v16 = vld [vmem:[#allocation124_spill] sm:$0xff] }
 0x47b   :  { %2558 = vmatprep.subr.mxu0 %v5385_v33  ;;  %2593 = vmatprep.subr.mxu1 %v5386_v44  ;;  %v5412_v38 = vld [vmem:[#allocation110_spill] sm:$0xff]  ;;  %v5415_v11 = vld [vmem:[#allocation77_spill] sm:$0xff]  ;;  %v5419_v19 = vld [vmem:[#allocation76_spill] sm:$0xff] }
 0x47c   :  { %2559 = vmatpush3.msra.mxu0 %v5387_v39  ;;  %2594 = vmatpush3.msra.mxu1 %v5388_v59  ;;  %v5416_v32 = vld [vmem:[#allocation109_spill] sm:$0xff]  ;;  %v5420_v12 = vld [vmem:[#allocation108_spill] sm:$0xff]  ;;  %v5421_v49 = vld [vmem:[#allocation91_spill] sm:$0xff] }
 0x47d   :  { %2560 = vmatprep.subr.mxu0 %v5389_v55  ;;  %2595 = vmatprep.subr.mxu1 %v5390_v0  ;;  %v5422_v56 = vld [vmem:[#allocation123_spill] sm:$0xff]  ;;  %v5425_v36 = vld [vmem:[#allocation90_spill] sm:$0xff]  ;;  %v5429_v3 = vld [vmem:[#allocation89_spill] sm:$0xff] }
 0x47e   :  { %2561 = vmatpush3.msra.mxu0 %v5391_v58  ;;  %2596 = vmatpush3.msra.mxu1 %v5392_v51  ;;  %v5423_v60 = vld [vmem:[#allocation75_spill] sm:$0xff]  ;;  %v5426_v37 = vld [vmem:[#allocation122_spill] sm:$0xff]  ;;  %v5430_v24 = vld [vmem:[#allocation121_spill] sm:$0xff] }
 0x47f   :  { %2562 = vmatprep.subr.mxu0 %v5393_v34  ;;  %2597 = vmatprep.subr.mxu1 %v5394_v57  ;;  %v5424_v45 = vld [vmem:[#allocation107_spill] sm:$0xff]  ;;  %v5427_v4 = vld [vmem:[#allocation74_spill] sm:$0xff]  ;;  %v5431_v13 = vld [vmem:[#allocation73_spill] sm:$0xff] }
 0x480   :  { %2563 = vmatpush3.msra.mxu0 %v5395_v23  ;;  %1936 = vmatprep.mubr.f32.mxu0 %v1803_v40  ;;  %v5428_v18 = vld [vmem:[#allocation106_spill] sm:$0xff]  ;;  %v5432_v21 = vld [vmem:[#allocation105_spill] sm:$0xff]  ;;  %v5433_v35 = vld [vmem:[#allocation88_spill] sm:$0xff] }
 0x481   :  { %2598 = vmatpush3.msra.mxu1 %v5396_v31  ;;  %1937 = vmatmul.mubr.f32.vlgmr.msra.gmra.mxu0 %v1795_v22  ;;  %v5434_v20 = vld [vmem:[#allocation120_spill] sm:$0xff]  ;;  %v5437_v27 = vld [vmem:[#allocation87_spill] sm:$0xff]  ;;  %v5441_v26 = vld [vmem:[#allocation86_spill] sm:$0xff] }
 0x482   :  { %2006 = vmatprep.mubr.f32.mxu1 %v1804_v8  ;;  %2602 = vmatprep.subr.mxu0 %v5397_v63  ;;  %v1518_v53 = vld [vmem:[#allocation4 + $0x8] sm:$0xff]  ;;  %v5438_v7 = vld [vmem:[#allocation119_spill] sm:$0xff]  ;;  %v5442_v10 = vld [vmem:[#allocation118_spill] sm:$0xff] }
 0x483   :  { %2637 = vmatprep.subr.mxu1 %v5398_v43  ;;  %2007 = vmatmul.mubr.f32.vlgmr.msra.gmra.mxu1 %v1802_v1  ;;  %v5435_v41 = vld [vmem:[#allocation72_spill] sm:$0xff]  ;;  %v5439_v22 = vld [vmem:[#allocation71_spill] sm:$0xff]  ;;  %v1805_v25 = vcombine.high %v1518_v53, %v1518_v53  ;;  %v5443_v1 = vld [vmem:[#allocation70_spill] sm:$0xff]  ;;  %v1812_v44 = vrot.slane %v1518_v53, %v4846_v52 }
 0x484   :  { %2603 = vmatpush3.msra.mxu0 %v5399_v15  ;;  %2638 = vmatpush3.msra.mxu1 %v5400_v47  ;;  %v5436_v9 = vld [vmem:[#allocation104_spill] sm:$0xff]  ;;  %v5440_v50 = vld [vmem:[#allocation103_spill] sm:$0xff]  ;;  %v5444_v33 = vld [vmem:[#allocation102_spill] sm:$0xff] }
 0x485   :  { %2604 = vmatprep.subr.mxu0 %v5401_v30  ;;  %2639 = vmatprep.subr.mxu1 %v5402_v62  ;;  %v5445_v39 = vld [vmem:[#allocation85_spill] sm:$0xff]  ;;  %v1819_v0 = vrot.slane %v1805_v25, %v4846_v52  ;;  %v5449_v58 = vld [vmem:[#allocation84_spill] sm:$0xff]  ;;  %v1820_v57 = vcombine.high %v1812_v44, %v1812_v44  ;;  %v5453_v23 = vld [vmem:[#allocation83_spill] sm:$0xff] }
 0x486   :  { %2605 = vmatpush3.msra.mxu0 %v5403_v14  ;;  %2640 = vmatpush3.msra.mxu1 %v5404_v46  ;;  %v5446_v59 = vld [vmem:[#allocation117_spill] sm:$0xff]  ;;  %v5450_v51 = vld [vmem:[#allocation116_spill] sm:$0xff]  ;;  %v5454_v31 = vld [vmem:[#allocation115_spill] sm:$0xff] }
 0x487   :  { %2606 = vmatprep.subr.mxu0 %v5405_v29  ;;  %2641 = vmatprep.subr.mxu1 %v5406_v61  ;;  %v5447_v40 = vld [vmem:[#allocation69_spill] sm:$0xff]  ;;  %v5451_v8 = vld [vmem:[#allocation68_spill] sm:$0xff]  ;;  %v5455_v63 = vld [vmem:[#allocation67_spill] sm:$0xff]  ;;  %v1821_v15 = vcombine.high %v1819_v0, %v1819_v0 }
 0x488   :  { %2607 = vmatpush3.msra.mxu0 %v5407_v5  ;;  %2642 = vmatpush3.msra.mxu1 %v5408_v42  ;;  %v5448_v55 = vld [vmem:[#allocation101_spill] sm:$0xff]  ;;  %v5452_v34 = vld [vmem:[#allocation100_spill] sm:$0xff]  ;;  %v5456_v43 = vld [vmem:[#allocation99_spill] sm:$0xff] }
 0x489   :  { %2608 = vmatprep.subr.mxu0 %v5409_v48  ;;  %2643 = vmatprep.subr.mxu1 %v5410_v54  ;;  %v5457_v47 = vld [vmem:[#allocation82_spill] sm:$0xff]  ;;  %v5461_v46 = vld [vmem:[#allocation161_spill] sm:$0xff]  ;;  %v5465_v42 = vld [vmem:[#allocation160_spill] sm:$0xff] }
 0x48a   :  { %2609 = vmatpush3.msra.mxu0 %v5411_v6  ;;  %2644 = vmatpush3.msra.mxu1 %v5412_v38  ;;  %v5458_v30 = vld [vmem:[#allocation114_spill] sm:$0xff]  ;;  %v5462_v29 = vld [vmem:[#allocation193_spill] sm:$0xff]  ;;  %v5466_v48 = vld [vmem:[#allocation192_spill] sm:$0xff] }
 0x48b   :  { %2610 = vmatprep.subr.mxu0 %v5413_v17  ;;  %2645 = vmatprep.subr.mxu1 %v5414_v2  ;;  %v5459_v62 = vld [vmem:[#allocation66_spill] sm:$0xff]  ;;  %v5463_v61 = vld [vmem:[#allocation145_spill] sm:$0xff]  ;;  %v5467_v54 = vld [vmem:[#allocation144_spill] sm:$0xff] }
 0x48c   :  { %2611 = vmatpush3.msra.mxu0 %v5415_v11  ;;  %2646 = vmatpush3.msra.mxu1 %v5416_v32  ;;  %v5460_v14 = vld [vmem:[#allocation98_spill] sm:$0xff]  ;;  %v5464_v5 = vld [vmem:[#allocation177_spill] sm:$0xff]  ;;  %v5468_v6 = vld [vmem:[#allocation176_spill] sm:$0xff] }
 0x48d   :  { %2612 = vmatprep.subr.mxu0 %v5417_v28  ;;  %2647 = vmatprep.subr.mxu1 %v5418_v16  ;;  %v5469_v38 = vld [vmem:[#allocation159_spill] sm:$0xff]  ;;  %v5473_v32 = vld [vmem:[#allocation158_spill] sm:$0xff] }
 0x48e   :  { %2613 = vmatpush3.msra.mxu0 %v5419_v19  ;;  %2648 = vmatpush3.msra.mxu1 %v5420_v12  ;;  %v5470_v17 = vld [vmem:[#allocation191_spill] sm:$0xff]  ;;  %v5474_v28 = vld [vmem:[#allocation190_spill] sm:$0xff]  ;;  %v5477_v12 = vld [vmem:[#allocation157_spill] sm:$0xff] }
 0x48f   :  { %2614 = vmatprep.subr.mxu0 %v5421_v49  ;;  %2649 = vmatprep.subr.mxu1 %v5422_v56  ;;  %v5471_v2 = vld [vmem:[#allocation143_spill] sm:$0xff]  ;;  %v5475_v16 = vld [vmem:[#allocation142_spill] sm:$0xff]  ;;  %v5478_v49 = vld [vmem:[#allocation189_spill] sm:$0xff] }
 0x490   :  { %2615 = vmatpush3.msra.mxu0 %v5423_v60  ;;  %2650 = vmatpush3.msra.mxu1 %v5424_v45  ;;  %v5472_v11 = vld [vmem:[#allocation175_spill] sm:$0xff]  ;;  %v5476_v19 = vld [vmem:[#allocation174_spill] sm:$0xff]  ;;  %v5479_v56 = vld [vmem:[#allocation141_spill] sm:$0xff] }
 0x491   :  { %2616 = vmatprep.subr.mxu0 %v5425_v36  ;;  %2651 = vmatprep.subr.mxu1 %v5426_v37  ;;  %v5480_v60 = vld [vmem:[#allocation173_spill] sm:$0xff]  ;;  %v5481_v45 = vld [vmem:[#allocation156_spill] sm:$0xff]  ;;  %v5492_v53 = vld [vmem:[#allocation170_spill] sm:$0xff] }
 0x492   :  { %2617 = vmatpush3.msra.mxu0 %v5427_v4  ;;  %2652 = vmatpush3.msra.mxu1 %v5428_v18  ;;  %v5482_v36 = vld [vmem:[#allocation188_spill] sm:$0xff]  ;;  %v5485_v18 = vld [vmem:[#allocation155_spill] sm:$0xff]  ;;  %v1519_v25 = vld [vmem:[#allocation4 + $0x10] sm:$0xff] }
 0x493   :  { %2618 = vmatprep.subr.mxu0 %v5429_v3  ;;  %2653 = vmatprep.subr.mxu1 %v5430_v24  ;;  %v5483_v37 = vld [vmem:[#allocation140_spill] sm:$0xff]  ;;  %v5486_v3 = vld [vmem:[#allocation187_spill] sm:$0xff] }
 0x494   :  { %2619 = vmatpush3.msra.mxu0 %v5431_v13  ;;  %2654 = vmatpush3.msra.mxu1 %v5432_v21  ;;  %v5484_v4 = vld [vmem:[#allocation172_spill] sm:$0xff]  ;;  %v5487_v24 = vld [vmem:[#allocation139_spill] sm:$0xff]  ;;  %v5489_v21 = vld [vmem:[#allocation154_spill] sm:$0xff] }
 0x495   :  { %2620 = vmatprep.subr.mxu0 %v5433_v35  ;;  %2655 = vmatprep.subr.mxu1 %v5434_v20  ;;  %v5488_v13 = vld [vmem:[#allocation171_spill] sm:$0xff]  ;;  %v5490_v35 = vld [vmem:[#allocation186_spill] sm:$0xff] }
 0x496   :  { %2621 = vmatpush3.msra.mxu0 %v5435_v41  ;;  %2656 = vmatpush3.msra.mxu1 %v5436_v9  ;;  %v5491_v20 = vld [vmem:[#allocation138_spill] sm:$0xff]  ;;  %v5493_v41 = vld [vmem:[#allocation153_spill] sm:$0xff] }
 0x497   :  { %2622 = vmatprep.subr.mxu0 %v5437_v27  ;;  %2657 = vmatprep.subr.mxu1 %v5438_v7  ;;  %v5494_v9 = vld [vmem:[#allocation185_spill] sm:$0xff] }
 0x498   :  { %2623 = vmatpush3.msra.mxu0 %v5439_v22  ;;  %2658 = vmatpush3.msra.mxu1 %v5440_v50  ;;  %v5495_v27 = vld [vmem:[#allocation137_spill] sm:$0xff]  ;;  %v5497_v22 = vld [vmem:[#allocation152_spill] sm:$0xff] }
 0x499   :  { %2624 = vmatprep.subr.mxu0 %v5441_v26  ;;  %2659 = vmatprep.subr.mxu1 %v5442_v10  ;;  %v5496_v7 = vld [vmem:[#allocation169_spill] sm:$0xff]  ;;  %v5498_v50 = vld [vmem:[#allocation184_spill] sm:$0xff] }
 0x49a   :  { %2625 = vmatpush3.msra.mxu0 %v5443_v1  ;;  %2660 = vmatpush3.msra.mxu1 %v5444_v33  ;;  %v5499_v26 = vld [vmem:[#allocation136_spill] sm:$0xff]  ;;  %v5501_v1 = vld [vmem:[#allocation151_spill] sm:$0xff] }
 0x49b   :  { %2626 = vmatprep.subr.mxu0 %v5445_v39  ;;  %2661 = vmatprep.subr.mxu1 %v5446_v59  ;;  %v5500_v10 = vld [vmem:[#allocation168_spill] sm:$0xff]  ;;  %v5502_v33 = vld [vmem:[#allocation183_spill] sm:$0xff]  ;;  %v1822_v59 = vcombine.high %v1519_v25, %v1519_v25 }
 0x49c   :  { %2627 = vmatpush3.msra.mxu0 %v5447_v40  ;;  %2662 = vmatpush3.msra.mxu1 %v5448_v55  ;;  %v5504_v39 = vld [vmem:[#allocation167_spill] sm:$0xff]  ;;  %v5505_v40 = vld [vmem:[#allocation150_spill] sm:$0xff] }
 0x49d   :  { %2628 = vmatprep.subr.mxu0 %v5449_v58  ;;  %2663 = vmatprep.subr.mxu1 %v5450_v51  ;;  %v5506_v55 = vld [vmem:[#allocation182_spill] sm:$0xff]  ;;  %v1829_v51 = vrot.slane %v1519_v25, %v4846_v52 }
 0x49e   :  { %2629 = vmatpush3.msra.mxu0 %v5451_v8  ;;  %2664 = vmatpush3.msra.mxu1 %v5452_v34  ;;  %v5508_v58 = vld [vmem:[#allocation166_spill] sm:$0xff]  ;;  %v5509_v8 = vld [vmem:[#allocation149_spill] sm:$0xff] }
 0x49f   :  { %2630 = vmatprep.subr.mxu0 %v5453_v23  ;;  %2665 = vmatprep.subr.mxu1 %v5454_v31  ;;  %v5510_v34 = vld [vmem:[#allocation181_spill] sm:$0xff]  ;;  %v1836_v31 = vrot.slane %v1822_v59, %v4846_v52  ;;  %v5556_v25 = vld [vmem:[#allocation234_spill] sm:$0xff]  ;;  %v5562_v59 = vld [vmem:[#allocation248_spill] sm:$0xff] }
 0x4a0   :  { %2631 = vmatpush3.msra.mxu0 %v5455_v63  ;;  %2666 = vmatpush3.msra.mxu1 %v5456_v43  ;;  %v5512_v23 = vld [vmem:[#allocation165_spill] sm:$0xff]  ;;  %v5513_v63 = vld [vmem:[#allocation148_spill] sm:$0xff] }
 0x4a1   :  { %2632 = vmatprep.subr.mxu0 %v5457_v47  ;;  %2667 = vmatprep.subr.mxu1 %v5458_v30  ;;  %v5514_v43 = vld [vmem:[#allocation180_spill] sm:$0xff]  ;;  %v1837_v30 = vcombine.high %v1829_v51, %v1829_v51 }
 0x4a2   :  { %2633 = vmatpush3.msra.mxu0 %v5459_v62  ;;  %2076 = vmatprep.mubr.f32.mxu0 %v1820_v57  ;;  %v5511_v57 = vld [vmem:[#allocation133_spill] sm:$0xff]  ;;  %v5516_v47 = vld [vmem:[#allocation164_spill] sm:$0xff]  ;;  %v5517_v62 = vld [vmem:[#allocation147_spill] sm:$0xff] }
 0x4a3   :  { %2668 = vmatpush3.msra.mxu1 %v5460_v14  ;;  %2077 = vmatmul.mubr.f32.vlgmr.msra.gmra.mxu0 %v1812_v44  ;;  %v5503_v44 = vld [vmem:[#allocation135_spill] sm:$0xff] }
 0x4a4   :  { %2146 = vmatprep.mubr.f32.mxu1 %v1821_v15  ;;  %2672 = vmatprep.subr.mxu0 %v5461_v46  ;;  %v5515_v15 = vld [vmem:[#allocation132_spill] sm:$0xff]  ;;  %v5518_v14 = vld [vmem:[#allocation179_spill] sm:$0xff] }
 0x4a5   :  { %2707 = vmatprep.subr.mxu1 %v5462_v29  ;;  %2147 = vmatmul.mubr.f32.vlgmr.msra.gmra.mxu1 %v1819_v0  ;;  %v5507_v0 = vld [vmem:[#allocation134_spill] sm:$0xff]  ;;  %v5519_v46 = vld [vmem:[#allocation131_spill] sm:$0xff] }
 0x4a6   :  { %2673 = vmatpush3.msra.mxu0 %v5463_v61  ;;  %2708 = vmatpush3.msra.mxu1 %v5464_v5  ;;  %v5520_v29 = vld [vmem:[#allocation163_spill] sm:$0xff]  ;;  %v1838_v61 = vcombine.high %v1836_v31, %v1836_v31  ;;  %v5521_v5 = vld [vmem:[#allocation146_spill] sm:$0xff] }
 0x4a7   :  { %2674 = vmatprep.subr.mxu0 %v5465_v42  ;;  %2709 = vmatprep.subr.mxu1 %v5466_v48  ;;  %v5522_v42 = vld [vmem:[#allocation178_spill] sm:$0xff] }
 0x4a8   :  { %2675 = vmatpush3.msra.mxu0 %v5467_v54  ;;  %2710 = vmatpush3.msra.mxu1 %v5468_v6  ;;  %v5523_v48 = vld [vmem:[#allocation130_spill] sm:$0xff]  ;;  %v5525_v6 = vld [vmem:[#allocation225_spill] sm:$0xff] }
 0x4a9   :  { %2676 = vmatprep.subr.mxu0 %v5469_v38  ;;  %2711 = vmatprep.subr.mxu1 %v5470_v17  ;;  %v5524_v54 = vld [vmem:[#allocation162_spill] sm:$0xff]  ;;  %v5526_v38 = vld [vmem:[#allocation257_spill] sm:$0xff] }
 0x4aa   :  { %2677 = vmatpush3.msra.mxu0 %v5471_v2  ;;  %2712 = vmatpush3.msra.mxu1 %v5472_v11  ;;  %v5527_v17 = vld [vmem:[#allocation209_spill] sm:$0xff]  ;;  %v5529_v11 = vld [vmem:[#allocation224_spill] sm:$0xff] }
 0x4ab   :  { %2678 = vmatprep.subr.mxu0 %v5473_v32  ;;  %2713 = vmatprep.subr.mxu1 %v5474_v28  ;;  %v5528_v2 = vld [vmem:[#allocation241_spill] sm:$0xff]  ;;  %v5530_v32 = vld [vmem:[#allocation256_spill] sm:$0xff] }
 0x4ac   :  { %2679 = vmatpush3.msra.mxu0 %v5475_v16  ;;  %2714 = vmatpush3.msra.mxu1 %v5476_v19  ;;  %v5531_v28 = vld [vmem:[#allocation208_spill] sm:$0xff]  ;;  %v5533_v19 = vld [vmem:[#allocation223_spill] sm:$0xff] }
 0x4ad   :  { %2680 = vmatprep.subr.mxu0 %v5477_v12  ;;  %2715 = vmatprep.subr.mxu1 %v5478_v49  ;;  %v5532_v16 = vld [vmem:[#allocation240_spill] sm:$0xff]  ;;  %v5534_v12 = vld [vmem:[#allocation255_spill] sm:$0xff] }
 0x4ae   :  { %2681 = vmatpush3.msra.mxu0 %v5479_v56  ;;  %2716 = vmatpush3.msra.mxu1 %v5480_v60  ;;  %v5535_v49 = vld [vmem:[#allocation207_spill] sm:$0xff]  ;;  %v5537_v60 = vld [vmem:[#allocation222_spill] sm:$0xff] }
 0x4af   :  { %2682 = vmatprep.subr.mxu0 %v5481_v45  ;;  %2717 = vmatprep.subr.mxu1 %v5482_v36  ;;  %v5536_v56 = vld [vmem:[#allocation239_spill] sm:$0xff]  ;;  %v5538_v45 = vld [vmem:[#allocation254_spill] sm:$0xff] }
 0x4b0   :  { %2683 = vmatpush3.msra.mxu0 %v5483_v37  ;;  %2718 = vmatpush3.msra.mxu1 %v5484_v4  ;;  %v5539_v36 = vld [vmem:[#allocation206_spill] sm:$0xff]  ;;  %v5541_v4 = vld [vmem:[#allocation221_spill] sm:$0xff] }
 0x4b1   :  { %2684 = vmatprep.subr.mxu0 %v5485_v18  ;;  %2719 = vmatprep.subr.mxu1 %v5486_v3  ;;  %v5540_v37 = vld [vmem:[#allocation238_spill] sm:$0xff]  ;;  %v5542_v18 = vld [vmem:[#allocation253_spill] sm:$0xff] }
 0x4b2   :  { %2685 = vmatpush3.msra.mxu0 %v5487_v24  ;;  %2720 = vmatpush3.msra.mxu1 %v5488_v13  ;;  %v5543_v3 = vld [vmem:[#allocation205_spill] sm:$0xff]  ;;  %v5545_v13 = vld [vmem:[#allocation220_spill] sm:$0xff] }
 0x4b3   :  { %2686 = vmatprep.subr.mxu0 %v5489_v21  ;;  %2721 = vmatprep.subr.mxu1 %v5490_v35  ;;  %v5544_v24 = vld [vmem:[#allocation237_spill] sm:$0xff]  ;;  %v5546_v21 = vld [vmem:[#allocation252_spill] sm:$0xff] }
 0x4b4   :  { %2687 = vmatpush3.msra.mxu0 %v5491_v20  ;;  %2722 = vmatpush3.msra.mxu1 %v5492_v53  ;;  %v5547_v35 = vld [vmem:[#allocation204_spill] sm:$0xff]  ;;  %v5549_v53 = vld [vmem:[#allocation219_spill] sm:$0xff] }
 0x4b5   :  { %2688 = vmatprep.subr.mxu0 %v5493_v41  ;;  %2723 = vmatprep.subr.mxu1 %v5494_v9  ;;  %v5548_v20 = vld [vmem:[#allocation236_spill] sm:$0xff]  ;;  %v5550_v41 = vld [vmem:[#allocation251_spill] sm:$0xff] }
 0x4b6   :  { %2689 = vmatpush3.msra.mxu0 %v5495_v27  ;;  %2724 = vmatpush3.msra.mxu1 %v5496_v7  ;;  %v5551_v9 = vld [vmem:[#allocation203_spill] sm:$0xff]  ;;  %v5553_v7 = vld [vmem:[#allocation218_spill] sm:$0xff] }
 0x4b7   :  { %2690 = vmatprep.subr.mxu0 %v5497_v22  ;;  %2725 = vmatprep.subr.mxu1 %v5498_v50  ;;  %v5552_v27 = vld [vmem:[#allocation235_spill] sm:$0xff]  ;;  %v5554_v22 = vld [vmem:[#allocation250_spill] sm:$0xff] }
 0x4b8   :  { %2691 = vmatpush3.msra.mxu0 %v5499_v26  ;;  %2726 = vmatpush3.msra.mxu1 %v5500_v10  ;;  %v5555_v50 = vld [vmem:[#allocation202_spill] sm:$0xff]  ;;  %v5557_v26 = vld [vmem:[#allocation217_spill] sm:$0xff] }
 0x4b9   :  { %2692 = vmatprep.subr.mxu0 %v5501_v1  ;;  %2727 = vmatprep.subr.mxu1 %v5502_v33  ;;  %v5558_v10 = vld [vmem:[#allocation249_spill] sm:$0xff] }
 0x4ba   :  { %2693 = vmatpush3.msra.mxu0 %v5503_v44  ;;  %2728 = vmatpush3.msra.mxu1 %v5504_v39  ;;  %v5559_v1 = vld [vmem:[#allocation201_spill] sm:$0xff]  ;;  %v1520_v44 = vld [vmem:[#allocation4 + $0x18] sm:$0xff]  ;;  %v5561_v39 = vld [vmem:[#allocation216_spill] sm:$0xff] }
 0x4bb   :  { %2694 = vmatprep.subr.mxu0 %v5505_v40  ;;  %2729 = vmatprep.subr.mxu1 %v5506_v55  ;;  %v5560_v33 = vld [vmem:[#allocation233_spill] sm:$0xff]  ;;  %v5563_v40 = vld [vmem:[#allocation200_spill] sm:$0xff] }
 0x4bc   :  { %2695 = vmatpush3.msra.mxu0 %v5507_v0  ;;  %2730 = vmatpush3.msra.mxu1 %v5508_v58  ;;  %v5564_v55 = vld [vmem:[#allocation232_spill] sm:$0xff]  ;;  %v5565_v0 = vld [vmem:[#allocation215_spill] sm:$0xff] }
 0x4bd   :  { %2696 = vmatprep.subr.mxu0 %v5509_v8  ;;  %2731 = vmatprep.subr.mxu1 %v5510_v34  ;;  %v5566_v58 = vld [vmem:[#allocation247_spill] sm:$0xff] }
 0x4be   :  { %2697 = vmatpush3.msra.mxu0 %v5511_v57  ;;  %2732 = vmatpush3.msra.mxu1 %v5512_v23  ;;  %v5567_v8 = vld [vmem:[#allocation199_spill] sm:$0xff]  ;;  %v5569_v57 = vld [vmem:[#allocation214_spill] sm:$0xff] }
 0x4bf   :  { %2698 = vmatprep.subr.mxu0 %v5513_v63  ;;  %2733 = vmatprep.subr.mxu1 %v5514_v43  ;;  %v5568_v34 = vld [vmem:[#allocation231_spill] sm:$0xff]  ;;  %v5570_v23 = vld [vmem:[#allocation246_spill] sm:$0xff]  ;;  %v1846_v43 = vrot.slane %v1520_v44, %v4846_v52 }
 0x4c0   :  { %2699 = vmatpush3.msra.mxu0 %v5515_v15  ;;  %2734 = vmatpush3.msra.mxu1 %v5516_v47  ;;  %v5572_v63 = vld [vmem:[#allocation230_spill] sm:$0xff]  ;;  %v5573_v15 = vld [vmem:[#allocation213_spill] sm:$0xff] }
 0x4c1   :  { %2700 = vmatprep.subr.mxu0 %v5517_v62  ;;  %2735 = vmatprep.subr.mxu1 %v5518_v14  ;;  %v5574_v47 = vld [vmem:[#allocation245_spill] sm:$0xff] }
 0x4c2   :  { %2701 = vmatpush3.msra.mxu0 %v5519_v46  ;;  %2736 = vmatpush3.msra.mxu1 %v5520_v29  ;;  %v5575_v62 = vld [vmem:[#allocation197_spill] sm:$0xff]  ;;  %v5577_v46 = vld [vmem:[#allocation212_spill] sm:$0xff] }
 0x4c3   :  { %2702 = vmatprep.subr.mxu0 %v5521_v5  ;;  %2737 = vmatprep.subr.mxu1 %v5522_v42  ;;  %v5576_v14 = vld [vmem:[#allocation229_spill] sm:$0xff]  ;;  %v5578_v29 = vld [vmem:[#allocation244_spill] sm:$0xff]  ;;  %v1854_v42 = vcombine.high %v1846_v43, %v1846_v43 }
 0x4c4   :  { %2703 = vmatpush3.msra.mxu0 %v5523_v48  ;;  %2216 = vmatprep.mubr.f32.mxu0 %v1837_v30  ;;  %v5580_v5 = vld [vmem:[#allocation228_spill] sm:$0xff]  ;;  %v5581_v48 = vld [vmem:[#allocation211_spill] sm:$0xff] }
 0x4c5   :  { %2738 = vmatpush3.msra.mxu1 %v5524_v54  ;;  %2217 = vmatmul.mubr.f32.vlgmr.msra.gmra.mxu0 %v1829_v51  ;;  %v1839_v51 = vcombine.high %v1520_v44, %v1520_v44  ;;  %v5582_v54 = vld [vmem:[#allocation243_spill] sm:$0xff] }
 0x4c6   :  { %2286 = vmatprep.mubr.f32.mxu1 %v1838_v61  ;;  %2742 = vmatprep.subr.mxu0 %v5525_v6  ;;  %v5579_v61 = vld [vmem:[#allocation196_spill] sm:$0xff] }
 0x4c7   :  { %2777 = vmatprep.subr.mxu1 %v5526_v38  ;;  %2287 = vmatmul.mubr.f32.vlgmr.msra.gmra.mxu1 %v1836_v31  ;;  %v5571_v31 = vld [vmem:[#allocation198_spill] sm:$0xff]  ;;  %v1853_v30 = vrot.slane %v1839_v51, %v4846_v52  ;;  %v5583_v38 = vld [vmem:[#allocation195_spill] sm:$0xff] }
 0x4c8   :  { %2743 = vmatpush3.msra.mxu0 %v5527_v17  ;;  %2778 = vmatpush3.msra.mxu1 %v5528_v2  ;;  %v5584_v52 = vld [vmem:[#allocation227_spill] sm:$0xff]  ;;  %v5585_v17 = vld [vmem:[#allocation210_spill] sm:$0xff] }
 0x4c9   :  { %2744 = vmatprep.subr.mxu0 %v5529_v11  ;;  %2779 = vmatprep.subr.mxu1 %v5530_v32  ;;  %v1855_v6 = vcombine.high %v1853_v30, %v1853_v30  ;;  %v5586_v2 = vld [vmem:[#allocation242_spill] sm:$0xff] }
 0x4ca   :  { %2745 = vmatpush3.msra.mxu0 %v5531_v28  ;;  %2780 = vmatpush3.msra.mxu1 %v5532_v16  ;;  %v5587_v11 = vld [vmem:[#allocation194_spill] sm:$0xff] }
 0x4cb   :  { %2746 = vmatprep.subr.mxu0 %v5533_v19  ;;  %2781 = vmatprep.subr.mxu1 %v5534_v12  ;;  %v5588_v32 = vld [vmem:[#allocation226_spill] sm:$0xff] }
 0x4cc   :  { %2747 = vmatpush3.msra.mxu0 %v5535_v49  ;;  %2782 = vmatpush3.msra.mxu1 %v5536_v56  ;;  %v2530_v56 = vld [vmem:[%s5087_s9] ss:$0 sm:$0xff]  ;;  %s2863_s9 = smov [#allocation7]  }
 0x4cd   :  { %2748 = vmatprep.subr.mxu0 %v5537_v60  ;;  %2783 = vmatprep.subr.mxu1 %v5538_v45  ;;  %s2440_s16 = sshll.u32 %s2863_s9, 4  ;;  %s2441_s16 = int_to_ptr.vmem [resolvable:$true] %s2440_s16 }
 0x4ce   :  { %2749 = vmatpush3.msra.mxu0 %v5539_v36  ;;  %2784 = vmatpush3.msra.mxu1 %v5540_v37  ;;  %s2829_s17 = scalar_lea.vmem %s2441_s16, 32  ;;  %p2834_p1 = scmp.lt.s32.totalorder %s2441_s16, %s2441_s16 }
 0x4cf   :  { %2750 = vmatprep.subr.mxu0 %v5541_v4  ;;  %2785 = vmatprep.subr.mxu1 %v5542_v18  ;;  %p2830_p0 = scmp.ne.s32.totalorder %s2441_s16, %s2829_s17  ;;  %p2835_p2 = scmp.lt.s32.totalorder %s2829_s17, %s2829_s17 }
 0x4d0   :  { %2751 = vmatpush3.msra.mxu0 %v5543_v3  ;;  %2786 = vmatpush3.msra.mxu1 %v5544_v24 }
 0x4d1   :  { %2752 = vmatprep.subr.mxu0 %v5545_v13  ;;  %2787 = vmatprep.subr.mxu1 %v5546_v21  ;;  %p2836_p3 = por %p2835_p2, %p2834_p1 }
 0x4d2   :  { %2753 = vmatpush3.msra.mxu0 %v5547_v35  ;;  %2788 = vmatpush3.msra.mxu1 %v5548_v20 }
 0x4d3   :  { %2754 = vmatprep.subr.mxu0 %v5549_v53  ;;  %2789 = vmatprep.subr.mxu1 %v5550_v41  ;;  %p2837_p4 = pnand %p2836_p3, %p2830_p0 }
 0x4d4   :  { %2755 = vmatpush3.msra.mxu0 %v5551_v9  ;;  %2790 = vmatpush3.msra.mxu1 %v5552_v27 }
 0x4d5   :  { %2756 = vmatprep.subr.mxu0 %v5553_v7  ;;  %2791 = vmatprep.subr.mxu1 %v5554_v22 }
 0x4d6   :  { %2757 = vmatpush3.msra.mxu0 %v5555_v50  ;;  %2792 = vmatpush3.msra.mxu1 %v5556_v25 }
 0x4d7   :  { %2758 = vmatprep.subr.mxu0 %v5557_v26  ;;  %2793 = vmatprep.subr.mxu1 %v5558_v10 }
 0x4d8   :  { %2759 = vmatpush3.msra.mxu0 %v5559_v1  ;;  %2794 = vmatpush3.msra.mxu1 %v5560_v33 }
 0x4d9   :  { %2760 = vmatprep.subr.mxu0 %v5561_v39  ;;  %2795 = vmatprep.subr.mxu1 %v5562_v59 }
 0x4da   :  { %2761 = vmatpush3.msra.mxu0 %v5563_v40  ;;  %2796 = vmatpush3.msra.mxu1 %v5564_v55 }
 0x4db   :  { %2762 = vmatprep.subr.mxu0 %v5565_v0  ;;  %2797 = vmatprep.subr.mxu1 %v5566_v58 }
 0x4dc   :  { %2763 = vmatpush3.msra.mxu0 %v5567_v8  ;;  %2798 = vmatpush3.msra.mxu1 %v5568_v34 }
 0x4dd   :  { %2764 = vmatprep.subr.mxu0 %v5569_v57  ;;  %2799 = vmatprep.subr.mxu1 %v5570_v23 }
 0x4de   :  { %2765 = vmatpush3.msra.mxu0 %v5571_v31  ;;  %2800 = vmatpush3.msra.mxu1 %v5572_v63 }
 0x4df   :  { %2766 = vmatprep.subr.mxu0 %v5573_v15  ;;  %2801 = vmatprep.subr.mxu1 %v5574_v47 }
 0x4e0   :  { %2767 = vmatpush3.msra.mxu0 %v5575_v62  ;;  %2802 = vmatpush3.msra.mxu1 %v5576_v14 }
 0x4e1   :  { %2768 = vmatprep.subr.mxu0 %v5577_v46  ;;  %2803 = vmatprep.subr.mxu1 %v5578_v29 }
 0x4e2   :  { %2769 = vmatpush3.msra.mxu0 %v5579_v61  ;;  %2804 = vmatpush3.msra.mxu1 %v5580_v5 }
 0x4e3   :  { %2770 = vmatprep.subr.mxu0 %v5581_v48  ;;  %2805 = vmatprep.subr.mxu1 %v5582_v54 }
 0x4e4   :  { %2771 = vmatpush3.msra.mxu0 %v5583_v38  ;;  %2806 = vmatpush3.msra.mxu1 %v5584_v52 }
 0x4e5   :  { %2772 = vmatprep.subr.mxu0 %v5585_v17  ;;  %2807 = vmatprep.subr.mxu1 %v5586_v2 }
 0x4e6   :  { %2773 = vmatpush3.msra.mxu0 %v5587_v11  ;;  %2356 = vmatprep.mubr.f32.mxu0 %v1854_v42 }
 0x4e7   :  { %2808 = vmatpush3.msra.mxu1 %v5588_v32  ;;  %2426 = vmatprep.mubr.f32.mxu1 %v1855_v6 }
 0x4e8   :  { %2357 = vmatmul.mubr.f32.vlgmr.msra.gmra.mxu0 %v1846_v43  ;;  %2427 = vmatmul.mubr.f32.vlgmr.msra.gmra.mxu1 %v1853_v30 }
 0x541   :  { %v2564_v28 = vpop.f32.mrf.mxu0 }
 0x543   :  { %v2599_v16 = vpop.f32.mrf.mxu1  ;;  %v2565_v19 = vpop.f32.mrf.mxu0 }
 0x544   :  { %v2566_v49 = vadd.f32 %v2565_v19, %v2564_v28 }
 0x545   :  { %v2600_v60 = vpop.f32.mrf.mxu1 }
 0x546   :  { %v1939_v37 = vadd.f32 %v2566_v49, %v2530_v56  ;;  %v2601_v4 = vadd.f32 %v2600_v60, %v2599_v16 }
 0x548   :  { %v2009_v13 = vadd.f32 %v2601_v4, %v1939_v37 }
 0x563   :  { %v2634_v12 = vpop.f32.mrf.mxu0 }
 0x565   :  { %v2669_v45 = vpop.f32.mrf.mxu1  ;;  %v2635_v36 = vpop.f32.mrf.mxu0 }
 0x566   :  { %v2636_v3 = vadd.f32 %v2635_v36, %v2634_v12 }
 0x567   :  { %v2670_v24 = vpop.f32.mrf.mxu1 }
 0x568   :  { %v2079_v20 = vadd.f32 %v2636_v3, %v2009_v13  ;;  %v2671_v53 = vadd.f32 %v2670_v24, %v2669_v45 }
 0x56a   :  { %v2149_v27 = vadd.f32 %v2671_v53, %v2079_v20 }
 0x585   :  { %v2704_v18 = vpop.f32.mrf.mxu0 }
 0x587   :  { %v2739_v21 = vpop.f32.mrf.mxu1  ;;  %v2705_v35 = vpop.f32.mrf.mxu0 }
 0x588   :  { %v2706_v41 = vadd.f32 %v2705_v35, %v2704_v18 }
 0x589   :  { %v2740_v9 = vpop.f32.mrf.mxu1 }
 0x58a   :  { %v2219_v7 = vadd.f32 %v2706_v41, %v2149_v27  ;;  %v2741_v22 = vadd.f32 %v2740_v9, %v2739_v21 }
 0x58c   :  { %v2289_v1 = vadd.f32 %v2741_v22, %v2219_v7 }
 0x5a8   :  { %v2774_v50 = vpop.f32.mrf.mxu0  ;;  %v2809_v25 = vpop.f32.mrf.mxu1 }
 0x5aa   :  { %v2775_v26 = vpop.f32.mrf.mxu0  ;;  %v2810_v10 = vpop.f32.mrf.mxu1 }
 0x5ab   :  { %v2776_v33 = vadd.f32 %v2775_v26, %v2774_v50  ;;  %v2811_v39 = vadd.f32 %v2810_v10, %v2809_v25 }
 0x5ad   :  { %v2359_v44 = vadd.f32 %v2776_v33, %v2289_v1 }
 0x5af   :  { %v2429_v59 = vadd.f32 %v2811_v39, %v2359_v44 }
 0x5b1   :  { %2433 = vst.msk [vmem:[#allocation7] sm:$0x3] %vm2432_vm12, %v2429_v59 }
 0x5b2   :  { %2840 = shalt.err (!%p2837_p4)
}
 0x5b3   :  { %2443 = dma.vmem_to_hbm [thread:$0]  %s2441_s16, 32, %s5088_s10, [#allocation8]  }
 0x5b4   :  { %2851 = dma.done.wait [#allocation8], 32  }
 0x5b5   :  { %2852 = vsyncadd [#allocation8], 4294967264 }
 0x5b6   :  { %2447 = vsyncpa [#allocation8], 1 }
 0x5b7   :  { %2448 = vsyncmov [#allocation6] }
 0x5ba   :  { %s2449_s26 = vpop.sfrf %2448 }
 0x5bb   :  { %p2531_p5 = scmp.ne.s32.totalorder %s2449_s26, 0 }
 0x5bd   :  { %2453 = shalt.err (%p2531_p5)  }

</bundles_post_ra>
